<compile_context>
chip_gen: v7x
topology: tpu7x:2x2x1
jax: 0.10.0
libtpu: 0.0.40
codegen_flags: <defaults>
</compile_context>

<pallas_src>
import math
from functools import partial

import jax
import jax.numpy as jnp
from jax import lax
from jax.experimental import pallas as pl
from jax.experimental.pallas import tpu as pltpu


# Scoped-VMEM ceiling for the GEMM kernels: comfortably above what the chosen
# tiles need (~10-20 MiB double-buffered) and safely below every generation's
# physical VMEM (64 MiB on v7x, 128 MiB on v5e/v6e).
_GEMM_VMEM_LIMIT = 48 * 1024 * 1024


# ----------------------------------------------------------------------------
# helpers
# ----------------------------------------------------------------------------

def _pick_tile(dim, target, align):
    """Largest `align`-aligned divisor of `dim` that is <= target, else `dim`.

    Falling back to the full dim always satisfies Mosaic's (8, 128)
    block-divisibility rule ("divisible or equal to the full array dim").
    """
    if dim <= target:
        return dim
    t = (target // align) * align
    while t >= align:
        if dim % t == 0:
            return t
        t -= align
    return dim


def _as_bf16(a):
    return a if a.dtype == jnp.bfloat16 else a.astype(jnp.bfloat16)


def _as_f32(a):
    return a if a.dtype == jnp.float32 else a.astype(jnp.float32)


# ----------------------------------------------------------------------------
# GEMM kernels
# ----------------------------------------------------------------------------

def _linear_kernel(x_ref, w_ref, b_ref, o_ref, acc_ref):
    k = pl.program_id(2)

    @pl.when(k == 0)
    def _():
        acc_ref[...] = jnp.zeros_like(acc_ref)

    acc_ref[...] += jnp.dot(x_ref[...], w_ref[...],
                            preferred_element_type=jnp.float32)

    @pl.when(k == pl.num_programs(2) - 1)
    def _():
        o_ref[...] = (acc_ref[...] + b_ref[...]).astype(o_ref.dtype)


def _linear_sum2_kernel(x_ref, r_ref, w_ref, b_ref, o_ref, acc_ref):
    """(x + r) @ w + b: residual add fused into the GEMM (used for zs = skip+h)."""
    k = pl.program_id(2)

    @pl.when(k == 0)
    def _():
        acc_ref[...] = jnp.zeros_like(acc_ref)

    acc_ref[...] += jnp.dot(x_ref[...] + r_ref[...], w_ref[...],
                            preferred_element_type=jnp.float32)

    @pl.when(k == pl.num_programs(2) - 1)
    def _():
        o_ref[...] = (acc_ref[...] + b_ref[...]).astype(o_ref.dtype)


def _gemm_call(kernel, inputs_mk, w, b, M, N, K, out_dtype):
    """Shared pallas_call plumbing for _linear_kernel / _linear_sum2_kernel."""
    tm = _pick_tile(M, 1024, 16)    # 16: bf16 packs two rows per sublane
    tn = _pick_tile(N, 512, 128)
    tk = _pick_tile(K, 512, 128)
    n_x = len(inputs_mk)
    in_specs = ([pl.BlockSpec((tm, tk), lambda i, j, k: (i, k))] * n_x
                + [pl.BlockSpec((tk, tn), lambda i, j, k: (k, j)),
                   pl.BlockSpec((1, tn), lambda i, j, k: (0, j))])
    return pl.pallas_call(
        kernel,
        grid=(M // tm, N // tn, K // tk),
        in_specs=in_specs,
        out_specs=pl.BlockSpec((tm, tn), lambda i, j, k: (i, j)),
        out_shape=jax.ShapeDtypeStruct((M, N), out_dtype),
        scratch_shapes=[pltpu.VMEM((tm, tn), jnp.float32)],
        compiler_params=pltpu.CompilerParams(
            dimension_semantics=("parallel", "parallel", "arbitrary"),
            vmem_limit_bytes=_GEMM_VMEM_LIMIT),
    )(*inputs_mk, w, b)


def linear(x, w, b, out_dtype=jnp.bfloat16):
    """y = x @ w + b  (weights stored (in, out)); bf16 operands, f32 accum."""
    lead, K = x.shape[:-1], x.shape[-1]
    N = w.shape[1]
    x2 = _as_bf16(x.reshape(-1, K))
    out = _gemm_call(_linear_kernel, [x2], _as_bf16(w),
                     _as_f32(b.reshape(1, N)), x2.shape[0], N, K, out_dtype)
    return out.reshape(*lead, N)


def linear_sum2(x, r, w, b, out_dtype=jnp.bfloat16):
    """y = (x + r) @ w + b with the residual add done in-kernel."""
    lead, K = x.shape[:-1], x.shape[-1]
    N = w.shape[1]
    x2 = _as_bf16(x.reshape(-1, K))
    r2 = _as_bf16(r.reshape(-1, K))
    out = _gemm_call(_linear_sum2_kernel, [x2, r2], _as_bf16(w),
                     _as_f32(b.reshape(1, N)), x2.shape[0], N, K, out_dtype)
    return out.reshape(*lead, N)


def _ffn_kernel(x_ref, w1_ref, b1_ref, w2_ref, b2_ref, o_ref, acc_ref):
    f = pl.program_id(1)

    @pl.when(f == 0)
    def _():
        acc_ref[...] = jnp.zeros_like(acc_ref)

    h = jnp.dot(x_ref[...], w1_ref[...],
                preferred_element_type=jnp.float32) + b1_ref[...]
    h = jnp.maximum(h, 0.0)
    acc_ref[...] += jnp.dot(h.astype(w2_ref.dtype), w2_ref[...],
                            preferred_element_type=jnp.float32)

    @pl.when(f == pl.num_programs(1) - 1)
    def _():
        o_ref[...] = (acc_ref[...] + b2_ref[...]).astype(o_ref.dtype)


def ffn(x, w1, b1, w2, b2, out_dtype=jnp.bfloat16):
    """Fused relu(x @ w1 + b1) @ w2 + b2.

    The FULL output width N is kept resident (no N tiling), so the first GEMM
    and the w1 DMA are done exactly once per row tile; the ff dim is the
    reduction ("arbitrary") grid axis.
    """
    lead, D = x.shape[:-1], x.shape[-1]
    F, N = w1.shape[1], w2.shape[1]
    x2 = _as_bf16(x.reshape(-1, D))
    M = x2.shape[0]
    tm = _pick_tile(M, 1024, 16)
    tf = _pick_tile(F, 512, 128)
    out = pl.pallas_call(
        _ffn_kernel,
        grid=(M // tm, F // tf),
        in_specs=[
            pl.BlockSpec((tm, D), lambda i, f: (i, 0)),
            pl.BlockSpec((D, tf), lambda i, f: (0, f)),
            pl.BlockSpec((1, tf), lambda i, f: (0, f)),
            pl.BlockSpec((tf, N), lambda i, f: (f, 0)),
            pl.BlockSpec((1, N), lambda i, f: (0, 0)),
        ],
        out_specs=pl.BlockSpec((tm, N), lambda i, f: (i, 0)),
        out_shape=jax.ShapeDtypeStruct((M, N), out_dtype),
        scratch_shapes=[pltpu.VMEM((tm, N), jnp.float32)],
        compiler_params=pltpu.CompilerParams(
            dimension_semantics=("parallel", "arbitrary"),
            vmem_limit_bytes=_GEMM_VMEM_LIMIT),
    )(x2, _as_bf16(w1), _as_f32(b1.reshape(1, F)),
      _as_bf16(w2), _as_f32(b2.reshape(1, N)))
    return out.reshape(*lead, N)


# ----------------------------------------------------------------------------
# LayerNorm kernels
# ----------------------------------------------------------------------------

def _ln_body(x, g_ref, b_ref, o_ref):
    mu = jnp.mean(x, axis=-1, keepdims=True)
    var = jnp.mean(jnp.square(x - mu), axis=-1, keepdims=True)
    y = (x - mu) * lax.rsqrt(var + 1e-5) * g_ref[...] + b_ref[...]
    o_ref[...] = y.astype(o_ref.dtype)


def _layernorm_kernel(x_ref, g_ref, b_ref, o_ref):
    _ln_body(x_ref[...].astype(jnp.float32), g_ref, b_ref, o_ref)


def _add_layernorm_kernel(x_ref, r_ref, g_ref, b_ref, o_ref):
    _ln_body(x_ref[...].astype(jnp.float32) + r_ref[...].astype(jnp.float32),
             g_ref, b_ref, o_ref)


def _layernorm_call(kernel, data_arrays, g, b, out_dtype):
    M, D = data_arrays[0].shape
    # Modest row tile: the tile (plus residual) is upcast to f32 in-kernel.
    tm = _pick_tile(M, 512, 16)
    in_specs = ([pl.BlockSpec((tm, D), lambda i: (i, 0))] * len(data_arrays)
                + [pl.BlockSpec((1, D), lambda i: (0, 0))] * 2)
    return pl.pallas_call(
        kernel,
        grid=(M // tm,),
        in_specs=in_specs,
        out_specs=pl.BlockSpec((tm, D), lambda i: (i, 0)),
        out_shape=jax.ShapeDtypeStruct((M, D), out_dtype),
        compiler_params=pltpu.CompilerParams(dimension_semantics=("parallel",)),
    )(*data_arrays, _as_f32(g.reshape(1, D)), _as_f32(b.reshape(1, D)))


def layernorm(x, g, b, out_dtype=jnp.bfloat16):
    lead, D = x.shape[:-1], x.shape[-1]
    out = _layernorm_call(_layernorm_kernel, [x.reshape(-1, D)], g, b, out_dtype)
    return out.reshape(*lead, D)


def add_layernorm(x, res, g, b, out_dtype=jnp.bfloat16):
    """LayerNorm(x + res) with the residual add fused into the kernel."""
    lead, D = x.shape[:-1], x.shape[-1]
    out = _layernorm_call(_add_layernorm_kernel,
                          [x.reshape(-1, D), res.reshape(-1, D)], g, b, out_dtype)
    return out.reshape(*lead, D)


# ----------------------------------------------------------------------------
# Linear-attention kernels (elu+1 feature map)
# ----------------------------------------------------------------------------

def _elu_plus_one(x):
    # elu(x) + 1 (fast-transformers feature map); exp arg clamped so the
    # untaken branch can never overflow.
    return jnp.where(x > 0, x + 1.0, jnp.exp(jnp.minimum(x, 0.0)))


def _linatt_kv_kernel(k_ref, v_ref, kv_out, ksum_out, kv_acc, ksum_acc,
                      *, n_heads):
    """Chunked reduction: per-head KV state sum phi(k) v^T and key-sum.

    NOTE: the VMEM accumulators are reset at c == 0 for every batch element;
    this relies on the chunk axis (axis 1, "arbitrary") being the innermost
    grid axis -- do not reorder the grid axes.
    """
    c = pl.program_id(1)

    @pl.when(c == 0)
    def _():
        kv_acc[...] = jnp.zeros_like(kv_acc)
        ksum_acc[...] = jnp.zeros_like(ksum_acc)

    k = _elu_plus_one(k_ref[0].astype(jnp.float32))                  # (Ck, D)
    v = v_ref[0].astype(jnp.float32)                                 # (Ck, Dv)
    dh = k.shape[-1] // n_heads
    dhv = v.shape[-1] // n_heads
    # TODO(synk): head-batched dot_general would need a head-major layout;
    # heads are few, so the per-head loop is kept (no in-kernel concatenate).
    for h in range(n_heads):
        kh = k[:, h * dh:(h + 1) * dh]
        vh = v[:, h * dhv:(h + 1) * dhv]
        # phi(K)^T V without an explicit transpose: contract dim 0 with dim 0.
        kv_acc[h] += lax.dot_general(kh, vh, (((0,), (0,)), ((), ())),
                                     preferred_element_type=jnp.float32)
    ksum_acc[...] += jnp.sum(k, axis=0, keepdims=True)               # (1, D)

    @pl.when(c == pl.num_programs(1) - 1)
    def _():
        kv_out[0] = kv_acc[...]
        ksum_out[0] = ksum_acc[...]


def _linatt_apply_kernel(q_ref, kv_ref, ksum_ref, o_ref, *, n_heads):
    """Apply precomputed per-head KV state to a query chunk (non-causal)."""
    q = _elu_plus_one(q_ref[0].astype(jnp.float32))                  # (Cq, D)
    den_full = q * ksum_ref[0]                                       # (Cq, D)
    dh = q.shape[-1] // n_heads
    dhv = o_ref.shape[-1] // n_heads
    for h in range(n_heads):
        qh = q[:, h * dh:(h + 1) * dh]
        num = jnp.dot(qh, kv_ref[0, h], preferred_element_type=jnp.float32)
        den = jnp.sum(den_full[:, h * dh:(h + 1) * dh], axis=-1, keepdims=True)
        z = pl.reciprocal(den + 1e-6, approx=True)
        # direct per-head store: no in-kernel concatenate / relayout
        o_ref[0, :, h * dhv:(h + 1) * dhv] = (num * z).astype(o_ref.dtype)


def linear_attention(q, k, v, n_heads, chunk_target=512):
    """Non-causal linear attention; q: (B,Sq,D), k: (B,Sk,D), v: (B,Sk,Dv).

    Two chunked kernels keep per-step VMEM at O(C*D) instead of O(S*D).
    """
    B, Sq, D = q.shape
    _, Sk, Dv = v.shape
    dh, dhv = D // n_heads, Dv // n_heads
    Ck = _pick_tile(Sk, chunk_target, 16)
    Cq = _pick_tile(Sq, chunk_target, 16)

    kv, ksum = pl.pallas_call(
        partial(_linatt_kv_kernel, n_heads=n_heads),
        grid=(B, Sk // Ck),
        in_specs=[pl.BlockSpec((1, Ck, D), lambda b, c: (b, c, 0)),
                  pl.BlockSpec((1, Ck, Dv), lambda b, c: (b, c, 0))],
        out_specs=[pl.BlockSpec((1, n_heads, dh, dhv), lambda b, c: (b, 0, 0, 0)),
                   pl.BlockSpec((1, 1, D), lambda b, c: (b, 0, 0))],
        out_shape=[jax.ShapeDtypeStruct((B, n_heads, dh, dhv), jnp.float32),
                   jax.ShapeDtypeStruct((B, 1, D), jnp.float32)],
        scratch_shapes=[pltpu.VMEM((n_heads, dh, dhv), jnp.float32),
                        pltpu.VMEM((1, D), jnp.float32)],
        compiler_params=pltpu.CompilerParams(
            dimension_semantics=("parallel", "arbitrary")),
    )(k, v)

    return pl.pallas_call(
        partial(_linatt_apply_kernel, n_heads=n_heads),
        grid=(B, Sq // Cq),
        in_specs=[pl.BlockSpec((1, Cq, D), lambda b, c: (b, c, 0)),
                  pl.BlockSpec((1, n_heads, dh, dhv), lambda b, c: (b, 0, 0, 0)),
                  pl.BlockSpec((1, 1, D), lambda b, c: (b, 0, 0))],
        out_specs=pl.BlockSpec((1, Cq, Dv), lambda b, c: (b, c, 0)),
        out_shape=jax.ShapeDtypeStruct((B, Sq, Dv), jnp.bfloat16),
        compiler_params=pltpu.CompilerParams(
            dimension_semantics=("parallel", "parallel")),
    )(q, kv, ksum)


def _causal_linear_attn_kernel(q_ref, k_ref, v_ref, o_ref, kv_ref, ksum_ref,
                               *, n_heads):
    """Chunked causal linear attention.

    Carries per-head prefix state sum_{s<chunk} phi(k_s) v_s^T (kv_ref) and
    sum_{s<chunk} phi(k_s) (ksum_ref) in VMEM scratch across the chunk axis;
    the intra-chunk part is a small lower-triangular product.

    NOTE: the scratch reset at c == 0 relies on the chunk axis (axis 1,
    "arbitrary") being the innermost grid axis; reordering the grid axes
    would leak KV state across batch elements.
    """
    c = pl.program_id(1)

    @pl.when(c == 0)
    def _():
        kv_ref[...] = jnp.zeros_like(kv_ref)
        ksum_ref[...] = jnp.zeros_like(ksum_ref)

    q = _elu_plus_one(q_ref[0].astype(jnp.float32))                  # (C, D)
    k = _elu_plus_one(k_ref[0].astype(jnp.float32))                  # (C, D)
    v = v_ref[0].astype(jnp.float32)                                 # (C, Dv)
    C = q.shape[0]
    dh = q.shape[-1] // n_heads
    dhv = v.shape[-1] // n_heads

    row = lax.broadcasted_iota(jnp.int32, (C, C), 0)
    col = lax.broadcasted_iota(jnp.int32, (C, C), 1)
    causal_mask = col <= row

    for h in range(n_heads):
        sl_k = slice(h * dh, (h + 1) * dh)
        sl_v = slice(h * dhv, (h + 1) * dhv)
        qh, kh, vh = q[:, sl_k], k[:, sl_k], v[:, sl_v]
        # contribution of all previous chunks (carried prefix state)
        num = jnp.dot(qh, kv_ref[h], preferred_element_type=jnp.float32)
        den = jnp.sum(qh * ksum_ref[h], axis=-1, keepdims=True)
        # intra-chunk lower-triangular contribution (no explicit transpose)
        a = lax.dot_general(qh, kh, (((1,), (1,)), ((), ())),
                            preferred_element_type=jnp.float32)      # (C, C)
        a = jnp.where(causal_mask, a, 0.0)
        num = num + jnp.dot(a, vh, preferred_element_type=jnp.float32)
        den = den + jnp.sum(a, axis=-1, keepdims=True)
        # exact reciprocal in the causal path (errors compound across chunks)
        o_ref[0, :, sl_v] = (num / (den + 1e-6)).astype(o_ref.dtype)
        # carry this chunk's keys/values forward
        kv_ref[h] = kv_ref[h] + lax.dot_general(
            kh, vh, (((0,), (0,)), ((), ())), preferred_element_type=jnp.float32)
        ksum_ref[h] = ksum_ref[h] + jnp.sum(kh, axis=0, keepdims=True)


def causal_linear_attention(q, k, v, n_heads, chunk_target=256):
    B, S, D = q.shape
    Dv = v.shape[-1]
    dh, dhv = D // n_heads, Dv // n_heads
    C = _pick_tile(S, chunk_target, 16)      # query/key chunk length
    return pl.pallas_call(
        partial(_causal_linear_attn_kernel, n_heads=n_heads),
        grid=(B, S // C),
        in_specs=[pl.BlockSpec((1, C, D), lambda b, c: (b, c, 0)),
                  pl.BlockSpec((1, C, D), lambda b, c: (b, c, 0)),
                  pl.BlockSpec((1, C, Dv), lambda b, c: (b, c, 0))],
        out_specs=pl.BlockSpec((1, C, Dv), lambda b, c: (b, c, 0)),
        out_shape=jax.ShapeDtypeStruct((B, S, Dv), jnp.bfloat16),
        scratch_shapes=[
            pltpu.VMEM((n_heads, dh, dhv), jnp.float32),   # prefix KV state
            pltpu.VMEM((n_heads, 1, dh), jnp.float32),     # prefix k-sum
        ],
        compiler_params=pltpu.CompilerParams(
            dimension_semantics=("parallel", "arbitrary")),
    )(q, k, v)


# ----------------------------------------------------------------------------
# Model glue (plain JAX): attention layers, blocks, embeddings, forward
# ----------------------------------------------------------------------------

def self_attention_layer(x, p, n_heads, causal):
    d = p["wo"].shape[0]                       # inner (per-head-packed) dim
    qkv = linear(x, p["wqkv"], p["bqkv"])      # fused, pre-concatenated weights
    q, k, v = qkv[..., :d], qkv[..., d:2 * d], qkv[..., 2 * d:]
    attn = causal_linear_attention(q, k, v, n_heads) if causal else \
        linear_attention(q, k, v, n_heads)
    return linear(attn, p["wo"], p["bo"])


def cross_attention_layer(x, mem_a, mem_b, p, n_heads):
    d = p["wo"].shape[0]
    q = linear(x, p["wq"], p["bq"])
    # zs = skip + h fused into the K/V projection; pre-concatenated KV weights
    kv = linear_sum2(mem_a, mem_b, p["wkv"], p["bkv"])
    k, v = kv[..., :d], kv[..., d:]
    attn = linear_attention(q, k, v, n_heads)
    return linear(attn, p["wo"], p["bo"])


def encoder_layer(x, p, n_heads):
    attn = self_attention_layer(x, p["attn"], n_heads, causal=False)
    x = add_layernorm(x, attn, p["norm1_g"], p["norm1_b"])
    y = ffn(x, p["ff1_w"], p["ff1_b"], p["ff2_w"], p["ff2_b"])
    return add_layernorm(x, y, p["norm2_g"], p["norm2_b"])


def decoder_layer(x, skip, h_enc, p, n_heads):
    attn = self_attention_layer(x, p["self_attn"], n_heads, causal=True)
    x = add_layernorm(x, attn, p["norm1_g"], p["norm1_b"])
    attn = cross_attention_layer(x, skip, h_enc, p["cross_attn"], n_heads)
    x = add_layernorm(x, attn, p["norm2_g"], p["norm2_b"])
    y = ffn(x, p["ff1_w"], p["ff1_b"], p["ff2_w"], p["ff2_b"])
    return add_layernorm(x, y, p["norm3_g"], p["norm3_b"])


def embed(table, ids, d_model):
    # compound-word Embedding: lookup scaled by sqrt(emb_dim)
    # TODO(synk): embedding gather left to XLA (no benefit from a Pallas gather
    #             at these vocab sizes).
    return table[ids] * math.sqrt(d_model)


def sinusoid_pe(d_model, max_len):
    pos = jnp.arange(max_len, dtype=jnp.float32)[:, None]
    div = jnp.exp(jnp.arange(0, d_model, 2, dtype=jnp.float32)
                  * (-math.log(10000.0) / d_model))
    pe = jnp.zeros((max_len, d_model), jnp.float32)
    pe = pe.at[:, 0::2].set(jnp.sin(pos * div))
    pe = pe.at[:, 1::2].set(jnp.cos(pos * div))
    return pe


def expressor_forward(params, x, y, cfg):
    """Training-mode forward: returns ([logits per out token type], state=None)."""
    B, S, _ = x.shape
    H_enc, H_dec = cfg["enc_heads"], cfg["dec_heads"]

    # --- encoder / decoder input embeddings ---------------------------------
    enc_emb = jnp.concatenate(
        [embed(params["enc_emb"][i], x[..., i], cfg["enc_emb_dims"][i])
         for i in range(len(cfg["enc_emb_dims"]))], axis=-1)
    enc_h = linear(enc_emb, params["enc_emb_lin_w"], params["enc_emb_lin_b"])
    enc_h = enc_h + params["pe_enc"][:S][None, :, :]

    dec_emb = jnp.concatenate(
        [embed(params["dec_emb"][i], y[..., i], cfg["dec_emb_dims"][i])
         for i in range(len(cfg["dec_emb_dims"]))], axis=-1)
    dec_h = linear(dec_emb, params["dec_emb_lin_w"], params["dec_emb_lin_b"])
    dec_h = dec_h + params["pe_dec"][:S][None, :, :]

    # --- encoder block (collect skips) ---------------------------------------
    h = enc_h
    skips = []
    for lp in params["enc_layers"]:
        h = encoder_layer(h, lp, H_enc)
        skips.append(h)
    h = layernorm(h, params["enc_norm_g"], params["enc_norm_b"])

    # skips=True, hidden=True, attr=None, enc_dim == dec_dim (no latent_lin).
    # zs[l] = skips[l] + h is fused into each decoder layer's cross-attention
    # K/V projection -- no separate (B, S, D) HBM add per layer.
    d = dec_h
    for lp, skip in zip(params["dec_layers"], skips):
        d = decoder_layer(d, skip, h, lp, H_dec)
    out = d

    # --- output heads (out_t_types[0] == 'type') ------------------------------
    v0 = cfg["dec_vocab_sizes"][0]
    # lane-padded head weights (prepare_params); slice the logits back here
    y_type_out = linear(out, params["proj_type_w"], params["proj_type_b"],
                        out_dtype=jnp.float32)[..., :v0]
    type_res = embed(params["dec_emb"][0], y[..., 0], cfg["dec_emb_dims"][0])
    out_cat = jnp.concatenate([out, type_res.astype(out.dtype)], axis=-1)
    out2 = linear(out_cat, params["res_concat_w"], params["res_concat_b"])

    rest = []
    if params["proj_tail_w"] is not None:
        logits_cat = linear(out2, params["proj_tail_w"], params["proj_tail_b"],
                            out_dtype=jnp.float32)
        off = 0
        for v_sz in cfg["dec_vocab_sizes"][1:]:
            rest.append(logits_cat[..., off:off + v_sz])
            off += v_sz
    tokens_out = [y_type_out] + rest
    return tokens_out, None


# ----------------------------------------------------------------------------
# Parameter preparation: one-time weight fusion / bf16 cast / lane padding
# ----------------------------------------------------------------------------

def prepare_params(params):
    """Pre-concatenate & pre-cast weights once (outside the jitted forward)."""
    bf, f32 = _as_bf16, _as_f32

    def pad_cols(w, b, align=128):
        n = w.shape[1]
        n_pad = ((n + align - 1) // align) * align
        if n_pad != n:
            w = jnp.pad(w, ((0, 0), (0, n_pad - n)))
            b = jnp.pad(b, (0, n_pad - n))
        return bf(w), f32(b)

    def attn_self(p):
        return {"wqkv": bf(jnp.concatenate([p["wq"], p["wk"], p["wv"]], axis=1)),
                "bqkv": f32(jnp.concatenate([p["bq"], p["bk"], p["bv"]])),
                "wo": bf(p["wo"]), "bo": f32(p["bo"])}

    def attn_cross(p):
        return {"wq": bf(p["wq"]), "bq": f32(p["bq"]),
                "wkv": bf(jnp.concatenate([p["wk"], p["wv"]], axis=1)),
                "bkv": f32(jnp.concatenate([p["bk"], p["bv"]])),
                "wo": bf(p["wo"]), "bo": f32(p["bo"])}

    def enc_layer_fast(p):
        return {"attn": attn_self(p["attn"]),
                "norm1_g": f32(p["norm1_g"]), "norm1_b": f32(p["norm1_b"]),
                "ff1_w": bf(p["ff1_w"]), "ff1_b": f32(p["ff1_b"]),
                "ff2_w": bf(p["ff2_w"]), "ff2_b": f32(p["ff2_b"]),
                "norm2_g": f32(p["norm2_g"]), "norm2_b": f32(p["norm2_b"])}

    def dec_layer_fast(p):
        return {"self_attn": attn_self(p["self_attn"]),
                "cross_attn": attn_cross(p["cross_attn"]),
                "norm1_g": f32(p["norm1_g"]), "norm1_b": f32(p["norm1_b"]),
                "norm2_g": f32(p["norm2_g"]), "norm2_b": f32(p["norm2_b"]),
                "ff1_w": bf(p["ff1_w"]), "ff1_b": f32(p["ff1_b"]),
                "ff2_w": bf(p["ff2_w"]), "ff2_b": f32(p["ff2_b"]),
                "norm3_g": f32(p["norm3_g"]), "norm3_b": f32(p["norm3_b"])}

    fast = {
        "enc_emb": list(params["enc_emb"]),
        "dec_emb": list(params["dec_emb"]),
        "enc_emb_lin_w": bf(params["enc_emb_lin"]["w"]),
        "enc_emb_lin_b": f32(params["enc_emb_lin"]["b"]),
        "dec_emb_lin_w": bf(params["dec_emb_lin"]["w"]),
        "dec_emb_lin_b": f32(params["dec_emb_lin"]["b"]),
        "enc_layers": [enc_layer_fast(p) for p in params["enc_layers"]],
        "dec_layers": [dec_layer_fast(p) for p in params["dec_layers"]],
        "enc_norm_g": f32(params["enc_norm_g"]),
        "enc_norm_b": f32(params["enc_norm_b"]),
        "res_concat_w": bf(params["res_concat"]["w"]),
        "res_concat_b": f32(params["res_concat"]["b"]),
        "pe_enc": bf(params["pe_enc"]),
        "pe_dec": bf(params["pe_dec"]),
    }

    # 'type' head: zero-pad columns up to a 128-lane multiple (sliced in fwd)
    fast["proj_type_w"], fast["proj_type_b"] = pad_cols(
        params["proj"][0]["w"], params["proj"][0]["b"])

    # tail heads: fuse into a single lane-dense matmul (sliced in the wrapper)
    if len(params["proj"]) > 1:
        w_cat = jnp.concatenate([p["w"] for p in params["proj"][1:]], axis=1)
        b_cat = jnp.concatenate([p["b"] for p in params["proj"][1:]], axis=0)
        fast["proj_tail_w"], fast["proj_tail_b"] = pad_cols(w_cat, b_cat)
    else:
        fast["proj_tail_w"], fast["proj_tail_b"] = None, None
    return fast


# ----------------------------------------------------------------------------
# Deterministic parameter init (synthetic; shapes follow Expressor.__init__)
# ----------------------------------------------------------------------------

def init_params(key, cfg):
    kit = iter(jax.random.split(key, 256))

    def w(shape):
        return jax.random.normal(next(kit), shape, jnp.float32) * 0.02

    def zeros(n):
        return jnp.zeros((n,), jnp.float32)

    def ones(n):
        return jnp.ones((n,), jnp.float32)

    def dense(din, dout):
        return {"w": w((din, dout)), "b": zeros(dout)}

    def attn(d_q, d_kv, d_inner, d_out):
        return {"wq": w((d_q, d_inner)), "bq": zeros(d_inner),
                "wk": w((d_kv, d_inner)), "bk": zeros(d_inner),
                "wv": w((d_kv, d_inner)), "bv": zeros(d_inner),
                "wo": w((d_inner, d_out)), "bo": zeros(d_out)}

    d_enc, d_dec = cfg["enc_dim"], cfg["dec_dim"]
    ff_enc, ff_dec = cfg["enc_ff_dim"], cfg["dec_ff_dim"]

    def enc_layer_p():
        return {"attn": attn(d_enc, d_enc, d_enc, d_enc),
                "norm1_g": ones(d_enc), "norm1_b": zeros(d_enc),
                "ff1_w": w((d_enc, ff_enc)), "ff1_b": zeros(ff_enc),
                "ff2_w": w((ff_enc, d_enc)), "ff2_b": zeros(d_enc),
                "norm2_g": ones(d_enc), "norm2_b": zeros(d_enc)}

    def dec_layer_p():
        # attr_emb_dim == 0 -> cross-attn d_keys/d_values default to dec_dim//heads
        return {"self_attn": attn(d_dec, d_dec, d_dec, d_dec),
                "cross_attn": attn(d_dec, d_enc, d_dec, d_dec),
                "norm1_g": ones(d_dec), "norm1_b": zeros(d_dec),
                "norm2_g": ones(d_dec), "norm2_b": zeros(d_dec),
                "ff1_w": w((d_dec, ff_dec)), "ff1_b": zeros(ff_dec),
                "ff2_w": w((ff_dec, d_dec)), "ff2_b": zeros(d_dec),
                "norm3_g": ones(d_dec), "norm3_b": zeros(d_dec)}

    params = {
        "enc_emb": [w((v, e)) for v, e in zip(cfg["enc_vocab_sizes"], cfg["enc_emb_dims"])],
        "dec_emb": [w((v, e)) for v, e in zip(cfg["dec_vocab_sizes"], cfg["dec_emb_dims"])],
        "enc_emb_lin": dense(sum(cfg["enc_emb_dims"]), d_enc),
        "dec_emb_lin": dense(sum(cfg["dec_emb_dims"]), d_dec),
        "enc_layers": [enc_layer_p() for _ in range(cfg["enc_n_layers"])],
        "dec_layers": [dec_layer_p() for _ in range(cfg["dec_n_layers"])],
        "enc_norm_g": ones(d_enc), "enc_norm_b": zeros(d_enc),
        "res_concat": dense(d_dec + cfg["dec_emb_dims"][0], d_dec),
        "proj": [dense(d_dec, v) for v in cfg["dec_vocab_sizes"]],
        "pe_enc": sinusoid_pe(d_enc, cfg["max_len"]),
        "pe_dec": sinusoid_pe(d_dec, cfg["max_len"]),
    }
    return params


# ----------------------------------------------------------------------------
# Demo
# ----------------------------------------------------------------------------

if __name__ == "__main__":
    cfg = dict(
        enc_vocab_sizes=[10, 12, 14], enc_emb_dims=[8, 8, 16],
        dec_vocab_sizes=[10, 12, 14], dec_emb_dims=[8, 8, 16],
        enc_dim=32, dec_dim=32,
        enc_n_layers=2, dec_n_layers=2,
        enc_heads=4, dec_heads=4,
        enc_ff_dim=64, dec_ff_dim=64,
        max_len=64,
    )

    key = jax.random.PRNGKey(0)
    pkey, xkey, ykey = jax.random.split(key, 3)
    params = init_params(pkey, cfg)
    fast_params = prepare_params(params)   # one-time weight fusion / bf16 cast

    B, S = 2, 8
    xkeys = jax.random.split(xkey, len(cfg["enc_vocab_sizes"]))
    ykeys = jax.random.split(ykey, len(cfg["dec_vocab_sizes"]))
    x = jnp.stack([jax.random.randint(k, (B, S), 0, v)
                   for k, v in zip(xkeys, cfg["enc_vocab_sizes"])], axis=-1)
    y = jnp.stack([jax.random.randint(k, (B, S), 0, v)
                   for k, v in zip(ykeys, cfg["dec_vocab_sizes"])], axis=-1)

    fwd = jax.jit(lambda p, xx, yy: expressor_forward(p, xx, yy, cfg))
    tokens_out, state = fwd(fast_params, x, y)
    tokens_out = jax.block_until_ready(tokens_out)

    expected = [(B, S, v) for v in cfg["dec_vocab_sizes"]]
    assert [t.shape for t in tokens_out] == expected, [t.shape for t in tokens_out]
    assert all(bool(jnp.all(jnp.isfinite(t))) for t in tokens_out)
    print("KERNEL_OK")
</pallas_src>

<mosaic_0001>
module attributes {stable_mosaic.version = 11 : i64} {
  func.func @_linear_kernel(%arg0: i32, %arg1: i32, %arg2: i32, %arg3: memref<16x32xbf16, #tpu.memory_space<vmem>>, %arg4: memref<32x32xbf16, #tpu.memory_space<vmem>>, %arg5: memref<1x32xf32, #tpu.memory_space<vmem>>, %arg6: memref<16x32xbf16, #tpu.memory_space<vmem>>, %arg7: memref<16x32xf32, #tpu.memory_space<vmem>>) attributes {dimension_semantics = [#tpu.dimension_semantics<parallel>, #tpu.dimension_semantics<parallel>, #tpu.dimension_semantics<arbitrary>], iteration_bounds = array<i64: 1, 1, 1>, scalar_prefetch = 0 : i64, scratch_operands = 1 : i64, tpu.core_type = #tpu.core_type<tc>, window_params = [{transform_indices = @transform_0, window_bounds = array<i64: 16, 32>}, {transform_indices = @transform_1, window_bounds = array<i64: 32, 32>}, {transform_indices = @transform_2, window_bounds = array<i64: 1, 32>}, {transform_indices = @transform_3, window_bounds = array<i64: 16, 32>}]} {
    %c0_i32 = arith.constant 0 : i32
    %0 = arith.cmpi eq, %arg2, %c0_i32 : i32
    %1 = arith.extui %0 : i1 to i32
    %c0_i32_0 = arith.constant 0 : i32
    %2 = arith.cmpi ne, %1, %c0_i32_0 : i32
    scf.if %2 {
      %cst_10 = arith.constant 0.000000e+00 : f32
      %12 = vector.broadcast %cst_10 : f32 to vector<16x32xf32>
      %c0_11 = arith.constant 0 : index
      %c0_12 = arith.constant 0 : index
      %13 = vector.load %arg7[%c0_11, %c0_12] : memref<16x32xf32, #tpu.memory_space<vmem>>, vector<16x32xf32>
      tpu.vector_store %arg7[%c0_11, %c0_12], %12 {strides = array<i32>} : memref<16x32xf32, #tpu.memory_space<vmem>>, vector<16x32xf32>,
    } else {
    }
    %c0 = arith.constant 0 : index
    %c0_1 = arith.constant 0 : index
    %3 = vector.load %arg7[%c0, %c0_1] : memref<16x32xf32, #tpu.memory_space<vmem>>, vector<16x32xf32>
    %c0_2 = arith.constant 0 : index
    %c0_3 = arith.constant 0 : index
    %4 = vector.load %arg3[%c0_2, %c0_3] : memref<16x32xbf16, #tpu.memory_space<vmem>>, vector<16x32xbf16>
    %c0_4 = arith.constant 0 : index
    %c0_5 = arith.constant 0 : index
    %5 = vector.load %arg4[%c0_4, %c0_5] : memref<32x32xbf16, #tpu.memory_space<vmem>>, vector<32x32xbf16>
    %cst = arith.constant dense<0.000000e+00> : vector<16x32xf32>
    %6 = tpu.matmul %4, %5, %cst {dimension_numbers = #tpu.dot_dimension_numbers<[1], [0], [0], [1], [0, 0, 1, 1], [], []>} : vector<16x32xbf16>, vector<32x32xbf16>, vector<16x32xf32> -> vector<16x32xf32>
    %7 = arith.addf %3, %6 : vector<16x32xf32>
    %c0_6 = arith.constant 0 : index
    %c0_7 = arith.constant 0 : index
    %8 = vector.load %arg7[%c0_6, %c0_7] : memref<16x32xf32, #tpu.memory_space<vmem>>, vector<16x32xf32>
    tpu.vector_store %arg7[%c0_6, %c0_7], %7 {strides = array<i32>} : memref<16x32xf32, #tpu.memory_space<vmem>>, vector<16x32xf32>,
    %c0_i32_8 = arith.constant 0 : i32
    %9 = arith.cmpi eq, %arg2, %c0_i32_8 : i32
    %10 = arith.extui %9 : i1 to i32
    %c0_i32_9 = arith.constant 0 : i32
    %11 = arith.cmpi ne, %10, %c0_i32_9 : i32
    scf.if %11 {
      %c0_10 = arith.constant 0 : index
      %c0_11 = arith.constant 0 : index
      %12 = vector.load %arg7[%c0_10, %c0_11] : memref<16x32xf32, #tpu.memory_space<vmem>>, vector<16x32xf32>
      %c0_12 = arith.constant 0 : index
      %c0_13 = arith.constant 0 : index
      %13 = vector.load %arg5[%c0_12, %c0_13] : memref<1x32xf32, #tpu.memory_space<vmem>>, vector<1x32xf32>
      %14 = vector.broadcast %13 : vector<1x32xf32> to vector<16x32xf32>
      %15 = arith.addf %12, %14 : vector<16x32xf32>
      %16 = arith.truncf %15 : vector<16x32xf32> to vector<16x32xbf16>
      %c0_14 = arith.constant 0 : index
      %c0_15 = arith.constant 0 : index
      %17 = vector.load %arg6[%c0_14, %c0_15] : memref<16x32xbf16, #tpu.memory_space<vmem>>, vector<16x32xbf16>
      tpu.vector_store %arg6[%c0_14, %c0_15], %16 {strides = array<i32>} : memref<16x32xbf16, #tpu.memory_space<vmem>>, vector<16x32xbf16>,
    } else {
    }
    return
  }
  func.func @transform_0(%arg0: i32, %arg1: i32, %arg2: i32) -> (i32, i32) {
    %c0_i32 = arith.constant 0 : i32
    return %arg0, %arg2 : i32, i32
  }
  func.func @transform_1(%arg0: i32, %arg1: i32, %arg2: i32) -> (i32, i32) {
    %c0_i32 = arith.constant 0 : i32
    return %arg2, %arg1 : i32, i32
  }
  func.func @transform_2(%arg0: i32, %arg1: i32, %arg2: i32) -> (i32, i32) {
    %c0_i32 = arith.constant 0 : i32
    %c0_i32_0 = arith.constant 0 : i32
    return %c0_i32, %arg1 : i32, i32
  }
  func.func @transform_3(%arg0: i32, %arg1: i32, %arg2: i32) -> (i32, i32) {
    %c0_i32 = arith.constant 0 : i32
    return %arg0, %arg1 : i32, i32
  }
}

module attributes {stable_mosaic.version = 11 : i64} {
  func.func @_linear_kernel(%arg0: i32, %arg1: i32, %arg2: i32, %arg3: memref<16x32xbf16, #tpu.memory_space<vmem>>, %arg4: memref<32x96xbf16, #tpu.memory_space<vmem>>, %arg5: memref<1x96xf32, #tpu.memory_space<vmem>>, %arg6: memref<16x96xbf16, #tpu.memory_space<vmem>>, %arg7: memref<16x96xf32, #tpu.memory_space<vmem>>) attributes {dimension_semantics = [#tpu.dimension_semantics<parallel>, #tpu.dimension_semantics<parallel>, #tpu.dimension_semantics<arbitrary>], iteration_bounds = array<i64: 1, 1, 1>, scalar_prefetch = 0 : i64, scratch_operands = 1 : i64, tpu.core_type = #tpu.core_type<tc>, window_params = [{transform_indices = @transform_0, window_bounds = array<i64: 16, 32>}, {transform_indices = @transform_1, window_bounds = array<i64: 32, 96>}, {transform_indices = @transform_2, window_bounds = array<i64: 1, 96>}, {transform_indices = @transform_3, window_bounds = array<i64: 16, 96>}]} {
    %c0_i32 = arith.constant 0 : i32
    %0 = arith.cmpi eq, %arg2, %c0_i32 : i32
    %1 = arith.extui %0 : i1 to i32
    %c0_i32_0 = arith.constant 0 : i32
    %2 = arith.cmpi ne, %1, %c0_i32_0 : i32
    scf.if %2 {
      %cst_10 = arith.constant 0.000000e+00 : f32
      %12 = vector.broadcast %cst_10 : f32 to vector<16x96xf32>
      %c0_11 = arith.constant 0 : index
      %c0_12 = arith.constant 0 : index
      %13 = vector.load %arg7[%c0_11, %c0_12] : memref<16x96xf32, #tpu.memory_space<vmem>>, vector<16x96xf32>
      tpu.vector_store %arg7[%c0_11, %c0_12], %12 {strides = array<i32>} : memref<16x96xf32, #tpu.memory_space<vmem>>, vector<16x96xf32>,
    } else {
    }
    %c0 = arith.constant 0 : index
    %c0_1 = arith.constant 0 : index
    %3 = vector.load %arg7[%c0, %c0_1] : memref<16x96xf32, #tpu.memory_space<vmem>>, vector<16x96xf32>
    %c0_2 = arith.constant 0 : index
    %c0_3 = arith.constant 0 : index
    %4 = vector.load %arg3[%c0_2, %c0_3] : memref<16x32xbf16, #tpu.memory_space<vmem>>, vector<16x32xbf16>
    %c0_4 = arith.constant 0 : index
    %c0_5 = arith.constant 0 : index
    %5 = vector.load %arg4[%c0_4, %c0_5] : memref<32x96xbf16, #tpu.memory_space<vmem>>, vector<32x96xbf16>
    %cst = arith.constant dense<0.000000e+00> : vector<16x96xf32>
    %6 = tpu.matmul %4, %5, %cst {dimension_numbers = #tpu.dot_dimension_numbers<[1], [0], [0], [1], [0, 0, 1, 1], [], []>} : vector<16x32xbf16>, vector<32x96xbf16>, vector<16x96xf32> -> vector<16x96xf32>
    %7 = arith.addf %3, %6 : vector<16x96xf32>
    %c0_6 = arith.constant 0 : index
    %c0_7 = arith.constant 0 : index
    %8 = vector.load %arg7[%c0_6, %c0_7] : memref<16x96xf32, #tpu.memory_space<vmem>>, vector<16x96xf32>
    tpu.vector_store %arg7[%c0_6, %c0_7], %7 {strides = array<i32>} : memref<16x96xf32, #tpu.memory_space<vmem>>, vector<16x96xf32>,
    %c0_i32_8 = arith.constant 0 : i32
    %9 = arith.cmpi eq, %arg2, %c0_i32_8 : i32
    %10 = arith.extui %9 : i1 to i32
    %c0_i32_9 = arith.constant 0 : i32
    %11 = arith.cmpi ne, %10, %c0_i32_9 : i32
    scf.if %11 {
      %c0_10 = arith.constant 0 : index
      %c0_11 = arith.constant 0 : index
      %12 = vector.load %arg7[%c0_10, %c0_11] : memref<16x96xf32, #tpu.memory_space<vmem>>, vector<16x96xf32>
      %c0_12 = arith.constant 0 : index
      %c0_13 = arith.constant 0 : index
      %13 = vector.load %arg5[%c0_12, %c0_13] : memref<1x96xf32, #tpu.memory_space<vmem>>, vector<1x96xf32>
      %14 = vector.broadcast %13 : vector<1x96xf32> to vector<16x96xf32>
      %15 = arith.addf %12, %14 : vector<16x96xf32>
      %16 = arith.truncf %15 : vector<16x96xf32> to vector<16x96xbf16>
      %c0_14 = arith.constant 0 : index
      %c0_15 = arith.constant 0 : index
      %17 = vector.load %arg6[%c0_14, %c0_15] : memref<16x96xbf16, #tpu.memory_space<vmem>>, vector<16x96xbf16>
      tpu.vector_store %arg6[%c0_14, %c0_15], %16 {strides = array<i32>} : memref<16x96xbf16, #tpu.memory_space<vmem>>, vector<16x96xbf16>,
    } else {
    }
    return
  }
  func.func @transform_0(%arg0: i32, %arg1: i32, %arg2: i32) -> (i32, i32) {
    %c0_i32 = arith.constant 0 : i32
    return %arg0, %arg2 : i32, i32
  }
  func.func @transform_1(%arg0: i32, %arg1: i32, %arg2: i32) -> (i32, i32) {
    %c0_i32 = arith.constant 0 : i32
    return %arg2, %arg1 : i32, i32
  }
  func.func @transform_2(%arg0: i32, %arg1: i32, %arg2: i32) -> (i32, i32) {
    %c0_i32 = arith.constant 0 : i32
    %c0_i32_0 = arith.constant 0 : i32
    return %c0_i32, %arg1 : i32, i32
  }
  func.func @transform_3(%arg0: i32, %arg1: i32, %arg2: i32) -> (i32, i32) {
    %c0_i32 = arith.constant 0 : i32
    return %arg0, %arg1 : i32, i32
  }
}

module attributes {stable_mosaic.version = 11 : i64} {
  func.func @_causal_linear_attn_kernel(%arg0: i32, %arg1: i32, %arg2: memref<1x8x32xbf16, #tpu.memory_space<vmem>>, %arg3: memref<1x8x32xbf16, #tpu.memory_space<vmem>>, %arg4: memref<1x8x32xbf16, #tpu.memory_space<vmem>>, %arg5: memref<1x8x32xbf16, #tpu.memory_space<vmem>>, %arg6: memref<4x8x8xf32, #tpu.memory_space<vmem>>, %arg7: memref<4x1x8xf32, #tpu.memory_space<vmem>>) attributes {dimension_semantics = [#tpu.dimension_semantics<parallel>, #tpu.dimension_semantics<arbitrary>], iteration_bounds = array<i64: 2, 1>, scalar_prefetch = 0 : i64, scratch_operands = 2 : i64, tpu.core_type = #tpu.core_type<tc>, window_params = [{transform_indices = @transform_0, window_bounds = array<i64: 1, 8, 32>}, {transform_indices = @transform_1, window_bounds = array<i64: 1, 8, 32>}, {transform_indices = @transform_2, window_bounds = array<i64: 1, 8, 32>}, {transform_indices = @transform_3, window_bounds = array<i64: 1, 8, 32>}]} {
    %c0_i32 = arith.constant 0 : i32
    %0 = arith.cmpi eq, %arg1, %c0_i32 : i32
    %1 = arith.extui %0 : i1 to i32
    %c0_i32_0 = arith.constant 0 : i32
    %2 = arith.cmpi ne, %1, %c0_i32_0 : i32
    scf.if %2 {
      %cst_128 = arith.constant 0.000000e+00 : f32
      %203 = vector.broadcast %cst_128 : f32 to vector<4x8x8xf32>
      %c0_129 = arith.constant 0 : index
      %c0_130 = arith.constant 0 : index
      %c0_131 = arith.constant 0 : index
      %204 = vector.load %arg6[%c0_129, %c0_130, %c0_131] : memref<4x8x8xf32, #tpu.memory_space<vmem>>, vector<4x8x8xf32>
      tpu.vector_store %arg6[%c0_129, %c0_130, %c0_131], %203 {strides = array<i32>} : memref<4x8x8xf32, #tpu.memory_space<vmem>>, vector<4x8x8xf32>,
      %cst_132 = arith.constant 0.000000e+00 : f32
      %205 = vector.broadcast %cst_132 : f32 to vector<4x1x8xf32>
      %c0_133 = arith.constant 0 : index
      %c0_134 = arith.constant 0 : index
      %c0_135 = arith.constant 0 : index
      %206 = vector.load %arg7[%c0_133, %c0_134, %c0_135] : memref<4x1x8xf32, #tpu.memory_space<vmem>>, vector<4x1x8xf32>
      tpu.vector_store %arg7[%c0_133, %c0_134, %c0_135], %205 {strides = array<i32>} : memref<4x1x8xf32, #tpu.memory_space<vmem>>, vector<4x1x8xf32>,
    } else {
    }
    %c0 = arith.constant 0 : index
    %c0_1 = arith.constant 0 : index
    %c0_2 = arith.constant 0 : index
    %3 = vector.load %arg2[%c0, %c0_1, %c0_2] : memref<1x8x32xbf16, #tpu.memory_space<vmem>>, vector<1x8x32xbf16>
    %4 = vector.shape_cast %3 : vector<1x8x32xbf16> to vector<8x32xbf16>
    %5 = arith.extf %4 : vector<8x32xbf16> to vector<8x32xf32>
    %cst = arith.constant 0.000000e+00 : f32
    %6 = vector.broadcast %cst : f32 to vector<8x32xf32>
    %7 = arith.cmpf ogt, %5, %6 : vector<8x32xf32>
    %cst_3 = arith.constant 1.000000e+00 : f32
    %8 = vector.broadcast %cst_3 : f32 to vector<8x32xf32>
    %9 = arith.addf %5, %8 : vector<8x32xf32>
    %cst_4 = arith.constant 0.000000e+00 : f32
    %10 = vector.broadcast %cst_4 : f32 to vector<8x32xf32>
    %11 = arith.minimumf %5, %10 : vector<8x32xf32>
    %12 = math.exp %11 : vector<8x32xf32>
    %13 = arith.select %7, %9, %12 : vector<8x32xi1>, vector<8x32xf32>
    %c0_5 = arith.constant 0 : index
    %c0_6 = arith.constant 0 : index
    %c0_7 = arith.constant 0 : index
    %14 = vector.load %arg3[%c0_5, %c0_6, %c0_7] : memref<1x8x32xbf16, #tpu.memory_space<vmem>>, vector<1x8x32xbf16>
    %15 = vector.shape_cast %14 : vector<1x8x32xbf16> to vector<8x32xbf16>
    %16 = arith.extf %15 : vector<8x32xbf16> to vector<8x32xf32>
    %cst_8 = arith.constant 0.000000e+00 : f32
    %17 = vector.broadcast %cst_8 : f32 to vector<8x32xf32>
    %18 = arith.cmpf ogt, %16, %17 : vector<8x32xf32>
    %cst_9 = arith.constant 1.000000e+00 : f32
    %19 = vector.broadcast %cst_9 : f32 to vector<8x32xf32>
    %20 = arith.addf %16, %19 : vector<8x32xf32>
    %cst_10 = arith.constant 0.000000e+00 : f32
    %21 = vector.broadcast %cst_10 : f32 to vector<8x32xf32>
    %22 = arith.minimumf %16, %21 : vector<8x32xf32>
    %23 = math.exp %22 : vector<8x32xf32>
    %24 = arith.select %18, %20, %23 : vector<8x32xi1>, vector<8x32xf32>
    %c0_11 = arith.constant 0 : index
    %c0_12 = arith.constant 0 : index
    %c0_13 = arith.constant 0 : index
    %25 = vector.load %arg4[%c0_11, %c0_12, %c0_13] : memref<1x8x32xbf16, #tpu.memory_space<vmem>>, vector<1x8x32xbf16>
    %26 = vector.shape_cast %25 : vector<1x8x32xbf16> to vector<8x32xbf16>
    %27 = arith.extf %26 : vector<8x32xbf16> to vector<8x32xf32>
    %28 = tpu.iota {dimensions = array<i32: 0>} : vector<8x8xi32>
    %29 = tpu.iota {dimensions = array<i32: 1>} : vector<8x8xi32>
    %30 = arith.cmpi sle, %29, %28 : vector<8x8xi32>
    %31 = vector.extract_strided_slice %13 {offsets = [0, 0], sizes = [8, 8], strides = [1, 1]} : vector<8x32xf32> to vector<8x8xf32>
    %32 = vector.extract_strided_slice %24 {offsets = [0, 0], sizes = [8, 8], strides = [1, 1]} : vector<8x32xf32> to vector<8x8xf32>
    %33 = vector.extract_strided_slice %27 {offsets = [0, 0], sizes = [8, 8], strides = [1, 1]} : vector<8x32xf32> to vector<8x8xf32>
    %c0_14 = arith.constant 0 : index
    %c0_15 = arith.constant 0 : index
    %c0_16 = arith.constant 0 : index
    %34 = vector.load %arg6[%c0_14, %c0_15, %c0_16] : memref<4x8x8xf32, #tpu.memory_space<vmem>>, vector<1x8x8xf32>
    %35 = vector.shape_cast %34 : vector<1x8x8xf32> to vector<8x8xf32>
    %cst_17 = arith.constant dense<0.000000e+00> : vector<8x8xf32>
    %36 = tpu.matmul %31, %35, %cst_17 {dimension_numbers = #tpu.dot_dimension_numbers<[1], [0], [0], [1], [0, 0, 1, 1], [], []>} : vector<8x8xf32>, vector<8x8xf32>, vector<8x8xf32> -> vector<8x8xf32>
    %c0_18 = arith.constant 0 : index
    %c0_19 = arith.constant 0 : index
    %c0_20 = arith.constant 0 : index
    %37 = vector.load %arg7[%c0_18, %c0_19, %c0_20] : memref<4x1x8xf32, #tpu.memory_space<vmem>>, vector<1x1x8xf32>
    %38 = vector.shape_cast %37 : vector<1x1x8xf32> to vector<1x8xf32>
    %39 = vector.broadcast %38 : vector<1x8xf32> to vector<8x8xf32>
    %40 = arith.mulf %31, %39 : vector<8x8xf32>
    %cst_21 = arith.constant dense<0.000000e+00> : vector<8xf32>
    %41 = vector.multi_reduction <add>, %40, %cst_21 [1] : vector<8x8xf32> to vector<8xf32>
    %42 = vector.shape_cast %41 : vector<8xf32> to vector<8x1xf32>
    %cst_22 = arith.constant dense<0.000000e+00> : vector<8x8xf32>
    %43 = tpu.matmul %31, %32, %cst_22 {dimension_numbers = #tpu.dot_dimension_numbers<[1], [1], [0], [0], [0, 0, 1, 0], [], []>} : vector<8x8xf32>, vector<8x8xf32>, vector<8x8xf32> -> vector<8x8xf32>
    %cst_23 = arith.constant 0.000000e+00 : f32
    %44 = vector.broadcast %cst_23 : f32 to vector<8x8xf32>
    %45 = arith.select %30, %43, %44 : vector<8x8xi1>, vector<8x8xf32>
    %cst_24 = arith.constant dense<0.000000e+00> : vector<8x8xf32>
    %46 = tpu.matmul %45, %33, %cst_24 {dimension_numbers = #tpu.dot_dimension_numbers<[1], [0], [0], [1], [0, 0, 1, 1], [], []>} : vector<8x8xf32>, vector<8x8xf32>, vector<8x8xf32> -> vector<8x8xf32>
    %47 = arith.addf %36, %46 : vector<8x8xf32>
    %cst_25 = arith.constant dense<0.000000e+00> : vector<8xf32>
    %48 = vector.multi_reduction <add>, %45, %cst_25 [1] : vector<8x8xf32> to vector<8xf32>
    %49 = vector.shape_cast %48 : vector<8xf32> to vector<8x1xf32>
    %50 = arith.addf %42, %49 : vector<8x1xf32>
    %cst_26 = arith.constant 9.99999997E-7 : f32
    %51 = vector.broadcast %cst_26 : f32 to vector<8x1xf32>
    %52 = arith.addf %50, %51 : vector<8x1xf32>
    %53 = vector.broadcast %52 : vector<8x1xf32> to vector<8x8xf32>
    %54 = arith.divf %47, %53 : vector<8x8xf32>
    %55 = arith.truncf %54 : vector<8x8xf32> to vector<8x8xbf16>
    %c0_27 = arith.constant 0 : index
    %c0_28 = arith.constant 0 : index
    %c0_29 = arith.constant 0 : index
    %56 = vector.load %arg5[%c0_27, %c0_28, %c0_29] : memref<1x8x32xbf16, #tpu.memory_space<vmem>>, vector<1x8x8xbf16>
    %57 = vector.shape_cast %56 : vector<1x8x8xbf16> to vector<8x8xbf16>
    %58 = vector.shape_cast %55 : vector<8x8xbf16> to vector<1x8x8xbf16>
    tpu.vector_store %arg5[%c0_27, %c0_28, %c0_29], %58 {strides = array<i32>} : memref<1x8x32xbf16, #tpu.memory_space<vmem>>, vector<1x8x8xbf16>,
    %c0_30 = arith.constant 0 : index
    %c0_31 = arith.constant 0 : index
    %c0_32 = arith.constant 0 : index
    %59 = vector.load %arg6[%c0_30, %c0_31, %c0_32] : memref<4x8x8xf32, #tpu.memory_space<vmem>>, vector<1x8x8xf32>
    %60 = vector.shape_cast %59 : vector<1x8x8xf32> to vector<8x8xf32>
    %cst_33 = arith.constant dense<0.000000e+00> : vector<8x8xf32>
    %61 = tpu.matmul %32, %33, %cst_33 {dimension_numbers = #tpu.dot_dimension_numbers<[0], [0], [1], [1], [0, 1, 1, 1], [], []>} : vector<8x8xf32>, vector<8x8xf32>, vector<8x8xf32> -> vector<8x8xf32>
    %62 = arith.addf %60, %61 : vector<8x8xf32>
    %c0_34 = arith.constant 0 : index
    %c0_35 = arith.constant 0 : index
    %c0_36 = arith.constant 0 : index
    %63 = vector.load %arg6[%c0_34, %c0_35, %c0_36] : memref<4x8x8xf32, #tpu.memory_space<vmem>>, vector<1x8x8xf32>
    %64 = vector.shape_cast %63 : vector<1x8x8xf32> to vector<8x8xf32>
    %65 = vector.shape_cast %62 : vector<8x8xf32> to vector<1x8x8xf32>
    tpu.vector_store %arg6[%c0_34, %c0_35, %c0_36], %65 {strides = array<i32>} : memref<4x8x8xf32, #tpu.memory_space<vmem>>, vector<1x8x8xf32>,
    %c0_37 = arith.constant 0 : index
    %c0_38 = arith.constant 0 : index
    %c0_39 = arith.constant 0 : index
    %66 = vector.load %arg7[%c0_37, %c0_38, %c0_39] : memref<4x1x8xf32, #tpu.memory_space<vmem>>, vector<1x1x8xf32>
    %67 = vector.shape_cast %66 : vector<1x1x8xf32> to vector<1x8xf32>
    %cst_40 = arith.constant dense<0.000000e+00> : vector<8xf32>
    %68 = vector.multi_reduction <add>, %32, %cst_40 [0] : vector<8x8xf32> to vector<8xf32>
    %69 = vector.shape_cast %68 : vector<8xf32> to vector<1x8xf32>
    %70 = arith.addf %67, %69 : vector<1x8xf32>
    %c0_41 = arith.constant 0 : index
    %c0_42 = arith.constant 0 : index
    %c0_43 = arith.constant 0 : index
    %71 = vector.load %arg7[%c0_41, %c0_42, %c0_43] : memref<4x1x8xf32, #tpu.memory_space<vmem>>, vector<1x1x8xf32>
    %72 = vector.shape_cast %71 : vector<1x1x8xf32> to vector<1x8xf32>
    %73 = vector.shape_cast %70 : vector<1x8xf32> to vector<1x1x8xf32>
    tpu.vector_store %arg7[%c0_41, %c0_42, %c0_43], %73 {strides = array<i32>} : memref<4x1x8xf32, #tpu.memory_space<vmem>>, vector<1x1x8xf32>,
    %74 = vector.extract_strided_slice %13 {offsets = [0, 8], sizes = [8, 8], strides = [1, 1]} : vector<8x32xf32> to vector<8x8xf32>
    %75 = vector.extract_strided_slice %24 {offsets = [0, 8], sizes = [8, 8], strides = [1, 1]} : vector<8x32xf32> to vector<8x8xf32>
    %76 = vector.extract_strided_slice %27 {offsets = [0, 8], sizes = [8, 8], strides = [1, 1]} : vector<8x32xf32> to vector<8x8xf32>
    %c1 = arith.constant 1 : index
    %c0_44 = arith.constant 0 : index
    %c0_45 = arith.constant 0 : index
    %77 = vector.load %arg6[%c1, %c0_44, %c0_45] : memref<4x8x8xf32, #tpu.memory_space<vmem>>, vector<1x8x8xf32>
    %78 = vector.shape_cast %77 : vector<1x8x8xf32> to vector<8x8xf32>
    %cst_46 = arith.constant dense<0.000000e+00> : vector<8x8xf32>
    %79 = tpu.matmul %74, %78, %cst_46 {dimension_numbers = #tpu.dot_dimension_numbers<[1], [0], [0], [1], [0, 0, 1, 1], [], []>} : vector<8x8xf32>, vector<8x8xf32>, vector<8x8xf32> -> vector<8x8xf32>
    %c1_47 = arith.constant 1 : index
    %c0_48 = arith.constant 0 : index
    %c0_49 = arith.constant 0 : index
    %80 = vector.load %arg7[%c1_47, %c0_48, %c0_49] : memref<4x1x8xf32, #tpu.memory_space<vmem>>, vector<1x1x8xf32>
    %81 = vector.shape_cast %80 : vector<1x1x8xf32> to vector<1x8xf32>
    %82 = vector.broadcast %81 : vector<1x8xf32> to vector<8x8xf32>
    %83 = arith.mulf %74, %82 : vector<8x8xf32>
    %cst_50 = arith.constant dense<0.000000e+00> : vector<8xf32>
    %84 = vector.multi_reduction <add>, %83, %cst_50 [1] : vector<8x8xf32> to vector<8xf32>
    %85 = vector.shape_cast %84 : vector<8xf32> to vector<8x1xf32>
    %cst_51 = arith.constant dense<0.000000e+00> : vector<8x8xf32>
    %86 = tpu.matmul %74, %75, %cst_51 {dimension_numbers = #tpu.dot_dimension_numbers<[1], [1], [0], [0], [0, 0, 1, 0], [], []>} : vector<8x8xf32>, vector<8x8xf32>, vector<8x8xf32> -> vector<8x8xf32>
    %cst_52 = arith.constant 0.000000e+00 : f32
    %87 = vector.broadcast %cst_52 : f32 to vector<8x8xf32>
    %88 = arith.select %30, %86, %87 : vector<8x8xi1>, vector<8x8xf32>
    %cst_53 = arith.constant dense<0.000000e+00> : vector<8x8xf32>
    %89 = tpu.matmul %88, %76, %cst_53 {dimension_numbers = #tpu.dot_dimension_numbers<[1], [0], [0], [1], [0, 0, 1, 1], [], []>} : vector<8x8xf32>, vector<8x8xf32>, vector<8x8xf32> -> vector<8x8xf32>
    %90 = arith.addf %79, %89 : vector<8x8xf32>
    %cst_54 = arith.constant dense<0.000000e+00> : vector<8xf32>
    %91 = vector.multi_reduction <add>, %88, %cst_54 [1] : vector<8x8xf32> to vector<8xf32>
    %92 = vector.shape_cast %91 : vector<8xf32> to vector<8x1xf32>
    %93 = arith.addf %85, %92 : vector<8x1xf32>
    %cst_55 = arith.constant 9.99999997E-7 : f32
    %94 = vector.broadcast %cst_55 : f32 to vector<8x1xf32>
    %95 = arith.addf %93, %94 : vector<8x1xf32>
    %96 = vector.broadcast %95 : vector<8x1xf32> to vector<8x8xf32>
    %97 = arith.divf %90, %96 : vector<8x8xf32>
    %98 = arith.truncf %97 : vector<8x8xf32> to vector<8x8xbf16>
    %c0_56 = arith.constant 0 : index
    %c0_57 = arith.constant 0 : index
    %c8 = arith.constant 8 : index
    %99 = vector.load %arg5[%c0_56, %c0_57, %c8] : memref<1x8x32xbf16, #tpu.memory_space<vmem>>, vector<1x8x8xbf16>
    %100 = vector.shape_cast %99 : vector<1x8x8xbf16> to vector<8x8xbf16>
    %101 = vector.shape_cast %98 : vector<8x8xbf16> to vector<1x8x8xbf16>
    tpu.vector_store %arg5[%c0_56, %c0_57, %c8], %101 {strides = array<i32>} : memref<1x8x32xbf16, #tpu.memory_space<vmem>>, vector<1x8x8xbf16>,
    %c1_58 = arith.constant 1 : index
    %c0_59 = arith.constant 0 : index
    %c0_60 = arith.constant 0 : index
    %102 = vector.load %arg6[%c1_58, %c0_59, %c0_60] : memref<4x8x8xf32, #tpu.memory_space<vmem>>, vector<1x8x8xf32>
    %103 = vector.shape_cast %102 : vector<1x8x8xf32> to vector<8x8xf32>
    %cst_61 = arith.constant dense<0.000000e+00> : vector<8x8xf32>
    %104 = tpu.matmul %75, %76, %cst_61 {dimension_numbers = #tpu.dot_dimension_numbers<[0], [0], [1], [1], [0, 1, 1, 1], [], []>} : vector<8x8xf32>, vector<8x8xf32>, vector<8x8xf32> -> vector<8x8xf32>
    %105 = arith.addf %103, %104 : vector<8x8xf32>
    %c1_62 = arith.constant 1 : index
    %c0_63 = arith.constant 0 : index
    %c0_64 = arith.constant 0 : index
    %106 = vector.load %arg6[%c1_62, %c0_63, %c0_64] : memref<4x8x8xf32, #tpu.memory_space<vmem>>, vector<1x8x8xf32>
    %107 = vector.shape_cast %106 : vector<1x8x8xf32> to vector<8x8xf32>
    %108 = vector.shape_cast %105 : vector<8x8xf32> to vector<1x8x8xf32>
    tpu.vector_store %arg6[%c1_62, %c0_63, %c0_64], %108 {strides = array<i32>} : memref<4x8x8xf32, #tpu.memory_space<vmem>>, vector<1x8x8xf32>,
    %c1_65 = arith.constant 1 : index
    %c0_66 = arith.constant 0 : index
    %c0_67 = arith.constant 0 : index
    %109 = vector.load %arg7[%c1_65, %c0_66, %c0_67] : memref<4x1x8xf32, #tpu.memory_space<vmem>>, vector<1x1x8xf32>
    %110 = vector.shape_cast %109 : vector<1x1x8xf32> to vector<1x8xf32>
    %cst_68 = arith.constant dense<0.000000e+00> : vector<8xf32>
    %111 = vector.multi_reduction <add>, %75, %cst_68 [0] : vector<8x8xf32> to vector<8xf32>
    %112 = vector.shape_cast %111 : vector<8xf32> to vector<1x8xf32>
    %113 = arith.addf %110, %112 : vector<1x8xf32>
    %c1_69 = arith.constant 1 : index
    %c0_70 = arith.constant 0 : index
    %c0_71 = arith.constant 0 : index
    %114 = vector.load %arg7[%c1_69, %c0_70, %c0_71] : memref<4x1x8xf32, #tpu.memory_space<vmem>>, vector<1x1x8xf32>
    %115 = vector.shape_cast %114 : vector<1x1x8xf32> to vector<1x8xf32>
    %116 = vector.shape_cast %113 : vector<1x8xf32> to vector<1x1x8xf32>
    tpu.vector_store %arg7[%c1_69, %c0_70, %c0_71], %116 {strides = array<i32>} : memref<4x1x8xf32, #tpu.memory_space<vmem>>, vector<1x1x8xf32>,
    %117 = vector.extract_strided_slice %13 {offsets = [0, 16], sizes = [8, 8], strides = [1, 1]} : vector<8x32xf32> to vector<8x8xf32>
    %118 = vector.extract_strided_slice %24 {offsets = [0, 16], sizes = [8, 8], strides = [1, 1]} : vector<8x32xf32> to vector<8x8xf32>
    %119 = vector.extract_strided_slice %27 {offsets = [0, 16], sizes = [8, 8], strides = [1, 1]} : vector<8x32xf32> to vector<8x8xf32>
    %c2 = arith.constant 2 : index
    %c0_72 = arith.constant 0 : index
    %c0_73 = arith.constant 0 : index
    %120 = vector.load %arg6[%c2, %c0_72, %c0_73] : memref<4x8x8xf32, #tpu.memory_space<vmem>>, vector<1x8x8xf32>
    %121 = vector.shape_cast %120 : vector<1x8x8xf32> to vector<8x8xf32>
    %cst_74 = arith.constant dense<0.000000e+00> : vector<8x8xf32>
    %122 = tpu.matmul %117, %121, %cst_74 {dimension_numbers = #tpu.dot_dimension_numbers<[1], [0], [0], [1], [0, 0, 1, 1], [], []>} : vector<8x8xf32>, vector<8x8xf32>, vector<8x8xf32> -> vector<8x8xf32>
    %c2_75 = arith.constant 2 : index
    %c0_76 = arith.constant 0 : index
    %c0_77 = arith.constant 0 : index
    %123 = vector.load %arg7[%c2_75, %c0_76, %c0_77] : memref<4x1x8xf32, #tpu.memory_space<vmem>>, vector<1x1x8xf32>
    %124 = vector.shape_cast %123 : vector<1x1x8xf32> to vector<1x8xf32>
    %125 = vector.broadcast %124 : vector<1x8xf32> to vector<8x8xf32>
    %126 = arith.mulf %117, %125 : vector<8x8xf32>
    %cst_78 = arith.constant dense<0.000000e+00> : vector<8xf32>
    %127 = vector.multi_reduction <add>, %126, %cst_78 [1] : vector<8x8xf32> to vector<8xf32>
    %128 = vector.shape_cast %127 : vector<8xf32> to vector<8x1xf32>
    %cst_79 = arith.constant dense<0.000000e+00> : vector<8x8xf32>
    %129 = tpu.matmul %117, %118, %cst_79 {dimension_numbers = #tpu.dot_dimension_numbers<[1], [1], [0], [0], [0, 0, 1, 0], [], []>} : vector<8x8xf32>, vector<8x8xf32>, vector<8x8xf32> -> vector<8x8xf32>
    %cst_80 = arith.constant 0.000000e+00 : f32
    %130 = vector.broadcast %cst_80 : f32 to vector<8x8xf32>
    %131 = arith.select %30, %129, %130 : vector<8x8xi1>, vector<8x8xf32>
    %cst_81 = arith.constant dense<0.000000e+00> : vector<8x8xf32>
    %132 = tpu.matmul %131, %119, %cst_81 {dimension_numbers = #tpu.dot_dimension_numbers<[1], [0], [0], [1], [0, 0, 1, 1], [], []>} : vector<8x8xf32>, vector<8x8xf32>, vector<8x8xf32> -> vector<8x8xf32>
    %133 = arith.addf %122, %132 : vector<8x8xf32>
    %cst_82 = arith.constant dense<0.000000e+00> : vector<8xf32>
    %134 = vector.multi_reduction <add>, %131, %cst_82 [1] : vector<8x8xf32> to vector<8xf32>
    %135 = vector.shape_cast %134 : vector<8xf32> to vector<8x1xf32>
    %136 = arith.addf %128, %135 : vector<8x1xf32>
    %cst_83 = arith.constant 9.99999997E-7 : f32
    %137 = vector.broadcast %cst_83 : f32 to vector<8x1xf32>
    %138 = arith.addf %136, %137 : vector<8x1xf32>
    %139 = vector.broadcast %138 : vector<8x1xf32> to vector<8x8xf32>
    %140 = arith.divf %133, %139 : vector<8x8xf32>
    %141 = arith.truncf %140 : vector<8x8xf32> to vector<8x8xbf16>
    %c0_84 = arith.constant 0 : index
    %c0_85 = arith.constant 0 : index
    %c16 = arith.constant 16 : index
    %142 = vector.load %arg5[%c0_84, %c0_85, %c16] : memref<1x8x32xbf16, #tpu.memory_space<vmem>>, vector<1x8x8xbf16>
    %143 = vector.shape_cast %142 : vector<1x8x8xbf16> to vector<8x8xbf16>
    %144 = vector.shape_cast %141 : vector<8x8xbf16> to vector<1x8x8xbf16>
    tpu.vector_store %arg5[%c0_84, %c0_85, %c16], %144 {strides = array<i32>} : memref<1x8x32xbf16, #tpu.memory_space<vmem>>, vector<1x8x8xbf16>,
    %c2_86 = arith.constant 2 : index
    %c0_87 = arith.constant 0 : index
    %c0_88 = arith.constant 0 : index
    %145 = vector.load %arg6[%c2_86, %c0_87, %c0_88] : memref<4x8x8xf32, #tpu.memory_space<vmem>>, vector<1x8x8xf32>
    %146 = vector.shape_cast %145 : vector<1x8x8xf32> to vector<8x8xf32>
    %cst_89 = arith.constant dense<0.000000e+00> : vector<8x8xf32>
    %147 = tpu.matmul %118, %119, %cst_89 {dimension_numbers = #tpu.dot_dimension_numbers<[0], [0], [1], [1], [0, 1, 1, 1], [], []>} : vector<8x8xf32>, vector<8x8xf32>, vector<8x8xf32> -> vector<8x8xf32>
    %148 = arith.addf %146, %147 : vector<8x8xf32>
    %c2_90 = arith.constant 2 : index
    %c0_91 = arith.constant 0 : index
    %c0_92 = arith.constant 0 : index
    %149 = vector.load %arg6[%c2_90, %c0_91, %c0_92] : memref<4x8x8xf32, #tpu.memory_space<vmem>>, vector<1x8x8xf32>
    %150 = vector.shape_cast %149 : vector<1x8x8xf32> to vector<8x8xf32>
    %151 = vector.shape_cast %148 : vector<8x8xf32> to vector<1x8x8xf32>
    tpu.vector_store %arg6[%c2_90, %c0_91, %c0_92], %151 {strides = array<i32>} : memref<4x8x8xf32, #tpu.memory_space<vmem>>, vector<1x8x8xf32>,
    %c2_93 = arith.constant 2 : index
    %c0_94 = arith.constant 0 : index
    %c0_95 = arith.constant 0 : index
    %152 = vector.load %arg7[%c2_93, %c0_94, %c0_95] : memref<4x1x8xf32, #tpu.memory_space<vmem>>, vector<1x1x8xf32>
    %153 = vector.shape_cast %152 : vector<1x1x8xf32> to vector<1x8xf32>
    %cst_96 = arith.constant dense<0.000000e+00> : vector<8xf32>
    %154 = vector.multi_reduction <add>, %118, %cst_96 [0] : vector<8x8xf32> to vector<8xf32>
    %155 = vector.shape_cast %154 : vector<8xf32> to vector<1x8xf32>
    %156 = arith.addf %153, %155 : vector<1x8xf32>
    %c2_97 = arith.constant 2 : index
    %c0_98 = arith.constant 0 : index
    %c0_99 = arith.constant 0 : index
    %157 = vector.load %arg7[%c2_97, %c0_98, %c0_99] : memref<4x1x8xf32, #tpu.memory_space<vmem>>, vector<1x1x8xf32>
    %158 = vector.shape_cast %157 : vector<1x1x8xf32> to vector<1x8xf32>
    %159 = vector.shape_cast %156 : vector<1x8xf32> to vector<1x1x8xf32>
    tpu.vector_store %arg7[%c2_97, %c0_98, %c0_99], %159 {strides = array<i32>} : memref<4x1x8xf32, #tpu.memory_space<vmem>>, vector<1x1x8xf32>,
    %160 = vector.extract_strided_slice %13 {offsets = [0, 24], sizes = [8, 8], strides = [1, 1]} : vector<8x32xf32> to vector<8x8xf32>
    %161 = vector.extract_strided_slice %24 {offsets = [0, 24], sizes = [8, 8], strides = [1, 1]} : vector<8x32xf32> to vector<8x8xf32>
    %162 = vector.extract_strided_slice %27 {offsets = [0, 24], sizes = [8, 8], strides = [1, 1]} : vector<8x32xf32> to vector<8x8xf32>
    %c3 = arith.constant 3 : index
    %c0_100 = arith.constant 0 : index
    %c0_101 = arith.constant 0 : index
    %163 = vector.load %arg6[%c3, %c0_100, %c0_101] : memref<4x8x8xf32, #tpu.memory_space<vmem>>, vector<1x8x8xf32>
    %164 = vector.shape_cast %163 : vector<1x8x8xf32> to vector<8x8xf32>
    %cst_102 = arith.constant dense<0.000000e+00> : vector<8x8xf32>
    %165 = tpu.matmul %160, %164, %cst_102 {dimension_numbers = #tpu.dot_dimension_numbers<[1], [0], [0], [1], [0, 0, 1, 1], [], []>} : vector<8x8xf32>, vector<8x8xf32>, vector<8x8xf32> -> vector<8x8xf32>
    %c3_103 = arith.constant 3 : index
    %c0_104 = arith.constant 0 : index
    %c0_105 = arith.constant 0 : index
    %166 = vector.load %arg7[%c3_103, %c0_104, %c0_105] : memref<4x1x8xf32, #tpu.memory_space<vmem>>, vector<1x1x8xf32>
    %167 = vector.shape_cast %166 : vector<1x1x8xf32> to vector<1x8xf32>
    %168 = vector.broadcast %167 : vector<1x8xf32> to vector<8x8xf32>
    %169 = arith.mulf %160, %168 : vector<8x8xf32>
    %cst_106 = arith.constant dense<0.000000e+00> : vector<8xf32>
    %170 = vector.multi_reduction <add>, %169, %cst_106 [1] : vector<8x8xf32> to vector<8xf32>
    %171 = vector.shape_cast %170 : vector<8xf32> to vector<8x1xf32>
    %cst_107 = arith.constant dense<0.000000e+00> : vector<8x8xf32>
    %172 = tpu.matmul %160, %161, %cst_107 {dimension_numbers = #tpu.dot_dimension_numbers<[1], [1], [0], [0], [0, 0, 1, 0], [], []>} : vector<8x8xf32>, vector<8x8xf32>, vector<8x8xf32> -> vector<8x8xf32>
    %cst_108 = arith.constant 0.000000e+00 : f32
    %173 = vector.broadcast %cst_108 : f32 to vector<8x8xf32>
    %174 = arith.select %30, %172, %173 : vector<8x8xi1>, vector<8x8xf32>
    %cst_109 = arith.constant dense<0.000000e+00> : vector<8x8xf32>
    %175 = tpu.matmul %174, %162, %cst_109 {dimension_numbers = #tpu.dot_dimension_numbers<[1], [0], [0], [1], [0, 0, 1, 1], [], []>} : vector<8x8xf32>, vector<8x8xf32>, vector<8x8xf32> -> vector<8x8xf32>
    %176 = arith.addf %165, %175 : vector<8x8xf32>
    %cst_110 = arith.constant dense<0.000000e+00> : vector<8xf32>
    %177 = vector.multi_reduction <add>, %174, %cst_110 [1] : vector<8x8xf32> to vector<8xf32>
    %178 = vector.shape_cast %177 : vector<8xf32> to vector<8x1xf32>
    %179 = arith.addf %171, %178 : vector<8x1xf32>
    %cst_111 = arith.constant 9.99999997E-7 : f32
    %180 = vector.broadcast %cst_111 : f32 to vector<8x1xf32>
    %181 = arith.addf %179, %180 : vector<8x1xf32>
    %182 = vector.broadcast %181 : vector<8x1xf32> to vector<8x8xf32>
    %183 = arith.divf %176, %182 : vector<8x8xf32>
    %184 = arith.truncf %183 : vector<8x8xf32> to vector<8x8xbf16>
    %c0_112 = arith.constant 0 : index
    %c0_113 = arith.constant 0 : index
    %c24 = arith.constant 24 : index
    %185 = vector.load %arg5[%c0_112, %c0_113, %c24] : memref<1x8x32xbf16, #tpu.memory_space<vmem>>, vector<1x8x8xbf16>
    %186 = vector.shape_cast %185 : vector<1x8x8xbf16> to vector<8x8xbf16>
    %187 = vector.shape_cast %184 : vector<8x8xbf16> to vector<1x8x8xbf16>
    tpu.vector_store %arg5[%c0_112, %c0_113, %c24], %187 {strides = array<i32>} : memref<1x8x32xbf16, #tpu.memory_space<vmem>>, vector<1x8x8xbf16>,
    %c3_114 = arith.constant 3 : index
    %c0_115 = arith.constant 0 : index
    %c0_116 = arith.constant 0 : index
    %188 = vector.load %arg6[%c3_114, %c0_115, %c0_116] : memref<4x8x8xf32, #tpu.memory_space<vmem>>, vector<1x8x8xf32>
    %189 = vector.shape_cast %188 : vector<1x8x8xf32> to vector<8x8xf32>
    %cst_117 = arith.constant dense<0.000000e+00> : vector<8x8xf32>
    %190 = tpu.matmul %161, %162, %cst_117 {dimension_numbers = #tpu.dot_dimension_numbers<[0], [0], [1], [1], [0, 1, 1, 1], [], []>} : vector<8x8xf32>, vector<8x8xf32>, vector<8x8xf32> -> vector<8x8xf32>
    %191 = arith.addf %189, %190 : vector<8x8xf32>
    %c3_118 = arith.constant 3 : index
    %c0_119 = arith.constant 0 : index
    %c0_120 = arith.constant 0 : index
    %192 = vector.load %arg6[%c3_118, %c0_119, %c0_120] : memref<4x8x8xf32, #tpu.memory_space<vmem>>, vector<1x8x8xf32>
    %193 = vector.shape_cast %192 : vector<1x8x8xf32> to vector<8x8xf32>
    %194 = vector.shape_cast %191 : vector<8x8xf32> to vector<1x8x8xf32>
    tpu.vector_store %arg6[%c3_118, %c0_119, %c0_120], %194 {strides = array<i32>} : memref<4x8x8xf32, #tpu.memory_space<vmem>>, vector<1x8x8xf32>,
    %c3_121 = arith.constant 3 : index
    %c0_122 = arith.constant 0 : index
    %c0_123 = arith.constant 0 : index
    %195 = vector.load %arg7[%c3_121, %c0_122, %c0_123] : memref<4x1x8xf32, #tpu.memory_space<vmem>>, vector<1x1x8xf32>
    %196 = vector.shape_cast %195 : vector<1x1x8xf32> to vector<1x8xf32>
    %cst_124 = arith.constant dense<0.000000e+00> : vector<8xf32>
    %197 = vector.multi_reduction <add>, %161, %cst_124 [0] : vector<8x8xf32> to vector<8xf32>
    %198 = vector.shape_cast %197 : vector<8xf32> to vector<1x8xf32>
    %199 = arith.addf %196, %198 : vector<1x8xf32>
    %c3_125 = arith.constant 3 : index
    %c0_126 = arith.constant 0 : index
    %c0_127 = arith.constant 0 : index
    %200 = vector.load %arg7[%c3_125, %c0_126, %c0_127] : memref<4x1x8xf32, #tpu.memory_space<vmem>>, vector<1x1x8xf32>
    %201 = vector.shape_cast %200 : vector<1x1x8xf32> to vector<1x8xf32>
    %202 = vector.shape_cast %199 : vector<1x8xf32> to vector<1x1x8xf32>
    tpu.vector_store %arg7[%c3_125, %c0_126, %c0_127], %202 {strides = array<i32>} : memref<4x1x8xf32, #tpu.memory_space<vmem>>, vector<1x1x8xf32>,
    return
  }
  func.func @transform_0(%arg0: i32, %arg1: i32) -> (i32, i32, i32) {
    %c0_i32 = arith.constant 0 : i32
    %c0_i32_0 = arith.constant 0 : i32
    return %arg0, %arg1, %c0_i32 : i32, i32, i32
  }
  func.func @transform_1(%arg0: i32, %arg1: i32) -> (i32, i32, i32) {
    %c0_i32 = arith.constant 0 : i32
    %c0_i32_0 = arith.constant 0 : i32
    return %arg0, %arg1, %c0_i32 : i32, i32, i32
  }
  func.func @transform_2(%arg0: i32, %arg1: i32) -> (i32, i32, i32) {
    %c0_i32 = arith.constant 0 : i32
    %c0_i32_0 = arith.constant 0 : i32
    return %arg0, %arg1, %c0_i32 : i32, i32, i32
  }
  func.func @transform_3(%arg0: i32, %arg1: i32) -> (i32, i32, i32) {
    %c0_i32 = arith.constant 0 : i32
    %c0_i32_0 = arith.constant 0 : i32
    return %arg0, %arg1, %c0_i32 : i32, i32, i32
  }
}

module attributes {stable_mosaic.version = 11 : i64} {
  func.func @_add_layernorm_kernel(%arg0: i32, %arg1: memref<16x32xbf16, #tpu.memory_space<vmem>>, %arg2: memref<16x32xbf16, #tpu.memory_space<vmem>>, %arg3: memref<1x32xf32, #tpu.memory_space<vmem>>, %arg4: memref<1x32xf32, #tpu.memory_space<vmem>>, %arg5: memref<16x32xbf16, #tpu.memory_space<vmem>>) attributes {dimension_semantics = [#tpu.dimension_semantics<parallel>], iteration_bounds = array<i64: 1>, scalar_prefetch = 0 : i64, scratch_operands = 0 : i64, tpu.core_type = #tpu.core_type<tc>, window_params = [{transform_indices = @transform_0, window_bounds = array<i64: 16, 32>}, {transform_indices = @transform_1, window_bounds = array<i64: 16, 32>}, {pipeline_mode = #tpu.pipeline_mode<synchronous>, transform_indices = @transform_2, window_bounds = array<i64: 1, 32>}, {pipeline_mode = #tpu.pipeline_mode<synchronous>, transform_indices = @transform_3, window_bounds = array<i64: 1, 32>}, {transform_indices = @transform_4, window_bounds = array<i64: 16, 32>}]} {
    %c0 = arith.constant 0 : index
    %c0_0 = arith.constant 0 : index
    %0 = vector.load %arg1[%c0, %c0_0] : memref<16x32xbf16, #tpu.memory_space<vmem>>, vector<16x32xbf16>
    %1 = arith.extf %0 : vector<16x32xbf16> to vector<16x32xf32>
    %c0_1 = arith.constant 0 : index
    %c0_2 = arith.constant 0 : index
    %2 = vector.load %arg2[%c0_1, %c0_2] : memref<16x32xbf16, #tpu.memory_space<vmem>>, vector<16x32xbf16>
    %3 = arith.extf %2 : vector<16x32xbf16> to vector<16x32xf32>
    %4 = arith.addf %1, %3 : vector<16x32xf32>
    %cst = arith.constant dense<0.000000e+00> : vector<16xf32>
    %5 = vector.multi_reduction <add>, %4, %cst [1] : vector<16x32xf32> to vector<16xf32>
    %6 = vector.shape_cast %5 : vector<16xf32> to vector<16x1xf32>
    %cst_3 = arith.constant 3.200000e+01 : f32
    %7 = vector.broadcast %cst_3 : f32 to vector<16x1xf32>
    %8 = arith.divf %6, %7 : vector<16x1xf32>
    %9 = vector.broadcast %8 : vector<16x1xf32> to vector<16x32xf32>
    %10 = arith.subf %4, %9 : vector<16x32xf32>
    %11 = arith.mulf %10, %10 : vector<16x32xf32>
    %cst_4 = arith.constant dense<0.000000e+00> : vector<16xf32>
    %12 = vector.multi_reduction <add>, %11, %cst_4 [1] : vector<16x32xf32> to vector<16xf32>
    %13 = vector.shape_cast %12 : vector<16xf32> to vector<16x1xf32>
    %cst_5 = arith.constant 3.200000e+01 : f32
    %14 = vector.broadcast %cst_5 : f32 to vector<16x1xf32>
    %15 = arith.divf %13, %14 : vector<16x1xf32>
    %16 = vector.broadcast %8 : vector<16x1xf32> to vector<16x32xf32>
    %17 = arith.subf %4, %16 : vector<16x32xf32>
    %cst_6 = arith.constant 9.99999974E-6 : f32
    %18 = vector.broadcast %cst_6 : f32 to vector<16x1xf32>
    %19 = arith.addf %15, %18 : vector<16x1xf32>
    %20 = math.rsqrt %19 : vector<16x1xf32>
    %21 = vector.broadcast %20 : vector<16x1xf32> to vector<16x32xf32>
    %22 = arith.mulf %17, %21 : vector<16x32xf32>
    %c0_7 = arith.constant 0 : index
    %c0_8 = arith.constant 0 : index
    %23 = vector.load %arg3[%c0_7, %c0_8] : memref<1x32xf32, #tpu.memory_space<vmem>>, vector<1x32xf32>
    %24 = vector.broadcast %23 : vector<1x32xf32> to vector<16x32xf32>
    %25 = arith.mulf %22, %24 : vector<16x32xf32>
    %c0_9 = arith.constant 0 : index
    %c0_10 = arith.constant 0 : index
    %26 = vector.load %arg4[%c0_9, %c0_10] : memref<1x32xf32, #tpu.memory_space<vmem>>, vector<1x32xf32>
    %27 = vector.broadcast %26 : vector<1x32xf32> to vector<16x32xf32>
    %28 = arith.addf %25, %27 : vector<16x32xf32>
    %29 = arith.truncf %28 : vector<16x32xf32> to vector<16x32xbf16>
    %c0_11 = arith.constant 0 : index
    %c0_12 = arith.constant 0 : index
    %30 = vector.load %arg5[%c0_11, %c0_12] : memref<16x32xbf16, #tpu.memory_space<vmem>>, vector<16x32xbf16>
    tpu.vector_store %arg5[%c0_11, %c0_12], %29 {strides = array<i32>} : memref<16x32xbf16, #tpu.memory_space<vmem>>, vector<16x32xbf16>,
    return
  }
  func.func @transform_0(%arg0: i32) -> (i32, i32) {
    %c0_i32 = arith.constant 0 : i32
    %c0_i32_0 = arith.constant 0 : i32
    return %arg0, %c0_i32 : i32, i32
  }
  func.func @transform_1(%arg0: i32) -> (i32, i32) {
    %c0_i32 = arith.constant 0 : i32
    %c0_i32_0 = arith.constant 0 : i32
    return %arg0, %c0_i32 : i32, i32
  }
  func.func @transform_2(%arg0: i32) -> (i32, i32) {
    %c0_i32 = arith.constant 0 : i32
    %c0_i32_0 = arith.constant 0 : i32
    %c0_i32_1 = arith.constant 0 : i32
    return %c0_i32, %c0_i32_0 : i32, i32
  }
  func.func @transform_3(%arg0: i32) -> (i32, i32) {
    %c0_i32 = arith.constant 0 : i32
    %c0_i32_0 = arith.constant 0 : i32
    %c0_i32_1 = arith.constant 0 : i32
    return %c0_i32, %c0_i32_0 : i32, i32
  }
  func.func @transform_4(%arg0: i32) -> (i32, i32) {
    %c0_i32 = arith.constant 0 : i32
    %c0_i32_0 = arith.constant 0 : i32
    return %arg0, %c0_i32 : i32, i32
  }
}

module attributes {stable_mosaic.version = 11 : i64} {
  func.func @_linatt_kv_kernel(%arg0: i32, %arg1: i32, %arg2: memref<1x8x32xbf16, #tpu.memory_space<vmem>>, %arg3: memref<1x8x32xbf16, #tpu.memory_space<vmem>>, %arg4: memref<1x4x8x8xf32, #tpu.memory_space<vmem>>, %arg5: memref<1x1x32xf32, #tpu.memory_space<vmem>>, %arg6: memref<4x8x8xf32, #tpu.memory_space<vmem>>, %arg7: memref<1x32xf32, #tpu.memory_space<vmem>>) attributes {dimension_semantics = [#tpu.dimension_semantics<parallel>, #tpu.dimension_semantics<arbitrary>], iteration_bounds = array<i64: 2, 1>, scalar_prefetch = 0 : i64, scratch_operands = 2 : i64, tpu.core_type = #tpu.core_type<tc>, window_params = [{transform_indices = @transform_0, window_bounds = array<i64: 1, 8, 32>}, {transform_indices = @transform_1, window_bounds = array<i64: 1, 8, 32>}, {transform_indices = @transform_2, window_bounds = array<i64: 1, 4, 8, 8>}, {transform_indices = @transform_3, window_bounds = array<i64: 1, 1, 32>}]} {
    %c0_i32 = arith.constant 0 : i32
    %0 = arith.cmpi eq, %arg1, %c0_i32 : i32
    %1 = arith.extui %0 : i1 to i32
    %c0_i32_0 = arith.constant 0 : i32
    %2 = arith.cmpi ne, %1, %c0_i32_0 : i32
    scf.if %2 {
      %cst_40 = arith.constant 0.000000e+00 : f32
      %61 = vector.broadcast %cst_40 : f32 to vector<4x8x8xf32>
      %c0_41 = arith.constant 0 : index
      %c0_42 = arith.constant 0 : index
      %c0_43 = arith.constant 0 : index
      %62 = vector.load %arg6[%c0_41, %c0_42, %c0_43] : memref<4x8x8xf32, #tpu.memory_space<vmem>>, vector<4x8x8xf32>
      tpu.vector_store %arg6[%c0_41, %c0_42, %c0_43], %61 {strides = array<i32>} : memref<4x8x8xf32, #tpu.memory_space<vmem>>, vector<4x8x8xf32>,
      %cst_44 = arith.constant 0.000000e+00 : f32
      %63 = vector.broadcast %cst_44 : f32 to vector<1x32xf32>
      %c0_45 = arith.constant 0 : index
      %c0_46 = arith.constant 0 : index
      %64 = vector.load %arg7[%c0_45, %c0_46] : memref<1x32xf32, #tpu.memory_space<vmem>>, vector<1x32xf32>
      tpu.vector_store %arg7[%c0_45, %c0_46], %63 {strides = array<i32>} : memref<1x32xf32, #tpu.memory_space<vmem>>, vector<1x32xf32>,
    } else {
    }
    %c0 = arith.constant 0 : index
    %c0_1 = arith.constant 0 : index
    %c0_2 = arith.constant 0 : index
    %3 = vector.load %arg2[%c0, %c0_1, %c0_2] : memref<1x8x32xbf16, #tpu.memory_space<vmem>>, vector<1x8x32xbf16>
    %4 = vector.shape_cast %3 : vector<1x8x32xbf16> to vector<8x32xbf16>
    %5 = arith.extf %4 : vector<8x32xbf16> to vector<8x32xf32>
    %cst = arith.constant 0.000000e+00 : f32
    %6 = vector.broadcast %cst : f32 to vector<8x32xf32>
    %7 = arith.cmpf ogt, %5, %6 : vector<8x32xf32>
    %cst_3 = arith.constant 1.000000e+00 : f32
    %8 = vector.broadcast %cst_3 : f32 to vector<8x32xf32>
    %9 = arith.addf %5, %8 : vector<8x32xf32>
    %cst_4 = arith.constant 0.000000e+00 : f32
    %10 = vector.broadcast %cst_4 : f32 to vector<8x32xf32>
    %11 = arith.minimumf %5, %10 : vector<8x32xf32>
    %12 = math.exp %11 : vector<8x32xf32>
    %13 = arith.select %7, %9, %12 : vector<8x32xi1>, vector<8x32xf32>
    %c0_5 = arith.constant 0 : index
    %c0_6 = arith.constant 0 : index
    %c0_7 = arith.constant 0 : index
    %14 = vector.load %arg3[%c0_5, %c0_6, %c0_7] : memref<1x8x32xbf16, #tpu.memory_space<vmem>>, vector<1x8x32xbf16>
    %15 = vector.shape_cast %14 : vector<1x8x32xbf16> to vector<8x32xbf16>
    %16 = arith.extf %15 : vector<8x32xbf16> to vector<8x32xf32>
    %17 = vector.extract_strided_slice %13 {offsets = [0, 0], sizes = [8, 8], strides = [1, 1]} : vector<8x32xf32> to vector<8x8xf32>
    %18 = vector.extract_strided_slice %16 {offsets = [0, 0], sizes = [8, 8], strides = [1, 1]} : vector<8x32xf32> to vector<8x8xf32>
    %c0_8 = arith.constant 0 : index
    %c0_9 = arith.constant 0 : index
    %c0_10 = arith.constant 0 : index
    %19 = vector.load %arg6[%c0_8, %c0_9, %c0_10] : memref<4x8x8xf32, #tpu.memory_space<vmem>>, vector<1x8x8xf32>
    %20 = vector.shape_cast %19 : vector<1x8x8xf32> to vector<8x8xf32>
    %cst_11 = arith.constant dense<0.000000e+00> : vector<8x8xf32>
    %21 = tpu.matmul %17, %18, %cst_11 {dimension_numbers = #tpu.dot_dimension_numbers<[0], [0], [1], [1], [0, 1, 1, 1], [], []>} : vector<8x8xf32>, vector<8x8xf32>, vector<8x8xf32> -> vector<8x8xf32>
    %22 = arith.addf %20, %21 : vector<8x8xf32>
    %c0_12 = arith.constant 0 : index
    %c0_13 = arith.constant 0 : index
    %c0_14 = arith.constant 0 : index
    %23 = vector.load %arg6[%c0_12, %c0_13, %c0_14] : memref<4x8x8xf32, #tpu.memory_space<vmem>>, vector<1x8x8xf32>
    %24 = vector.shape_cast %23 : vector<1x8x8xf32> to vector<8x8xf32>
    %25 = vector.shape_cast %22 : vector<8x8xf32> to vector<1x8x8xf32>
    tpu.vector_store %arg6[%c0_12, %c0_13, %c0_14], %25 {strides = array<i32>} : memref<4x8x8xf32, #tpu.memory_space<vmem>>, vector<1x8x8xf32>,
    %26 = vector.extract_strided_slice %13 {offsets = [0, 8], sizes = [8, 8], strides = [1, 1]} : vector<8x32xf32> to vector<8x8xf32>
    %27 = vector.extract_strided_slice %16 {offsets = [0, 8], sizes = [8, 8], strides = [1, 1]} : vector<8x32xf32> to vector<8x8xf32>
    %c1 = arith.constant 1 : index
    %c0_15 = arith.constant 0 : index
    %c0_16 = arith.constant 0 : index
    %28 = vector.load %arg6[%c1, %c0_15, %c0_16] : memref<4x8x8xf32, #tpu.memory_space<vmem>>, vector<1x8x8xf32>
    %29 = vector.shape_cast %28 : vector<1x8x8xf32> to vector<8x8xf32>
    %cst_17 = arith.constant dense<0.000000e+00> : vector<8x8xf32>
    %30 = tpu.matmul %26, %27, %cst_17 {dimension_numbers = #tpu.dot_dimension_numbers<[0], [0], [1], [1], [0, 1, 1, 1], [], []>} : vector<8x8xf32>, vector<8x8xf32>, vector<8x8xf32> -> vector<8x8xf32>
    %31 = arith.addf %29, %30 : vector<8x8xf32>
    %c1_18 = arith.constant 1 : index
    %c0_19 = arith.constant 0 : index
    %c0_20 = arith.constant 0 : index
    %32 = vector.load %arg6[%c1_18, %c0_19, %c0_20] : memref<4x8x8xf32, #tpu.memory_space<vmem>>, vector<1x8x8xf32>
    %33 = vector.shape_cast %32 : vector<1x8x8xf32> to vector<8x8xf32>
    %34 = vector.shape_cast %31 : vector<8x8xf32> to vector<1x8x8xf32>
    tpu.vector_store %arg6[%c1_18, %c0_19, %c0_20], %34 {strides = array<i32>} : memref<4x8x8xf32, #tpu.memory_space<vmem>>, vector<1x8x8xf32>,
    %35 = vector.extract_strided_slice %13 {offsets = [0, 16], sizes = [8, 8], strides = [1, 1]} : vector<8x32xf32> to vector<8x8xf32>
    %36 = vector.extract_strided_slice %16 {offsets = [0, 16], sizes = [8, 8], strides = [1, 1]} : vector<8x32xf32> to vector<8x8xf32>
    %c2 = arith.constant 2 : index
    %c0_21 = arith.constant 0 : index
    %c0_22 = arith.constant 0 : index
    %37 = vector.load %arg6[%c2, %c0_21, %c0_22] : memref<4x8x8xf32, #tpu.memory_space<vmem>>, vector<1x8x8xf32>
    %38 = vector.shape_cast %37 : vector<1x8x8xf32> to vector<8x8xf32>
    %cst_23 = arith.constant dense<0.000000e+00> : vector<8x8xf32>
    %39 = tpu.matmul %35, %36, %cst_23 {dimension_numbers = #tpu.dot_dimension_numbers<[0], [0], [1], [1], [0, 1, 1, 1], [], []>} : vector<8x8xf32>, vector<8x8xf32>, vector<8x8xf32> -> vector<8x8xf32>
    %40 = arith.addf %38, %39 : vector<8x8xf32>
    %c2_24 = arith.constant 2 : index
    %c0_25 = arith.constant 0 : index
    %c0_26 = arith.constant 0 : index
    %41 = vector.load %arg6[%c2_24, %c0_25, %c0_26] : memref<4x8x8xf32, #tpu.memory_space<vmem>>, vector<1x8x8xf32>
    %42 = vector.shape_cast %41 : vector<1x8x8xf32> to vector<8x8xf32>
    %43 = vector.shape_cast %40 : vector<8x8xf32> to vector<1x8x8xf32>
    tpu.vector_store %arg6[%c2_24, %c0_25, %c0_26], %43 {strides = array<i32>} : memref<4x8x8xf32, #tpu.memory_space<vmem>>, vector<1x8x8xf32>,
    %44 = vector.extract_strided_slice %13 {offsets = [0, 24], sizes = [8, 8], strides = [1, 1]} : vector<8x32xf32> to vector<8x8xf32>
    %45 = vector.extract_strided_slice %16 {offsets = [0, 24], sizes = [8, 8], strides = [1, 1]} : vector<8x32xf32> to vector<8x8xf32>
    %c3 = arith.constant 3 : index
    %c0_27 = arith.constant 0 : index
    %c0_28 = arith.constant 0 : index
    %46 = vector.load %arg6[%c3, %c0_27, %c0_28] : memref<4x8x8xf32, #tpu.memory_space<vmem>>, vector<1x8x8xf32>
    %47 = vector.shape_cast %46 : vector<1x8x8xf32> to vector<8x8xf32>
    %cst_29 = arith.constant dense<0.000000e+00> : vector<8x8xf32>
    %48 = tpu.matmul %44, %45, %cst_29 {dimension_numbers = #tpu.dot_dimension_numbers<[0], [0], [1], [1], [0, 1, 1, 1], [], []>} : vector<8x8xf32>, vector<8x8xf32>, vector<8x8xf32> -> vector<8x8xf32>
    %49 = arith.addf %47, %48 : vector<8x8xf32>
    %c3_30 = arith.constant 3 : index
    %c0_31 = arith.constant 0 : index
    %c0_32 = arith.constant 0 : index
    %50 = vector.load %arg6[%c3_30, %c0_31, %c0_32] : memref<4x8x8xf32, #tpu.memory_space<vmem>>, vector<1x8x8xf32>
    %51 = vector.shape_cast %50 : vector<1x8x8xf32> to vector<8x8xf32>
    %52 = vector.shape_cast %49 : vector<8x8xf32> to vector<1x8x8xf32>
    tpu.vector_store %arg6[%c3_30, %c0_31, %c0_32], %52 {strides = array<i32>} : memref<4x8x8xf32, #tpu.memory_space<vmem>>, vector<1x8x8xf32>,
    %c0_33 = arith.constant 0 : index
    %c0_34 = arith.constant 0 : index
    %53 = vector.load %arg7[%c0_33, %c0_34] : memref<1x32xf32, #tpu.memory_space<vmem>>, vector<1x32xf32>
    %cst_35 = arith.constant dense<0.000000e+00> : vector<32xf32>
    %54 = vector.multi_reduction <add>, %13, %cst_35 [0] : vector<8x32xf32> to vector<32xf32>
    %55 = vector.shape_cast %54 : vector<32xf32> to vector<1x32xf32>
    %56 = arith.addf %53, %55 : vector<1x32xf32>
    %c0_36 = arith.constant 0 : index
    %c0_37 = arith.constant 0 : index
    %57 = vector.load %arg7[%c0_36, %c0_37] : memref<1x32xf32, #tpu.memory_space<vmem>>, vector<1x32xf32>
    tpu.vector_store %arg7[%c0_36, %c0_37], %56 {strides = array<i32>} : memref<1x32xf32, #tpu.memory_space<vmem>>, vector<1x32xf32>,
    %c0_i32_38 = arith.constant 0 : i32
    %58 = arith.cmpi eq, %arg1, %c0_i32_38 : i32
    %59 = arith.extui %58 : i1 to i32
    %c0_i32_39 = arith.constant 0 : i32
    %60 = arith.cmpi ne, %59, %c0_i32_39 : i32
    scf.if %60 {
      %c0_40 = arith.constant 0 : index
      %c0_41 = arith.constant 0 : index
      %c0_42 = arith.constant 0 : index
      %61 = vector.load %arg6[%c0_40, %c0_41, %c0_42] : memref<4x8x8xf32, #tpu.memory_space<vmem>>, vector<4x8x8xf32>
      %c0_43 = arith.constant 0 : index
      %c0_44 = arith.constant 0 : index
      %c0_45 = arith.constant 0 : index
      %c0_46 = arith.constant 0 : index
      %62 = vector.load %arg4[%c0_43, %c0_44, %c0_45, %c0_46] : memref<1x4x8x8xf32, #tpu.memory_space<vmem>>, vector<1x4x8x8xf32>
      %63 = vector.shape_cast %62 : vector<1x4x8x8xf32> to vector<4x8x8xf32>
      %64 = vector.shape_cast %61 : vector<4x8x8xf32> to vector<1x4x8x8xf32>
      tpu.vector_store %arg4[%c0_43, %c0_44, %c0_45, %c0_46], %64 {strides = array<i32>} : memref<1x4x8x8xf32, #tpu.memory_space<vmem>>, vector<1x4x8x8xf32>,
      %c0_47 = arith.constant 0 : index
      %c0_48 = arith.constant 0 : index
      %65 = vector.load %arg7[%c0_47, %c0_48] : memref<1x32xf32, #tpu.memory_space<vmem>>, vector<1x32xf32>
      %c0_49 = arith.constant 0 : index
      %c0_50 = arith.constant 0 : index
      %c0_51 = arith.constant 0 : index
      %66 = vector.load %arg5[%c0_49, %c0_50, %c0_51] : memref<1x1x32xf32, #tpu.memory_space<vmem>>, vector<1x1x32xf32>
      %67 = vector.shape_cast %66 : vector<1x1x32xf32> to vector<1x32xf32>
      %68 = vector.shape_cast %65 : vector<1x32xf32> to vector<1x1x32xf32>
      tpu.vector_store %arg5[%c0_49, %c0_50, %c0_51], %68 {strides = array<i32>} : memref<1x1x32xf32, #tpu.memory_space<vmem>>, vector<1x1x32xf32>,
    } else {
    }
    return
  }
  func.func @transform_0(%arg0: i32, %arg1: i32) -> (i32, i32, i32) {
    %c0_i32 = arith.constant 0 : i32
    %c0_i32_0 = arith.constant 0 : i32
    return %arg0, %arg1, %c0_i32 : i32, i32, i32
  }
  func.func @transform_1(%arg0: i32, %arg1: i32) -> (i32, i32, i32) {
    %c0_i32 = arith.constant 0 : i32
    %c0_i32_0 = arith.constant 0 : i32
    return %arg0, %arg1, %c0_i32 : i32, i32, i32
  }
  func.func @transform_2(%arg0: i32, %arg1: i32) -> (i32, i32, i32, i32) {
    %c0_i32 = arith.constant 0 : i32
    %c0_i32_0 = arith.constant 0 : i32
    %c0_i32_1 = arith.constant 0 : i32
    %c0_i32_2 = arith.constant 0 : i32
    return %arg0, %c0_i32, %c0_i32_0, %c0_i32_1 : i32, i32, i32, i32
  }
  func.func @transform_3(%arg0: i32, %arg1: i32) -> (i32, i32, i32) {
    %c0_i32 = arith.constant 0 : i32
    %c0_i32_0 = arith.constant 0 : i32
    %c0_i32_1 = arith.constant 0 : i32
    return %arg0, %c0_i32, %c0_i32_0 : i32, i32, i32
  }
}

module attributes {stable_mosaic.version = 11 : i64} {
  func.func @_linatt_apply_kernel(%arg0: i32, %arg1: i32, %arg2: memref<1x8x32xbf16, #tpu.memory_space<vmem>>, %arg3: memref<1x4x8x8xf32, #tpu.memory_space<vmem>>, %arg4: memref<1x1x32xf32, #tpu.memory_space<vmem>>, %arg5: memref<1x8x32xbf16, #tpu.memory_space<vmem>>) attributes {dimension_semantics = [#tpu.dimension_semantics<parallel>, #tpu.dimension_semantics<parallel>], iteration_bounds = array<i64: 2, 1>, scalar_prefetch = 0 : i64, scratch_operands = 0 : i64, tpu.core_type = #tpu.core_type<tc>, window_params = [{transform_indices = @transform_0, window_bounds = array<i64: 1, 8, 32>}, {transform_indices = @transform_1, window_bounds = array<i64: 1, 4, 8, 8>}, {transform_indices = @transform_2, window_bounds = array<i64: 1, 1, 32>}, {transform_indices = @transform_3, window_bounds = array<i64: 1, 8, 32>}]} {
    %c0 = arith.constant 0 : index
    %c0_0 = arith.constant 0 : index
    %c0_1 = arith.constant 0 : index
    %0 = vector.load %arg2[%c0, %c0_0, %c0_1] : memref<1x8x32xbf16, #tpu.memory_space<vmem>>, vector<1x8x32xbf16>
    %1 = vector.shape_cast %0 : vector<1x8x32xbf16> to vector<8x32xbf16>
    %2 = arith.extf %1 : vector<8x32xbf16> to vector<8x32xf32>
    %cst = arith.constant 0.000000e+00 : f32
    %3 = vector.broadcast %cst : f32 to vector<8x32xf32>
    %4 = arith.cmpf ogt, %2, %3 : vector<8x32xf32>
    %cst_2 = arith.constant 1.000000e+00 : f32
    %5 = vector.broadcast %cst_2 : f32 to vector<8x32xf32>
    %6 = arith.addf %2, %5 : vector<8x32xf32>
    %cst_3 = arith.constant 0.000000e+00 : f32
    %7 = vector.broadcast %cst_3 : f32 to vector<8x32xf32>
    %8 = arith.minimumf %2, %7 : vector<8x32xf32>
    %9 = math.exp %8 : vector<8x32xf32>
    %10 = arith.select %4, %6, %9 : vector<8x32xi1>, vector<8x32xf32>
    %c0_4 = arith.constant 0 : index
    %c0_5 = arith.constant 0 : index
    %c0_6 = arith.constant 0 : index
    %11 = vector.load %arg4[%c0_4, %c0_5, %c0_6] : memref<1x1x32xf32, #tpu.memory_space<vmem>>, vector<1x1x32xf32>
    %12 = vector.shape_cast %11 : vector<1x1x32xf32> to vector<1x32xf32>
    %13 = vector.broadcast %12 : vector<1x32xf32> to vector<8x32xf32>
    %14 = arith.mulf %10, %13 : vector<8x32xf32>
    %15 = vector.extract_strided_slice %10 {offsets = [0, 0], sizes = [8, 8], strides = [1, 1]} : vector<8x32xf32> to vector<8x8xf32>
    %c0_7 = arith.constant 0 : index
    %c0_8 = arith.constant 0 : index
    %c0_9 = arith.constant 0 : index
    %c0_10 = arith.constant 0 : index
    %16 = vector.load %arg3[%c0_7, %c0_8, %c0_9, %c0_10] : memref<1x4x8x8xf32, #tpu.memory_space<vmem>>, vector<1x1x8x8xf32>
    %17 = vector.shape_cast %16 : vector<1x1x8x8xf32> to vector<8x8xf32>
    %cst_11 = arith.constant dense<0.000000e+00> : vector<8x8xf32>
    %18 = tpu.matmul %15, %17, %cst_11 {dimension_numbers = #tpu.dot_dimension_numbers<[1], [0], [0], [1], [0, 0, 1, 1], [], []>} : vector<8x8xf32>, vector<8x8xf32>, vector<8x8xf32> -> vector<8x8xf32>
    %19 = vector.extract_strided_slice %14 {offsets = [0, 0], sizes = [8, 8], strides = [1, 1]} : vector<8x32xf32> to vector<8x8xf32>
    %cst_12 = arith.constant dense<0.000000e+00> : vector<8xf32>
    %20 = vector.multi_reduction <add>, %19, %cst_12 [1] : vector<8x8xf32> to vector<8xf32>
    %21 = vector.shape_cast %20 : vector<8xf32> to vector<8x1xf32>
    %cst_13 = arith.constant 9.99999997E-7 : f32
    %22 = vector.broadcast %cst_13 : f32 to vector<8x1xf32>
    %23 = arith.addf %21, %22 : vector<8x1xf32>
    %24 = tpu.reciprocal %23 {approx = true} : vector<8x1xf32> -> vector<8x1xf32>
    %25 = vector.broadcast %24 : vector<8x1xf32> to vector<8x8xf32>
    %26 = arith.mulf %18, %25 : vector<8x8xf32>
    %27 = arith.truncf %26 : vector<8x8xf32> to vector<8x8xbf16>
    %c0_14 = arith.constant 0 : index
    %c0_15 = arith.constant 0 : index
    %c0_16 = arith.constant 0 : index
    %28 = vector.load %arg5[%c0_14, %c0_15, %c0_16] : memref<1x8x32xbf16, #tpu.memory_space<vmem>>, vector<1x8x8xbf16>
    %29 = vector.shape_cast %28 : vector<1x8x8xbf16> to vector<8x8xbf16>
    %30 = vector.shape_cast %27 : vector<8x8xbf16> to vector<1x8x8xbf16>
    tpu.vector_store %arg5[%c0_14, %c0_15, %c0_16], %30 {strides = array<i32>} : memref<1x8x32xbf16, #tpu.memory_space<vmem>>, vector<1x8x8xbf16>,
    %31 = vector.extract_strided_slice %10 {offsets = [0, 8], sizes = [8, 8], strides = [1, 1]} : vector<8x32xf32> to vector<8x8xf32>
    %c0_17 = arith.constant 0 : index
    %c1 = arith.constant 1 : index
    %c0_18 = arith.constant 0 : index
    %c0_19 = arith.constant 0 : index
    %32 = vector.load %arg3[%c0_17, %c1, %c0_18, %c0_19] : memref<1x4x8x8xf32, #tpu.memory_space<vmem>>, vector<1x1x8x8xf32>
    %33 = vector.shape_cast %32 : vector<1x1x8x8xf32> to vector<8x8xf32>
    %cst_20 = arith.constant dense<0.000000e+00> : vector<8x8xf32>
    %34 = tpu.matmul %31, %33, %cst_20 {dimension_numbers = #tpu.dot_dimension_numbers<[1], [0], [0], [1], [0, 0, 1, 1], [], []>} : vector<8x8xf32>, vector<8x8xf32>, vector<8x8xf32> -> vector<8x8xf32>
    %35 = vector.extract_strided_slice %14 {offsets = [0, 8], sizes = [8, 8], strides = [1, 1]} : vector<8x32xf32> to vector<8x8xf32>
    %cst_21 = arith.constant dense<0.000000e+00> : vector<8xf32>
    %36 = vector.multi_reduction <add>, %35, %cst_21 [1] : vector<8x8xf32> to vector<8xf32>
    %37 = vector.shape_cast %36 : vector<8xf32> to vector<8x1xf32>
    %cst_22 = arith.constant 9.99999997E-7 : f32
    %38 = vector.broadcast %cst_22 : f32 to vector<8x1xf32>
    %39 = arith.addf %37, %38 : vector<8x1xf32>
    %40 = tpu.reciprocal %39 {approx = true} : vector<8x1xf32> -> vector<8x1xf32>
    %41 = vector.broadcast %40 : vector<8x1xf32> to vector<8x8xf32>
    %42 = arith.mulf %34, %41 : vector<8x8xf32>
    %43 = arith.truncf %42 : vector<8x8xf32> to vector<8x8xbf16>
    %c0_23 = arith.constant 0 : index
    %c0_24 = arith.constant 0 : index
    %c8 = arith.constant 8 : index
    %44 = vector.load %arg5[%c0_23, %c0_24, %c8] : memref<1x8x32xbf16, #tpu.memory_space<vmem>>, vector<1x8x8xbf16>
    %45 = vector.shape_cast %44 : vector<1x8x8xbf16> to vector<8x8xbf16>
    %46 = vector.shape_cast %43 : vector<8x8xbf16> to vector<1x8x8xbf16>
    tpu.vector_store %arg5[%c0_23, %c0_24, %c8], %46 {strides = array<i32>} : memref<1x8x32xbf16, #tpu.memory_space<vmem>>, vector<1x8x8xbf16>,
    %47 = vector.extract_strided_slice %10 {offsets = [0, 16], sizes = [8, 8], strides = [1, 1]} : vector<8x32xf32> to vector<8x8xf32>
    %c0_25 = arith.constant 0 : index
    %c2 = arith.constant 2 : index
    %c0_26 = arith.constant 0 : index
    %c0_27 = arith.constant 0 : index
    %48 = vector.load %arg3[%c0_25, %c2, %c0_26, %c0_27] : memref<1x4x8x8xf32, #tpu.memory_space<vmem>>, vector<1x1x8x8xf32>
    %49 = vector.shape_cast %48 : vector<1x1x8x8xf32> to vector<8x8xf32>
    %cst_28 = arith.constant dense<0.000000e+00> : vector<8x8xf32>
    %50 = tpu.matmul %47, %49, %cst_28 {dimension_numbers = #tpu.dot_dimension_numbers<[1], [0], [0], [1], [0, 0, 1, 1], [], []>} : vector<8x8xf32>, vector<8x8xf32>, vector<8x8xf32> -> vector<8x8xf32>
    %51 = vector.extract_strided_slice %14 {offsets = [0, 16], sizes = [8, 8], strides = [1, 1]} : vector<8x32xf32> to vector<8x8xf32>
    %cst_29 = arith.constant dense<0.000000e+00> : vector<8xf32>
    %52 = vector.multi_reduction <add>, %51, %cst_29 [1] : vector<8x8xf32> to vector<8xf32>
    %53 = vector.shape_cast %52 : vector<8xf32> to vector<8x1xf32>
    %cst_30 = arith.constant 9.99999997E-7 : f32
    %54 = vector.broadcast %cst_30 : f32 to vector<8x1xf32>
    %55 = arith.addf %53, %54 : vector<8x1xf32>
    %56 = tpu.reciprocal %55 {approx = true} : vector<8x1xf32> -> vector<8x1xf32>
    %57 = vector.broadcast %56 : vector<8x1xf32> to vector<8x8xf32>
    %58 = arith.mulf %50, %57 : vector<8x8xf32>
    %59 = arith.truncf %58 : vector<8x8xf32> to vector<8x8xbf16>
    %c0_31 = arith.constant 0 : index
    %c0_32 = arith.constant 0 : index
    %c16 = arith.constant 16 : index
    %60 = vector.load %arg5[%c0_31, %c0_32, %c16] : memref<1x8x32xbf16, #tpu.memory_space<vmem>>, vector<1x8x8xbf16>
    %61 = vector.shape_cast %60 : vector<1x8x8xbf16> to vector<8x8xbf16>
    %62 = vector.shape_cast %59 : vector<8x8xbf16> to vector<1x8x8xbf16>
    tpu.vector_store %arg5[%c0_31, %c0_32, %c16], %62 {strides = array<i32>} : memref<1x8x32xbf16, #tpu.memory_space<vmem>>, vector<1x8x8xbf16>,
    %63 = vector.extract_strided_slice %10 {offsets = [0, 24], sizes = [8, 8], strides = [1, 1]} : vector<8x32xf32> to vector<8x8xf32>
    %c0_33 = arith.constant 0 : index
    %c3 = arith.constant 3 : index
    %c0_34 = arith.constant 0 : index
    %c0_35 = arith.constant 0 : index
    %64 = vector.load %arg3[%c0_33, %c3, %c0_34, %c0_35] : memref<1x4x8x8xf32, #tpu.memory_space<vmem>>, vector<1x1x8x8xf32>
    %65 = vector.shape_cast %64 : vector<1x1x8x8xf32> to vector<8x8xf32>
    %cst_36 = arith.constant dense<0.000000e+00> : vector<8x8xf32>
    %66 = tpu.matmul %63, %65, %cst_36 {dimension_numbers = #tpu.dot_dimension_numbers<[1], [0], [0], [1], [0, 0, 1, 1], [], []>} : vector<8x8xf32>, vector<8x8xf32>, vector<8x8xf32> -> vector<8x8xf32>
    %67 = vector.extract_strided_slice %14 {offsets = [0, 24], sizes = [8, 8], strides = [1, 1]} : vector<8x32xf32> to vector<8x8xf32>
    %cst_37 = arith.constant dense<0.000000e+00> : vector<8xf32>
    %68 = vector.multi_reduction <add>, %67, %cst_37 [1] : vector<8x8xf32> to vector<8xf32>
    %69 = vector.shape_cast %68 : vector<8xf32> to vector<8x1xf32>
    %cst_38 = arith.constant 9.99999997E-7 : f32
    %70 = vector.broadcast %cst_38 : f32 to vector<8x1xf32>
    %71 = arith.addf %69, %70 : vector<8x1xf32>
    %72 = tpu.reciprocal %71 {approx = true} : vector<8x1xf32> -> vector<8x1xf32>
    %73 = vector.broadcast %72 : vector<8x1xf32> to vector<8x8xf32>
    %74 = arith.mulf %66, %73 : vector<8x8xf32>
    %75 = arith.truncf %74 : vector<8x8xf32> to vector<8x8xbf16>
    %c0_39 = arith.constant 0 : index
    %c0_40 = arith.constant 0 : index
    %c24 = arith.constant 24 : index
    %76 = vector.load %arg5[%c0_39, %c0_40, %c24] : memref<1x8x32xbf16, #tpu.memory_space<vmem>>, vector<1x8x8xbf16>
    %77 = vector.shape_cast %76 : vector<1x8x8xbf16> to vector<8x8xbf16>
    %78 = vector.shape_cast %75 : vector<8x8xbf16> to vector<1x8x8xbf16>
    tpu.vector_store %arg5[%c0_39, %c0_40, %c24], %78 {strides = array<i32>} : memref<1x8x32xbf16, #tpu.memory_space<vmem>>, vector<1x8x8xbf16>,
    return
  }
  func.func @transform_0(%arg0: i32, %arg1: i32) -> (i32, i32, i32) {
    %c0_i32 = arith.constant 0 : i32
    %c0_i32_0 = arith.constant 0 : i32
    return %arg0, %arg1, %c0_i32 : i32, i32, i32
  }
  func.func @transform_1(%arg0: i32, %arg1: i32) -> (i32, i32, i32, i32) {
    %c0_i32 = arith.constant 0 : i32
    %c0_i32_0 = arith.constant 0 : i32
    %c0_i32_1 = arith.constant 0 : i32
    %c0_i32_2 = arith.constant 0 : i32
    return %arg0, %c0_i32, %c0_i32_0, %c0_i32_1 : i32, i32, i32, i32
  }
  func.func @transform_2(%arg0: i32, %arg1: i32) -> (i32, i32, i32) {
    %c0_i32 = arith.constant 0 : i32
    %c0_i32_0 = arith.constant 0 : i32
    %c0_i32_1 = arith.constant 0 : i32
    return %arg0, %c0_i32, %c0_i32_0 : i32, i32, i32
  }
  func.func @transform_3(%arg0: i32, %arg1: i32) -> (i32, i32, i32) {
    %c0_i32 = arith.constant 0 : i32
    %c0_i32_0 = arith.constant 0 : i32
    return %arg0, %arg1, %c0_i32 : i32, i32, i32
  }
}

module attributes {stable_mosaic.version = 11 : i64} {
  func.func @_ffn_kernel(%arg0: i32, %arg1: i32, %arg2: memref<16x32xbf16, #tpu.memory_space<vmem>>, %arg3: memref<32x64xbf16, #tpu.memory_space<vmem>>, %arg4: memref<1x64xf32, #tpu.memory_space<vmem>>, %arg5: memref<64x32xbf16, #tpu.memory_space<vmem>>, %arg6: memref<1x32xf32, #tpu.memory_space<vmem>>, %arg7: memref<16x32xbf16, #tpu.memory_space<vmem>>, %arg8: memref<16x32xf32, #tpu.memory_space<vmem>>) attributes {dimension_semantics = [#tpu.dimension_semantics<parallel>, #tpu.dimension_semantics<arbitrary>], iteration_bounds = array<i64: 1, 1>, scalar_prefetch = 0 : i64, scratch_operands = 1 : i64, tpu.core_type = #tpu.core_type<tc>, window_params = [{transform_indices = @transform_0, window_bounds = array<i64: 16, 32>}, {transform_indices = @transform_1, window_bounds = array<i64: 32, 64>}, {transform_indices = @transform_2, window_bounds = array<i64: 1, 64>}, {transform_indices = @transform_3, window_bounds = array<i64: 64, 32>}, {pipeline_mode = #tpu.pipeline_mode<synchronous>, transform_indices = @transform_4, window_bounds = array<i64: 1, 32>}, {transform_indices = @transform_5, window_bounds = array<i64: 16, 32>}]} {
    %c0_i32 = arith.constant 0 : i32
    %0 = arith.cmpi eq, %arg1, %c0_i32 : i32
    %1 = arith.extui %0 : i1 to i32
    %c0_i32_0 = arith.constant 0 : i32
    %2 = arith.cmpi ne, %1, %c0_i32_0 : i32
    scf.if %2 {
      %cst_16 = arith.constant 0.000000e+00 : f32
      %20 = vector.broadcast %cst_16 : f32 to vector<16x32xf32>
      %c0_17 = arith.constant 0 : index
      %c0_18 = arith.constant 0 : index
      %21 = vector.load %arg8[%c0_17, %c0_18] : memref<16x32xf32, #tpu.memory_space<vmem>>, vector<16x32xf32>
      tpu.vector_store %arg8[%c0_17, %c0_18], %20 {strides = array<i32>} : memref<16x32xf32, #tpu.memory_space<vmem>>, vector<16x32xf32>,
    } else {
    }
    %c0 = arith.constant 0 : index
    %c0_1 = arith.constant 0 : index
    %3 = vector.load %arg2[%c0, %c0_1] : memref<16x32xbf16, #tpu.memory_space<vmem>>, vector<16x32xbf16>
    %c0_2 = arith.constant 0 : index
    %c0_3 = arith.constant 0 : index
    %4 = vector.load %arg3[%c0_2, %c0_3] : memref<32x64xbf16, #tpu.memory_space<vmem>>, vector<32x64xbf16>
    %cst = arith.constant dense<0.000000e+00> : vector<16x64xf32>
    %5 = tpu.matmul %3, %4, %cst {dimension_numbers = #tpu.dot_dimension_numbers<[1], [0], [0], [1], [0, 0, 1, 1], [], []>} : vector<16x32xbf16>, vector<32x64xbf16>, vector<16x64xf32> -> vector<16x64xf32>
    %c0_4 = arith.constant 0 : index
    %c0_5 = arith.constant 0 : index
    %6 = vector.load %arg4[%c0_4, %c0_5] : memref<1x64xf32, #tpu.memory_space<vmem>>, vector<1x64xf32>
    %7 = vector.broadcast %6 : vector<1x64xf32> to vector<16x64xf32>
    %8 = arith.addf %5, %7 : vector<16x64xf32>
    %cst_6 = arith.constant 0.000000e+00 : f32
    %9 = vector.broadcast %cst_6 : f32 to vector<16x64xf32>
    %10 = arith.maximumf %8, %9 : vector<16x64xf32>
    %c0_7 = arith.constant 0 : index
    %c0_8 = arith.constant 0 : index
    %11 = vector.load %arg8[%c0_7, %c0_8] : memref<16x32xf32, #tpu.memory_space<vmem>>, vector<16x32xf32>
    %12 = arith.truncf %10 : vector<16x64xf32> to vector<16x64xbf16>
    %c0_9 = arith.constant 0 : index
    %c0_10 = arith.constant 0 : index
    %13 = vector.load %arg5[%c0_9, %c0_10] : memref<64x32xbf16, #tpu.memory_space<vmem>>, vector<64x32xbf16>
    %cst_11 = arith.constant dense<0.000000e+00> : vector<16x32xf32>
    %14 = tpu.matmul %12, %13, %cst_11 {dimension_numbers = #tpu.dot_dimension_numbers<[1], [0], [0], [1], [0, 0, 1, 1], [], []>} : vector<16x64xbf16>, vector<64x32xbf16>, vector<16x32xf32> -> vector<16x32xf32>
    %15 = arith.addf %11, %14 : vector<16x32xf32>
    %c0_12 = arith.constant 0 : index
    %c0_13 = arith.constant 0 : index
    %16 = vector.load %arg8[%c0_12, %c0_13] : memref<16x32xf32, #tpu.memory_space<vmem>>, vector<16x32xf32>
    tpu.vector_store %arg8[%c0_12, %c0_13], %15 {strides = array<i32>} : memref<16x32xf32, #tpu.memory_space<vmem>>, vector<16x32xf32>,
    %c0_i32_14 = arith.constant 0 : i32
    %17 = arith.cmpi eq, %arg1, %c0_i32_14 : i32
    %18 = arith.extui %17 : i1 to i32
    %c0_i32_15 = arith.constant 0 : i32
    %19 = arith.cmpi ne, %18, %c0_i32_15 : i32
    scf.if %19 {
      %c0_16 = arith.constant 0 : index
      %c0_17 = arith.constant 0 : index
      %20 = vector.load %arg8[%c0_16, %c0_17] : memref<16x32xf32, #tpu.memory_space<vmem>>, vector<16x32xf32>
      %c0_18 = arith.constant 0 : index
      %c0_19 = arith.constant 0 : index
      %21 = vector.load %arg6[%c0_18, %c0_19] : memref<1x32xf32, #tpu.memory_space<vmem>>, vector<1x32xf32>
      %22 = vector.broadcast %21 : vector<1x32xf32> to vector<16x32xf32>
      %23 = arith.addf %20, %22 : vector<16x32xf32>
      %24 = arith.truncf %23 : vector<16x32xf32> to vector<16x32xbf16>
      %c0_20 = arith.constant 0 : index
      %c0_21 = arith.constant 0 : index
      %25 = vector.load %arg7[%c0_20, %c0_21] : memref<16x32xbf16, #tpu.memory_space<vmem>>, vector<16x32xbf16>
      tpu.vector_store %arg7[%c0_20, %c0_21], %24 {strides = array<i32>} : memref<16x32xbf16, #tpu.memory_space<vmem>>, vector<16x32xbf16>,
    } else {
    }
    return
  }
  func.func @transform_0(%arg0: i32, %arg1: i32) -> (i32, i32) {
    %c0_i32 = arith.constant 0 : i32
    %c0_i32_0 = arith.constant 0 : i32
    return %arg0, %c0_i32 : i32, i32
  }
  func.func @transform_1(%arg0: i32, %arg1: i32) -> (i32, i32) {
    %c0_i32 = arith.constant 0 : i32
    %c0_i32_0 = arith.constant 0 : i32
    return %c0_i32, %arg1 : i32, i32
  }
  func.func @transform_2(%arg0: i32, %arg1: i32) -> (i32, i32) {
    %c0_i32 = arith.constant 0 : i32
    %c0_i32_0 = arith.constant 0 : i32
    return %c0_i32, %arg1 : i32, i32
  }
  func.func @transform_3(%arg0: i32, %arg1: i32) -> (i32, i32) {
    %c0_i32 = arith.constant 0 : i32
    %c0_i32_0 = arith.constant 0 : i32
    return %arg1, %c0_i32 : i32, i32
  }
  func.func @transform_4(%arg0: i32, %arg1: i32) -> (i32, i32) {
    %c0_i32 = arith.constant 0 : i32
    %c0_i32_0 = arith.constant 0 : i32
    %c0_i32_1 = arith.constant 0 : i32
    return %c0_i32, %c0_i32_0 : i32, i32
  }
  func.func @transform_5(%arg0: i32, %arg1: i32) -> (i32, i32) {
    %c0_i32 = arith.constant 0 : i32
    %c0_i32_0 = arith.constant 0 : i32
    return %arg0, %c0_i32 : i32, i32
  }
}

module attributes {stable_mosaic.version = 11 : i64} {
  func.func @_layernorm_kernel(%arg0: i32, %arg1: memref<16x32xbf16, #tpu.memory_space<vmem>>, %arg2: memref<1x32xf32, #tpu.memory_space<vmem>>, %arg3: memref<1x32xf32, #tpu.memory_space<vmem>>, %arg4: memref<16x32xbf16, #tpu.memory_space<vmem>>) attributes {dimension_semantics = [#tpu.dimension_semantics<parallel>], iteration_bounds = array<i64: 1>, scalar_prefetch = 0 : i64, scratch_operands = 0 : i64, tpu.core_type = #tpu.core_type<tc>, window_params = [{transform_indices = @transform_0, window_bounds = array<i64: 16, 32>}, {pipeline_mode = #tpu.pipeline_mode<synchronous>, transform_indices = @transform_1, window_bounds = array<i64: 1, 32>}, {pipeline_mode = #tpu.pipeline_mode<synchronous>, transform_indices = @transform_2, window_bounds = array<i64: 1, 32>}, {transform_indices = @transform_3, window_bounds = array<i64: 16, 32>}]} {
    %c0 = arith.constant 0 : index
    %c0_0 = arith.constant 0 : index
    %0 = vector.load %arg1[%c0, %c0_0] : memref<16x32xbf16, #tpu.memory_space<vmem>>, vector<16x32xbf16>
    %1 = arith.extf %0 : vector<16x32xbf16> to vector<16x32xf32>
    %cst = arith.constant dense<0.000000e+00> : vector<16xf32>
    %2 = vector.multi_reduction <add>, %1, %cst [1] : vector<16x32xf32> to vector<16xf32>
    %3 = vector.shape_cast %2 : vector<16xf32> to vector<16x1xf32>
    %cst_1 = arith.constant 3.200000e+01 : f32
    %4 = vector.broadcast %cst_1 : f32 to vector<16x1xf32>
    %5 = arith.divf %3, %4 : vector<16x1xf32>
    %6 = vector.broadcast %5 : vector<16x1xf32> to vector<16x32xf32>
    %7 = arith.subf %1, %6 : vector<16x32xf32>
    %8 = arith.mulf %7, %7 : vector<16x32xf32>
    %cst_2 = arith.constant dense<0.000000e+00> : vector<16xf32>
    %9 = vector.multi_reduction <add>, %8, %cst_2 [1] : vector<16x32xf32> to vector<16xf32>
    %10 = vector.shape_cast %9 : vector<16xf32> to vector<16x1xf32>
    %cst_3 = arith.constant 3.200000e+01 : f32
    %11 = vector.broadcast %cst_3 : f32 to vector<16x1xf32>
    %12 = arith.divf %10, %11 : vector<16x1xf32>
    %13 = vector.broadcast %5 : vector<16x1xf32> to vector<16x32xf32>
    %14 = arith.subf %1, %13 : vector<16x32xf32>
    %cst_4 = arith.constant 9.99999974E-6 : f32
    %15 = vector.broadcast %cst_4 : f32 to vector<16x1xf32>
    %16 = arith.addf %12, %15 : vector<16x1xf32>
    %17 = math.rsqrt %16 : vector<16x1xf32>
    %18 = vector.broadcast %17 : vector<16x1xf32> to vector<16x32xf32>
    %19 = arith.mulf %14, %18 : vector<16x32xf32>
    %c0_5 = arith.constant 0 : index
    %c0_6 = arith.constant 0 : index
    %20 = vector.load %arg2[%c0_5, %c0_6] : memref<1x32xf32, #tpu.memory_space<vmem>>, vector<1x32xf32>
    %21 = vector.broadcast %20 : vector<1x32xf32> to vector<16x32xf32>
    %22 = arith.mulf %19, %21 : vector<16x32xf32>
    %c0_7 = arith.constant 0 : index
    %c0_8 = arith.constant 0 : index
    %23 = vector.load %arg3[%c0_7, %c0_8] : memref<1x32xf32, #tpu.memory_space<vmem>>, vector<1x32xf32>
    %24 = vector.broadcast %23 : vector<1x32xf32> to vector<16x32xf32>
    %25 = arith.addf %22, %24 : vector<16x32xf32>
    %26 = arith.truncf %25 : vector<16x32xf32> to vector<16x32xbf16>
    %c0_9 = arith.constant 0 : index
    %c0_10 = arith.constant 0 : index
    %27 = vector.load %arg4[%c0_9, %c0_10] : memref<16x32xbf16, #tpu.memory_space<vmem>>, vector<16x32xbf16>
    tpu.vector_store %arg4[%c0_9, %c0_10], %26 {strides = array<i32>} : memref<16x32xbf16, #tpu.memory_space<vmem>>, vector<16x32xbf16>,
    return
  }
  func.func @transform_0(%arg0: i32) -> (i32, i32) {
    %c0_i32 = arith.constant 0 : i32
    %c0_i32_0 = arith.constant 0 : i32
    return %arg0, %c0_i32 : i32, i32
  }
  func.func @transform_1(%arg0: i32) -> (i32, i32) {
    %c0_i32 = arith.constant 0 : i32
    %c0_i32_0 = arith.constant 0 : i32
    %c0_i32_1 = arith.constant 0 : i32
    return %c0_i32, %c0_i32_0 : i32, i32
  }
  func.func @transform_2(%arg0: i32) -> (i32, i32) {
    %c0_i32 = arith.constant 0 : i32
    %c0_i32_0 = arith.constant 0 : i32
    %c0_i32_1 = arith.constant 0 : i32
    return %c0_i32, %c0_i32_0 : i32, i32
  }
  func.func @transform_3(%arg0: i32) -> (i32, i32) {
    %c0_i32 = arith.constant 0 : i32
    %c0_i32_0 = arith.constant 0 : i32
    return %arg0, %c0_i32 : i32, i32
  }
}

module attributes {stable_mosaic.version = 11 : i64} {
  func.func @_linear_sum2_kernel(%arg0: i32, %arg1: i32, %arg2: i32, %arg3: memref<16x32xbf16, #tpu.memory_space<vmem>>, %arg4: memref<16x32xbf16, #tpu.memory_space<vmem>>, %arg5: memref<32x64xbf16, #tpu.memory_space<vmem>>, %arg6: memref<1x64xf32, #tpu.memory_space<vmem>>, %arg7: memref<16x64xbf16, #tpu.memory_space<vmem>>, %arg8: memref<16x64xf32, #tpu.memory_space<vmem>>) attributes {dimension_semantics = [#tpu.dimension_semantics<parallel>, #tpu.dimension_semantics<parallel>, #tpu.dimension_semantics<arbitrary>], iteration_bounds = array<i64: 1, 1, 1>, scalar_prefetch = 0 : i64, scratch_operands = 1 : i64, tpu.core_type = #tpu.core_type<tc>, window_params = [{transform_indices = @transform_0, window_bounds = array<i64: 16, 32>}, {transform_indices = @transform_1, window_bounds = array<i64: 16, 32>}, {transform_indices = @transform_2, window_bounds = array<i64: 32, 64>}, {transform_indices = @transform_3, window_bounds = array<i64: 1, 64>}, {transform_indices = @transform_4, window_bounds = array<i64: 16, 64>}]} {
    %c0_i32 = arith.constant 0 : i32
    %0 = arith.cmpi eq, %arg2, %c0_i32 : i32
    %1 = arith.extui %0 : i1 to i32
    %c0_i32_0 = arith.constant 0 : i32
    %2 = arith.cmpi ne, %1, %c0_i32_0 : i32
    scf.if %2 {
      %cst_12 = arith.constant 0.000000e+00 : f32
      %14 = vector.broadcast %cst_12 : f32 to vector<16x64xf32>
      %c0_13 = arith.constant 0 : index
      %c0_14 = arith.constant 0 : index
      %15 = vector.load %arg8[%c0_13, %c0_14] : memref<16x64xf32, #tpu.memory_space<vmem>>, vector<16x64xf32>
      tpu.vector_store %arg8[%c0_13, %c0_14], %14 {strides = array<i32>} : memref<16x64xf32, #tpu.memory_space<vmem>>, vector<16x64xf32>,
    } else {
    }
    %c0 = arith.constant 0 : index
    %c0_1 = arith.constant 0 : index
    %3 = vector.load %arg8[%c0, %c0_1] : memref<16x64xf32, #tpu.memory_space<vmem>>, vector<16x64xf32>
    %c0_2 = arith.constant 0 : index
    %c0_3 = arith.constant 0 : index
    %4 = vector.load %arg3[%c0_2, %c0_3] : memref<16x32xbf16, #tpu.memory_space<vmem>>, vector<16x32xbf16>
    %c0_4 = arith.constant 0 : index
    %c0_5 = arith.constant 0 : index
    %5 = vector.load %arg4[%c0_4, %c0_5] : memref<16x32xbf16, #tpu.memory_space<vmem>>, vector<16x32xbf16>
    %6 = arith.addf %4, %5 : vector<16x32xbf16>
    %c0_6 = arith.constant 0 : index
    %c0_7 = arith.constant 0 : index
    %7 = vector.load %arg5[%c0_6, %c0_7] : memref<32x64xbf16, #tpu.memory_space<vmem>>, vector<32x64xbf16>
    %cst = arith.constant dense<0.000000e+00> : vector<16x64xf32>
    %8 = tpu.matmul %6, %7, %cst {dimension_numbers = #tpu.dot_dimension_numbers<[1], [0], [0], [1], [0, 0, 1, 1], [], []>} : vector<16x32xbf16>, vector<32x64xbf16>, vector<16x64xf32> -> vector<16x64xf32>
    %9 = arith.addf %3, %8 : vector<16x64xf32>
    %c0_8 = arith.constant 0 : index
    %c0_9 = arith.constant 0 : index
    %10 = vector.load %arg8[%c0_8, %c0_9] : memref<16x64xf32, #tpu.memory_space<vmem>>, vector<16x64xf32>
    tpu.vector_store %arg8[%c0_8, %c0_9], %9 {strides = array<i32>} : memref<16x64xf32, #tpu.memory_space<vmem>>, vector<16x64xf32>,
    %c0_i32_10 = arith.constant 0 : i32
    %11 = arith.cmpi eq, %arg2, %c0_i32_10 : i32
    %12 = arith.extui %11 : i1 to i32
    %c0_i32_11 = arith.constant 0 : i32
    %13 = arith.cmpi ne, %12, %c0_i32_11 : i32
    scf.if %13 {
      %c0_12 = arith.constant 0 : index
      %c0_13 = arith.constant 0 : index
      %14 = vector.load %arg8[%c0_12, %c0_13] : memref<16x64xf32, #tpu.memory_space<vmem>>, vector<16x64xf32>
      %c0_14 = arith.constant 0 : index
      %c0_15 = arith.constant 0 : index
      %15 = vector.load %arg6[%c0_14, %c0_15] : memref<1x64xf32, #tpu.memory_space<vmem>>, vector<1x64xf32>
      %16 = vector.broadcast %15 : vector<1x64xf32> to vector<16x64xf32>
      %17 = arith.addf %14, %16 : vector<16x64xf32>
      %18 = arith.truncf %17 : vector<16x64xf32> to vector<16x64xbf16>
      %c0_16 = arith.constant 0 : index
      %c0_17 = arith.constant 0 : index
      %19 = vector.load %arg7[%c0_16, %c0_17] : memref<16x64xbf16, #tpu.memory_space<vmem>>, vector<16x64xbf16>
      tpu.vector_store %arg7[%c0_16, %c0_17], %18 {strides = array<i32>} : memref<16x64xbf16, #tpu.memory_space<vmem>>, vector<16x64xbf16>,
    } else {
    }
    return
  }
  func.func @transform_0(%arg0: i32, %arg1: i32, %arg2: i32) -> (i32, i32) {
    %c0_i32 = arith.constant 0 : i32
    return %arg0, %arg2 : i32, i32
  }
  func.func @transform_1(%arg0: i32, %arg1: i32, %arg2: i32) -> (i32, i32) {
    %c0_i32 = arith.constant 0 : i32
    return %arg0, %arg2 : i32, i32
  }
  func.func @transform_2(%arg0: i32, %arg1: i32, %arg2: i32) -> (i32, i32) {
    %c0_i32 = arith.constant 0 : i32
    return %arg2, %arg1 : i32, i32
  }
  func.func @transform_3(%arg0: i32, %arg1: i32, %arg2: i32) -> (i32, i32) {
    %c0_i32 = arith.constant 0 : i32
    %c0_i32_0 = arith.constant 0 : i32
    return %c0_i32, %arg1 : i32, i32
  }
  func.func @transform_4(%arg0: i32, %arg1: i32, %arg2: i32) -> (i32, i32) {
    %c0_i32 = arith.constant 0 : i32
    return %arg0, %arg1 : i32, i32
  }
}

module attributes {stable_mosaic.version = 11 : i64} {
  func.func @_linear_kernel(%arg0: i32, %arg1: i32, %arg2: i32, %arg3: memref<16x32xbf16, #tpu.memory_space<vmem>>, %arg4: memref<32x128xbf16, #tpu.memory_space<vmem>>, %arg5: memref<1x128xf32, #tpu.memory_space<vmem>>, %arg6: memref<16x128xf32, #tpu.memory_space<vmem>>, %arg7: memref<16x128xf32, #tpu.memory_space<vmem>>) attributes {dimension_semantics = [#tpu.dimension_semantics<parallel>, #tpu.dimension_semantics<parallel>, #tpu.dimension_semantics<arbitrary>], iteration_bounds = array<i64: 1, 1, 1>, scalar_prefetch = 0 : i64, scratch_operands = 1 : i64, tpu.core_type = #tpu.core_type<tc>, window_params = [{transform_indices = @transform_0, window_bounds = array<i64: 16, 32>}, {transform_indices = @transform_1, window_bounds = array<i64: 32, 128>}, {transform_indices = @transform_2, window_bounds = array<i64: 1, 128>}, {transform_indices = @transform_3, window_bounds = array<i64: 16, 128>}]} {
    %c0_i32 = arith.constant 0 : i32
    %0 = arith.cmpi eq, %arg2, %c0_i32 : i32
    %1 = arith.extui %0 : i1 to i32
    %c0_i32_0 = arith.constant 0 : i32
    %2 = arith.cmpi ne, %1, %c0_i32_0 : i32
    scf.if %2 {
      %cst_10 = arith.constant 0.000000e+00 : f32
      %12 = vector.broadcast %cst_10 : f32 to vector<16x128xf32>
      %c0_11 = arith.constant 0 : index
      %c0_12 = arith.constant 0 : index
      %13 = vector.load %arg7[%c0_11, %c0_12] : memref<16x128xf32, #tpu.memory_space<vmem>>, vector<16x128xf32>
      tpu.vector_store %arg7[%c0_11, %c0_12], %12 {strides = array<i32>} : memref<16x128xf32, #tpu.memory_space<vmem>>, vector<16x128xf32>,
    } else {
    }
    %c0 = arith.constant 0 : index
    %c0_1 = arith.constant 0 : index
    %3 = vector.load %arg7[%c0, %c0_1] : memref<16x128xf32, #tpu.memory_space<vmem>>, vector<16x128xf32>
    %c0_2 = arith.constant 0 : index
    %c0_3 = arith.constant 0 : index
    %4 = vector.load %arg3[%c0_2, %c0_3] : memref<16x32xbf16, #tpu.memory_space<vmem>>, vector<16x32xbf16>
    %c0_4 = arith.constant 0 : index
    %c0_5 = arith.constant 0 : index
    %5 = vector.load %arg4[%c0_4, %c0_5] : memref<32x128xbf16, #tpu.memory_space<vmem>>, vector<32x128xbf16>
    %cst = arith.constant dense<0.000000e+00> : vector<16x128xf32>
    %6 = tpu.matmul %4, %5, %cst {dimension_numbers = #tpu.dot_dimension_numbers<[1], [0], [0], [1], [0, 0, 1, 1], [], []>} : vector<16x32xbf16>, vector<32x128xbf16>, vector<16x128xf32> -> vector<16x128xf32>
    %7 = arith.addf %3, %6 : vector<16x128xf32>
    %c0_6 = arith.constant 0 : index
    %c0_7 = arith.constant 0 : index
    %8 = vector.load %arg7[%c0_6, %c0_7] : memref<16x128xf32, #tpu.memory_space<vmem>>, vector<16x128xf32>
    tpu.vector_store %arg7[%c0_6, %c0_7], %7 {strides = array<i32>} : memref<16x128xf32, #tpu.memory_space<vmem>>, vector<16x128xf32>,
    %c0_i32_8 = arith.constant 0 : i32
    %9 = arith.cmpi eq, %arg2, %c0_i32_8 : i32
    %10 = arith.extui %9 : i1 to i32
    %c0_i32_9 = arith.constant 0 : i32
    %11 = arith.cmpi ne, %10, %c0_i32_9 : i32
    scf.if %11 {
      %c0_10 = arith.constant 0 : index
      %c0_11 = arith.constant 0 : index
      %12 = vector.load %arg7[%c0_10, %c0_11] : memref<16x128xf32, #tpu.memory_space<vmem>>, vector<16x128xf32>
      %c0_12 = arith.constant 0 : index
      %c0_13 = arith.constant 0 : index
      %13 = vector.load %arg5[%c0_12, %c0_13] : memref<1x128xf32, #tpu.memory_space<vmem>>, vector<1x128xf32>
      %14 = vector.broadcast %13 : vector<1x128xf32> to vector<16x128xf32>
      %15 = arith.addf %12, %14 : vector<16x128xf32>
      %c0_14 = arith.constant 0 : index
      %c0_15 = arith.constant 0 : index
      %16 = vector.load %arg6[%c0_14, %c0_15] : memref<16x128xf32, #tpu.memory_space<vmem>>, vector<16x128xf32>
      tpu.vector_store %arg6[%c0_14, %c0_15], %15 {strides = array<i32>} : memref<16x128xf32, #tpu.memory_space<vmem>>, vector<16x128xf32>,
    } else {
    }
    return
  }
  func.func @transform_0(%arg0: i32, %arg1: i32, %arg2: i32) -> (i32, i32) {
    %c0_i32 = arith.constant 0 : i32
    return %arg0, %arg2 : i32, i32
  }
  func.func @transform_1(%arg0: i32, %arg1: i32, %arg2: i32) -> (i32, i32) {
    %c0_i32 = arith.constant 0 : i32
    return %arg2, %arg1 : i32, i32
  }
  func.func @transform_2(%arg0: i32, %arg1: i32, %arg2: i32) -> (i32, i32) {
    %c0_i32 = arith.constant 0 : i32
    %c0_i32_0 = arith.constant 0 : i32
    return %c0_i32, %arg1 : i32, i32
  }
  func.func @transform_3(%arg0: i32, %arg1: i32, %arg2: i32) -> (i32, i32) {
    %c0_i32 = arith.constant 0 : i32
    return %arg0, %arg1 : i32, i32
  }
}

module attributes {stable_mosaic.version = 11 : i64} {
  func.func @_linear_kernel(%arg0: i32, %arg1: i32, %arg2: i32, %arg3: memref<16x40xbf16, #tpu.memory_space<vmem>>, %arg4: memref<40x32xbf16, #tpu.memory_space<vmem>>, %arg5: memref<1x32xf32, #tpu.memory_space<vmem>>, %arg6: memref<16x32xbf16, #tpu.memory_space<vmem>>, %arg7: memref<16x32xf32, #tpu.memory_space<vmem>>) attributes {dimension_semantics = [#tpu.dimension_semantics<parallel>, #tpu.dimension_semantics<parallel>, #tpu.dimension_semantics<arbitrary>], iteration_bounds = array<i64: 1, 1, 1>, scalar_prefetch = 0 : i64, scratch_operands = 1 : i64, tpu.core_type = #tpu.core_type<tc>, window_params = [{transform_indices = @transform_0, window_bounds = array<i64: 16, 40>}, {transform_indices = @transform_1, window_bounds = array<i64: 40, 32>}, {transform_indices = @transform_2, window_bounds = array<i64: 1, 32>}, {transform_indices = @transform_3, window_bounds = array<i64: 16, 32>}]} {
    %c0_i32 = arith.constant 0 : i32
    %0 = arith.cmpi eq, %arg2, %c0_i32 : i32
    %1 = arith.extui %0 : i1 to i32
    %c0_i32_0 = arith.constant 0 : i32
    %2 = arith.cmpi ne, %1, %c0_i32_0 : i32
    scf.if %2 {
      %cst_10 = arith.constant 0.000000e+00 : f32
      %12 = vector.broadcast %cst_10 : f32 to vector<16x32xf32>
      %c0_11 = arith.constant 0 : index
      %c0_12 = arith.constant 0 : index
      %13 = vector.load %arg7[%c0_11, %c0_12] : memref<16x32xf32, #tpu.memory_space<vmem>>, vector<16x32xf32>
      tpu.vector_store %arg7[%c0_11, %c0_12], %12 {strides = array<i32>} : memref<16x32xf32, #tpu.memory_space<vmem>>, vector<16x32xf32>,
    } else {
    }
    %c0 = arith.constant 0 : index
    %c0_1 = arith.constant 0 : index
    %3 = vector.load %arg7[%c0, %c0_1] : memref<16x32xf32, #tpu.memory_space<vmem>>, vector<16x32xf32>
    %c0_2 = arith.constant 0 : index
    %c0_3 = arith.constant 0 : index
    %4 = vector.load %arg3[%c0_2, %c0_3] : memref<16x40xbf16, #tpu.memory_space<vmem>>, vector<16x40xbf16>
    %c0_4 = arith.constant 0 : index
    %c0_5 = arith.constant 0 : index
    %5 = vector.load %arg4[%c0_4, %c0_5] : memref<40x32xbf16, #tpu.memory_space<vmem>>, vector<40x32xbf16>
    %cst = arith.constant dense<0.000000e+00> : vector<16x32xf32>
    %6 = tpu.matmul %4, %5, %cst {dimension_numbers = #tpu.dot_dimension_numbers<[1], [0], [0], [1], [0, 0, 1, 1], [], []>} : vector<16x40xbf16>, vector<40x32xbf16>, vector<16x32xf32> -> vector<16x32xf32>
    %7 = arith.addf %3, %6 : vector<16x32xf32>
    %c0_6 = arith.constant 0 : index
    %c0_7 = arith.constant 0 : index
    %8 = vector.load %arg7[%c0_6, %c0_7] : memref<16x32xf32, #tpu.memory_space<vmem>>, vector<16x32xf32>
    tpu.vector_store %arg7[%c0_6, %c0_7], %7 {strides = array<i32>} : memref<16x32xf32, #tpu.memory_space<vmem>>, vector<16x32xf32>,
    %c0_i32_8 = arith.constant 0 : i32
    %9 = arith.cmpi eq, %arg2, %c0_i32_8 : i32
    %10 = arith.extui %9 : i1 to i32
    %c0_i32_9 = arith.constant 0 : i32
    %11 = arith.cmpi ne, %10, %c0_i32_9 : i32
    scf.if %11 {
      %c0_10 = arith.constant 0 : index
      %c0_11 = arith.constant 0 : index
      %12 = vector.load %arg7[%c0_10, %c0_11] : memref<16x32xf32, #tpu.memory_space<vmem>>, vector<16x32xf32>
      %c0_12 = arith.constant 0 : index
      %c0_13 = arith.constant 0 : index
      %13 = vector.load %arg5[%c0_12, %c0_13] : memref<1x32xf32, #tpu.memory_space<vmem>>, vector<1x32xf32>
      %14 = vector.broadcast %13 : vector<1x32xf32> to vector<16x32xf32>
      %15 = arith.addf %12, %14 : vector<16x32xf32>
      %16 = arith.truncf %15 : vector<16x32xf32> to vector<16x32xbf16>
      %c0_14 = arith.constant 0 : index
      %c0_15 = arith.constant 0 : index
      %17 = vector.load %arg6[%c0_14, %c0_15] : memref<16x32xbf16, #tpu.memory_space<vmem>>, vector<16x32xbf16>
      tpu.vector_store %arg6[%c0_14, %c0_15], %16 {strides = array<i32>} : memref<16x32xbf16, #tpu.memory_space<vmem>>, vector<16x32xbf16>,
    } else {
    }
    return
  }
  func.func @transform_0(%arg0: i32, %arg1: i32, %arg2: i32) -> (i32, i32) {
    %c0_i32 = arith.constant 0 : i32
    return %arg0, %arg2 : i32, i32
  }
  func.func @transform_1(%arg0: i32, %arg1: i32, %arg2: i32) -> (i32, i32) {
    %c0_i32 = arith.constant 0 : i32
    return %arg2, %arg1 : i32, i32
  }
  func.func @transform_2(%arg0: i32, %arg1: i32, %arg2: i32) -> (i32, i32) {
    %c0_i32 = arith.constant 0 : i32
    %c0_i32_0 = arith.constant 0 : i32
    return %c0_i32, %arg1 : i32, i32
  }
  func.func @transform_3(%arg0: i32, %arg1: i32, %arg2: i32) -> (i32, i32) {
    %c0_i32 = arith.constant 0 : i32
    return %arg0, %arg1 : i32, i32
  }
}

module attributes {stable_mosaic.version = 11 : i64} {
  func.func @_linear_kernel(%arg0: i32, %arg1: i32, %arg2: i32, %arg3: memref<16x32xbf16, #tpu.memory_space<vmem>>, %arg4: memref<32x128xbf16, #tpu.memory_space<vmem>>, %arg5: memref<1x128xf32, #tpu.memory_space<vmem>>, %arg6: memref<16x128xf32, #tpu.memory_space<vmem>>, %arg7: memref<16x128xf32, #tpu.memory_space<vmem>>) attributes {dimension_semantics = [#tpu.dimension_semantics<parallel>, #tpu.dimension_semantics<parallel>, #tpu.dimension_semantics<arbitrary>], iteration_bounds = array<i64: 1, 1, 1>, scalar_prefetch = 0 : i64, scratch_operands = 1 : i64, tpu.core_type = #tpu.core_type<tc>, window_params = [{transform_indices = @transform_0, window_bounds = array<i64: 16, 32>}, {transform_indices = @transform_1, window_bounds = array<i64: 32, 128>}, {transform_indices = @transform_2, window_bounds = array<i64: 1, 128>}, {transform_indices = @transform_3, window_bounds = array<i64: 16, 128>}]} {
    %c0_i32 = arith.constant 0 : i32
    %0 = arith.cmpi eq, %arg2, %c0_i32 : i32
    %1 = arith.extui %0 : i1 to i32
    %c0_i32_0 = arith.constant 0 : i32
    %2 = arith.cmpi ne, %1, %c0_i32_0 : i32
    scf.if %2 {
      %cst_10 = arith.constant 0.000000e+00 : f32
      %12 = vector.broadcast %cst_10 : f32 to vector<16x128xf32>
      %c0_11 = arith.constant 0 : index
      %c0_12 = arith.constant 0 : index
      %13 = vector.load %arg7[%c0_11, %c0_12] : memref<16x128xf32, #tpu.memory_space<vmem>>, vector<16x128xf32>
      tpu.vector_store %arg7[%c0_11, %c0_12], %12 {strides = array<i32>} : memref<16x128xf32, #tpu.memory_space<vmem>>, vector<16x128xf32>,
    } else {
    }
    %c0 = arith.constant 0 : index
    %c0_1 = arith.constant 0 : index
    %3 = vector.load %arg7[%c0, %c0_1] : memref<16x128xf32, #tpu.memory_space<vmem>>, vector<16x128xf32>
    %c0_2 = arith.constant 0 : index
    %c0_3 = arith.constant 0 : index
    %4 = vector.load %arg3[%c0_2, %c0_3] : memref<16x32xbf16, #tpu.memory_space<vmem>>, vector<16x32xbf16>
    %c0_4 = arith.constant 0 : index
    %c0_5 = arith.constant 0 : index
    %5 = vector.load %arg4[%c0_4, %c0_5] : memref<32x128xbf16, #tpu.memory_space<vmem>>, vector<32x128xbf16>
    %cst = arith.constant dense<0.000000e+00> : vector<16x128xf32>
    %6 = tpu.matmul %4, %5, %cst {dimension_numbers = #tpu.dot_dimension_numbers<[1], [0], [0], [1], [0, 0, 1, 1], [], []>} : vector<16x32xbf16>, vector<32x128xbf16>, vector<16x128xf32> -> vector<16x128xf32>
    %7 = arith.addf %3, %6 : vector<16x128xf32>
    %c0_6 = arith.constant 0 : index
    %c0_7 = arith.constant 0 : index
    %8 = vector.load %arg7[%c0_6, %c0_7] : memref<16x128xf32, #tpu.memory_space<vmem>>, vector<16x128xf32>
    tpu.vector_store %arg7[%c0_6, %c0_7], %7 {strides = array<i32>} : memref<16x128xf32, #tpu.memory_space<vmem>>, vector<16x128xf32>,
    %c0_i32_8 = arith.constant 0 : i32
    %9 = arith.cmpi eq, %arg2, %c0_i32_8 : i32
    %10 = arith.extui %9 : i1 to i32
    %c0_i32_9 = arith.constant 0 : i32
    %11 = arith.cmpi ne, %10, %c0_i32_9 : i32
    scf.if %11 {
      %c0_10 = arith.constant 0 : index
      %c0_11 = arith.constant 0 : index
      %12 = vector.load %arg7[%c0_10, %c0_11] : memref<16x128xf32, #tpu.memory_space<vmem>>, vector<16x128xf32>
      %c0_12 = arith.constant 0 : index
      %c0_13 = arith.constant 0 : index
      %13 = vector.load %arg5[%c0_12, %c0_13] : memref<1x128xf32, #tpu.memory_space<vmem>>, vector<1x128xf32>
      %14 = vector.broadcast %13 : vector<1x128xf32> to vector<16x128xf32>
      %15 = arith.addf %12, %14 : vector<16x128xf32>
      %c0_14 = arith.constant 0 : index
      %c0_15 = arith.constant 0 : index
      %16 = vector.load %arg6[%c0_14, %c0_15] : memref<16x128xf32, #tpu.memory_space<vmem>>, vector<16x128xf32>
      tpu.vector_store %arg6[%c0_14, %c0_15], %15 {strides = array<i32>} : memref<16x128xf32, #tpu.memory_space<vmem>>, vector<16x128xf32>,
    } else {
    }
    return
  }
  func.func @transform_0(%arg0: i32, %arg1: i32, %arg2: i32) -> (i32, i32) {
    %c0_i32 = arith.constant 0 : i32
    return %arg0, %arg2 : i32, i32
  }
  func.func @transform_1(%arg0: i32, %arg1: i32, %arg2: i32) -> (i32, i32) {
    %c0_i32 = arith.constant 0 : i32
    return %arg2, %arg1 : i32, i32
  }
  func.func @transform_2(%arg0: i32, %arg1: i32, %arg2: i32) -> (i32, i32) {
    %c0_i32 = arith.constant 0 : i32
    %c0_i32_0 = arith.constant 0 : i32
    return %c0_i32, %arg1 : i32, i32
  }
  func.func @transform_3(%arg0: i32, %arg1: i32, %arg2: i32) -> (i32, i32) {
    %c0_i32 = arith.constant 0 : i32
    return %arg0, %arg1 : i32, i32
  }
}

</mosaic_0001>

<bundles_post_ra>
// kernel: _lambda_.45
= control target key start
LH: loop header
LB: loop body
LE: loop exit
PB: predicated region body
PF: predicated region fallthrough
CT: control target
= control target key end

     0   :  { %vm19_vm0 = vcmask 261120   ;;  %v150_v0 = vmov 0.0   ;;  %vm151_vm1 = vmmov 0   ;;  %vm118_vm2 = vcmask 257024   ;;  %s195_s1 = inlined_call_operand.vmem [shape: bf16[32,32], index: 1, kind: input, shape index: {}]   ;;  %s196_s0 = inlined_call_operand.vmem [shape: bf16[16,32], index: 0, kind: input, shape index: {}]   ;;  %s197_s2 = inlined_call_operand.vmem [shape: f32[1,32], index: 2, kind: input, shape index: {}]   ;;  %s198_s3 = inlined_call_operand.vmem [shape: bf16[16,32], index: 3, kind: output, shape index: {}]  }
   0x1   :  { %137 = vmatprep.subr.bf16.mxu0 %v150_v0  ;;  %v147_v1 = vld [vmem:[%s195_s1] sm:$0xff]   ;;  %141 = vmatprep.mubr.msk.bf16.mxu0 %vm151_vm1, %v150_v0  ;;  %20 = vst.msk [vmem:[#allocation2] sm:$0xff] %vm19_vm0, %v150_v0  ;;  %21 = vst.msk [vmem:[#allocation2 + $0x8] sm:$0xff] %vm19_vm0, %v150_v0  ;;  %v148_v2 = vld [vmem:[%s195_s1 + $0x8] sm:$0xff]  }
   0x2   :  { %138 = vmatpush3.bf16.msra.mxu0 %v147_v1  ;;  %v149_v3 = vld [vmem:[%s196_s0] sm:$0xff]  }
   0x3   :  { %139 = vmatprep.subr.bf16.mxu0 %v150_v0  ;;  %v129_v12 = vld [vmem:[%s197_s2] ss:$0 sm:$0xff] }
   0x6   :  { %140 = vmatpush3.bf16.msra.mxu0 %v148_v2 }
   0x8   :  { %v22_v4 = vld [vmem:[#allocation2] sm:$0xff]  ;;  %v23_v6 = vld [vmem:[#allocation2 + $0x8] sm:$0xff] }
   0x9   :  { %142 = vmatmul.mubr.msk.bf16.vlgmr.msra.gmra.mrb[0].mxu0 %vm19_vm0, %v149_v3 }
  0xdc   :  { %v85_v5 = vpop.f32.mrb[0].mxu0 }
  0xdd   :  { %v92_v7 = vadd.f32 %v85_v5, %v22_v4  ;;  %v143_v8 = vpop.f32.mrb[1].mxu0 }
  0xde   :  { %v88_v9 = vpop.f32.mrb[2].mxu0 }
  0xdf   :  { %94 = vst.msk [vmem:[#allocation2] sm:$0xff] %vm19_vm0, %v92_v7  ;;  %v93_v10 = vadd.f32 %v88_v9, %v23_v6  ;;  %v144_v11 = vpop.f32.mrb[3].mxu0 }
  0xe1   :  { %95 = vst.msk [vmem:[#allocation2 + $0x8] sm:$0xff] %vm19_vm0, %v93_v10 }
  0xe6   :  { %v99_v13 = vld [vmem:[#allocation2] sm:$0xff] }
  0xe7   :  { %v108_v14 = vadd.f32 %v129_v12, %v99_v13 }
  0xe8   :  { %v100_v15 = vld [vmem:[#allocation2 + $0x8] sm:$0xff] }
  0xe9   :  { %v132_v16 = vpack.c.bf16 %v108_v14, %v108_v14  ;;  %v109_v17 = vadd.f32 %v129_v12, %v100_v15 }
  0xeb   :  { %119 = vst.msk [vmem:[%s198_s3] sm:$0xf] %vm118_vm2, %v132_v16  ;;  %v133_v18 = vpack.c.bf16 %v109_v17, %v109_v17 }
  0xed   :  { %120 = vst.msk [vmem:[%s198_s3 + $0x4] sm:$0xf] %vm118_vm2, %v133_v18 }

// kernel: _lambda_.61
= control target key start
LH: loop header
LB: loop body
LE: loop exit
PB: predicated region body
PF: predicated region fallthrough
CT: control target
= control target key end

     0   :  { %vm19_vm0 = vcmask 785408   ;;  %v151_v0 = vmov 0.0   ;;  %vm152_vm1 = vmmov 0   ;;  %vm47_vm2 = vcmask 261120   ;;  %s195_s1 = inlined_call_operand.vmem [shape: bf16[32,96], index: 1, kind: input, shape index: {}]   ;;  %s196_s0 = inlined_call_operand.vmem [shape: bf16[16,32], index: 0, kind: input, shape index: {}]   ;;  %s197_s2 = inlined_call_operand.vmem [shape: f32[1,96], index: 2, kind: input, shape index: {}]   ;;  %s198_s3 = inlined_call_operand.vmem [shape: bf16[16,96], index: 3, kind: output, shape index: {}]  }
   0x1   :  { %138 = vmatprep.subr.bf16.mxu0 %v151_v0  ;;  %v148_v1 = vld [vmem:[%s195_s1] sm:$0xff]   ;;  %142 = vmatprep.mubr.msk.bf16.mxu0 %vm152_vm1, %v151_v0  ;;  %20 = vst.msk [vmem:[#allocation2] sm:$0xff] %vm19_vm0, %v151_v0  ;;  %21 = vst.msk [vmem:[#allocation2 + $0x8] sm:$0xff] %vm19_vm0, %v151_v0  ;;  %v149_v2 = vld [vmem:[%s195_s1 + $0x8] sm:$0xff]   ;;  %vm119_vm3 = vcmask 781312  }
   0x2   :  { %139 = vmatpush3.bf16.msra.mxu0 %v148_v1  ;;  %v150_v3 = vld [vmem:[%s196_s0] sm:$0xff]  }
   0x3   :  { %140 = vmatprep.subr.bf16.mxu0 %v151_v0  ;;  %v130_v12 = vld [vmem:[%s197_s2] ss:$0 sm:$0xff] }
   0x6   :  { %141 = vmatpush3.bf16.msra.mxu0 %v149_v2 }
   0x8   :  { %v22_v4 = vld [vmem:[#allocation2] sm:$0xff]  ;;  %v23_v6 = vld [vmem:[#allocation2 + $0x8] sm:$0xff] }
   0x9   :  { %143 = vmatmul.mubr.msk.bf16.vlgmr.msra.gmra.mrb[0].mxu0 %vm47_vm2, %v150_v3 }
  0xdc   :  { %v85_v5 = vpop.f32.mrb[0].mxu0 }
  0xdd   :  { %v92_v7 = vadd.f32 %v85_v5, %v22_v4  ;;  %v144_v8 = vpop.f32.mrb[1].mxu0 }
  0xde   :  { %v88_v9 = vpop.f32.mrb[2].mxu0 }
  0xdf   :  { %95 = vst.msk [vmem:[#allocation2] sm:$0xff] %vm19_vm0, %v92_v7  ;;  %v93_v10 = vadd.f32 %v88_v9, %v23_v6  ;;  %v145_v11 = vpop.f32.mrb[3].mxu0 }
  0xe1   :  { %96 = vst.msk [vmem:[#allocation2 + $0x8] sm:$0xff] %vm19_vm0, %v93_v10 }
  0xe6   :  { %v100_v13 = vld [vmem:[#allocation2] sm:$0xff] }
  0xe7   :  { %v109_v14 = vadd.f32 %v130_v12, %v100_v13 }
  0xe8   :  { %v101_v15 = vld [vmem:[#allocation2 + $0x8] sm:$0xff] }
  0xe9   :  { %v133_v16 = vpack.c.bf16 %v109_v14, %v109_v14  ;;  %v110_v17 = vadd.f32 %v130_v12, %v101_v15 }
  0xeb   :  { %120 = vst.msk [vmem:[%s198_s3] sm:$0xf] %vm119_vm3, %v133_v16  ;;  %v134_v18 = vpack.c.bf16 %v110_v17, %v110_v17 }
  0xed   :  { %121 = vst.msk [vmem:[%s198_s3 + $0x4] sm:$0xf] %vm119_vm3, %v134_v18 }

// kernel: _lambda_.64
= control target key start
LH: loop header
LB: loop body
LE: loop exit
PB: predicated region body
PF: predicated region fallthrough
CT: control target
= control target key end

     0   :  { %vm27_vm0 = vcmask 261120   ;;  %vm81_vm1 = vcmask 257024   ;;  %s153_s0 = inlined_call_operand.vmem [shape: bf16[16,32], index: 0, kind: input, shape index: {}]   ;;  %s154_s1 = inlined_call_operand.vmem [shape: bf16[16,32], index: 1, kind: input, shape index: {}]   ;;  %s155_s2 = inlined_call_operand.vmem [shape: f32[1,32], index: 2, kind: input, shape index: {}]   ;;  %s156_s3 = inlined_call_operand.vmem [shape: f32[1,32], index: 3, kind: input, shape index: {}]   ;;  %s157_s4 = inlined_call_operand.vmem [shape: bf16[16,32], index: 4, kind: output, shape index: {}]  }
   0x1   :  { %v95_v0 = vld [vmem:[%s153_s0] sm:$0xff]  }
   0x2   :  { %v99_v1 = vld [vmem:[%s154_s1] sm:$0xff]   ;;  %v96_v2 = vunpack.c.l.bf16 %v95_v0  ;;  %v97_v4 = vunpack.c.h.bf16 %v95_v0 }
   0x3   :  { %v100_v3 = vunpack.c.l.bf16 %v99_v1  ;;  %v101_v5 = vunpack.c.h.bf16 %v99_v1  ;;  %v88_v27 = vld [vmem:[%s155_s2] ss:$0 sm:$0xff] }
   0x4   :  { %v89_v29 = vld [vmem:[%s156_s3] ss:$0 sm:$0xff] }
   0x5   :  { %v25_v6 = vadd.f32 %v100_v3, %v96_v2  ;;  %v26_v7 = vadd.f32 %v101_v5, %v97_v4 }
   0x7   :  { %v28_v8 = vsel %vm27_vm0, %v25_v6, 0.0  ;;  %v31_v9 = vsel %vm27_vm0, %v26_v7, 0.0 }
   0x8   :  { %29 = vadd.xlane.f32.xlu0 %v28_v8 }
   0xc   :  { %32 = vadd.xlane.f32.xlu0 %v31_v9 }
  0x95   :  { %v30_v10 = vpop.xlane.xlu0 %29 }
  0x96   :  { %v35_v11 = vmul.f32 0.03125, %v30_v10 }
  0x98   :  { %v37_v12 = vsub.f32 %v25_v6, %v35_v11 }
  0x99   :  { %v33_v13 = vpop.xlane.xlu0 %32 }
  0x9a   :  { %v36_v14 = vmul.f32 0.03125, %v33_v13  ;;  %v39_v15 = vmul.f32 %v37_v12, %v37_v12 }
  0x9c   :  { %v38_v16 = vsub.f32 %v26_v7, %v36_v14  ;;  %v41_v17 = vsel %vm27_vm0, %v39_v15, 0.0 }
  0x9d   :  { %42 = vadd.xlane.f32.xlu1 %v41_v17 }
  0x9e   :  { %v40_v18 = vmul.f32 %v38_v16, %v38_v16 }
  0xa0   :  { %v44_v19 = vsel %vm27_vm0, %v40_v18, 0.0 }
  0xa1   :  { %45 = vadd.xlane.f32.xlu1 %v44_v19 }
 0x12a   :  { %v43_v20 = vpop.xlane.xlu1 %42 }
 0x12b   :  { %v47_v21 = vmul.f32 0.03125, %v43_v20 }
 0x12d   :  { %v49_v22 = vadd.f32 1e-05, %v47_v21 }
 0x12e   :  { %v46_v23 = vpop.xlane.xlu1 %45 }
 0x12f   :  { %102 = vrsqrt.f32 %v49_v22  ;;  %v48_v24 = vmul.f32 0.03125, %v46_v23 }
 0x131   :  { %v50_v25 = vadd.f32 1e-05, %v48_v24 }
 0x133   :  { %104 = vrsqrt.f32 %v50_v25 }
 0x139   :  { %v103_v26 = vpop.eup %102 }
 0x13a   :  { %v53_v28 = vmul.f32 %v103_v26, %v37_v12 }
 0x13c   :  { %v62_v30 = vmul.f32 %v88_v27, %v53_v28 }
 0x13d   :  { %v105_v31 = vpop.eup %104 }
 0x13e   :  { %v71_v32 = vadd.f32 %v89_v29, %v62_v30  ;;  %v54_v33 = vmul.f32 %v105_v31, %v38_v16 }
 0x140   :  { %v92_v34 = vpack.c.bf16 %v71_v32, %v71_v32  ;;  %v63_v35 = vmul.f32 %v88_v27, %v54_v33 }
 0x142   :  { %82 = vst.msk [vmem:[%s157_s4] sm:$0xf] %vm81_vm1, %v92_v34  ;;  %v72_v36 = vadd.f32 %v89_v29, %v63_v35 }
 0x144   :  { %v93_v37 = vpack.c.bf16 %v72_v36, %v72_v36 }
 0x146   :  { %83 = vst.msk [vmem:[%s157_s4 + $0x4] sm:$0xf] %vm81_vm1, %v93_v37 }

// kernel: _lambda_.62
= control target key start
LH: loop header
LB: loop body
LE: loop exit
PB: predicated region body
PF: predicated region fallthrough
CT: control target
= control target key end

     0   :  { %s2213_s12 = smov 0   ;;  %s2215_s13 = smov 0   ;;  %s2463_s0 = inlined_call_operand.vmem [shape: bf16[2,8,32], index: 0, kind: input, shape index: {}]   ;;  %s2464_s1 = inlined_call_operand.vmem [shape: bf16[2,8,32], index: 1, kind: input, shape index: {}]   ;;  %s2465_s2 = inlined_call_operand.vmem [shape: bf16[2,8,32], index: 2, kind: input, shape index: {}]   ;;  %s2466_s3 = inlined_call_operand.vmem [shape: bf16[2,8,32], index: 3, kind: output, shape index: {}]  }
   0x1   :  { %s2217_s14 = smov 0  }
   0x2 LB: > { %s25_s15 = sadd.s32 1, %s2178_s13  ;;  %p1958_p0 = scmp.ge.s32.totalorder %s2182_s14, 1  ;;  %s2182_s14 = sphi %s2217_s14, %s13_s14   ;;  %s2178_s13 = sphi %s2215_s13, %s2468_s13   ;;  %s2174_s12 = sphi %s2213_s12, %s2467_s12  }
   0x3   : > { %p27_p1 = scmp.ge.s32.totalorder %s25_s15, 2  ;;  %p183_p2 = scmp.lt.s32.totalorder %s2182_s14, 3 }
   0x5   : > { %s2470_s15 = smov (%p27_p1, %s25_s15), 0  ;;  %p184_p3 = pnand %p1958_p0, %p183_p2 }
   0x6   : > { %p225_p4 = scmp.lt.s32.totalorder (!%p184_p3), %s2174_s12, 1  ;;  %vm257_vm0 = vcmask (!%p184_p3), 64512   ;;  %v2184_v0 = vmov (!%p184_p3), 0.0   ;;  %vm2185_vm1 = vmmov (!%p184_p3), 0   ;;  %s2186_s26 = smov (!%p184_p3), 120   ;;  %vm262_vm2 = vcmask (!%p184_p3), 57344  }
   0x7   : > { %187 = sbr.rel (%p184_p3) target bundleno = 855 (0x357), region = 32  ;;  %2027 = vmatprep.subr.mxu0 (!%p184_p3), %v2184_v0  ;;  %258 = vst.msk [vmem:[#allocation2] sm:$0xff] (!%p184_p3), %vm257_vm0, %v2184_v0  ;;  %259 = vst.msk [vmem:[#allocation2 + $0x8] sm:$0xff] (!%p184_p3), %vm257_vm0, %v2184_v0  ;;  %2029 = vmatprep.mubr.msk.f32.mxu0 (!%p184_p3), %vm2185_vm1, %v2184_v0  ;;  %s2187_s27 = smov (!%p184_p3), 112   ;;  %v285_v34 = vlaneseq (!%p184_p3)  ;;  %vm1024_vm6 = vcmask (!%p184_p3), 130112   ;;  %vm531_vm7 = vcmask (!%p184_p3), 60416  }
   0x8   : > { %260 = vst.msk [vmem:[#allocation2 + $0x10] sm:$0xff] (!%p184_p3), %vm257_vm0, %v2184_v0  ;;  %261 = vst.msk [vmem:[#allocation2 + $0x18] sm:$0xff] (!%p184_p3), %vm257_vm0, %v2184_v0  ;;  %2032 = vmatprep.subr.mxu1 (!%p184_p3), %v2184_v0  ;;  %2034 = vmatprep.mubr.msk.f32.mxu1 (!%p184_p3), %vm2185_vm1, %v2184_v0  ;;  %s2188_s28 = smov (!%p184_p3), 104   ;;  %s2189_s29 = smov (!%p184_p3), 8   ;;  %v2192_v54 = vmov (!%p184_p3), 1966171168  }
   0x9   : > { %263 = vst.msk [vmem:[#allocation3] sm:$0x1] (!%p184_p3), %vm262_vm2, %v2184_v0  ;;  %264 = vst.msk [vmem:[#allocation3 + $0x1] sm:$0x1] (!%p184_p3), %vm262_vm2, %v2184_v0  ;;  %s2190_s30 = smov (!%p184_p3), 16   ;;  %s2191_s4 = smov (!%p184_p3), 24   ;;  %v1034_v55 = vunpack.c.l.s4 (!%p184_p3), %v2192_v54 }
   0xa   : > { %265 = vst.msk [vmem:[#allocation3 + $0x2] sm:$0x1] (!%p184_p3), %vm262_vm2, %v2184_v0  ;;  %266 = vst.msk [vmem:[#allocation3 + $0x3] sm:$0x1] (!%p184_p3), %vm262_vm2, %v2184_v0  ;;  %v2304_v35 = vshrl.u32 (!%p184_p3), %v285_v34, 7  ;;  %v2306_v36 = vand.u32 (!%p184_p3), 127, %v285_v34 }
   0xb   : > { %v1035_v57 = vunpack.c.0.s8 (!%p184_p3), %v1034_v55  ;;  %vm1423_vm8 = vcmask (!%p184_p3), 195712   ;;  %vm1822_vm9 = vcmask (!%p184_p3), 261312   ;;  %vm912_vm10 = vcmask (!%p184_p3), 126016  }
   0xc   : > { %vm289_vm5 = vcmp.le.s32.totalorder (!%p184_p3), %v2306_v36, %v2304_v35  ;;  %vm1311_vm11 = vcmask (!%p184_p3), 191616   ;;  %vm1710_vm12 = vcmask (!%p184_p3), 257216  }
   0xd   : > { %v2371_v60 = vsub.s32 (!%p184_p3), %v1035_v57, %v2304_v35 }
   0xe   : > { %s2472_s12 = smov (!%p225_p4, %s2174_s12), 1  ;;  %v2312_v40 = vld [vmem:[#allocation2] sm:$0xff] }
   0xf   : > { %s2245_s16 = sshll.u32 %s2472_s12, 2 }
  0x10   : > { %s238_s19 = scalar_lea.vmem %s2464_s1, %s2245_s16  ;;  %s231_s22 = scalar_lea.vmem %s2463_s0, %s2245_s16  ;;  %v641_v23 = vld [vmem:[#allocation3] sm:$0x1]  ;;  %v1969_v31 = vld [vmem:[#allocation3 + $0x1] ss:$0 sm:$0xff] }
  0x11   : > { %v275_v1 = vld [vmem:[%s238_s19] sm:$0xf]  ;;  %s245_s25 = scalar_lea.vmem %s2465_s2, %s2245_s16  ;;  %s2430_s7 = scalar_lea.vmem %s2466_s3, %s2245_s16 }
  0x12   : > { %v267_v2 = vld [vmem:[%s231_s22] sm:$0xf]  ;;  %v276_v3 = vunpack.c.l.bf16 %v275_v1 }
  0x13   : > { %v268_v4 = vunpack.c.l.bf16 %v267_v2  ;;  %v283_v5 = vld [vmem:[%s245_s25] sm:$0xf] }
  0x14   : > { %v284_v6 = vunpack.c.l.bf16 %v283_v5  ;;  %v279_v7 = vmin.f32 %v276_v3, 0.0  ;;  %v278_v11 = vadd.f32 1.0, %v276_v3  ;;  %vm277_vm3 = vcmp.gt.f32.partialorder %v276_v3, 0.0  ;;  %v1963_v26 = vld [vmem:[#allocation3] ss:$0 sm:$0xff] }
  0x15   : > { %v271_v8 = vmin.f32 %v268_v4, 0.0  ;;  %v270_v12 = vadd.f32 1.0, %v268_v4  ;;  %vm269_vm4 = vcmp.gt.f32.partialorder %v268_v4, 0.0  ;;  %v1976_v32 = vld [vmem:[#allocation3 + $0x2] ss:$0 sm:$0xff] }
  0x16   : > { %752 = vrot.lane.b32.xlu1 %v284_v6, %s2186_s26  ;;  %2033 = vmatpush3.msra.mxu1 %v284_v6  ;;  %v280_v9 = vmul.f32 1.442695, %v279_v7  ;;  %v1983_v33 = vld [vmem:[#allocation3 + $0x3] ss:$0 sm:$0xff] }
  0x17   : > { %2037 = vmatprep.subr.mxu1 %v2184_v0  ;;  %v272_v10 = vmul.f32 1.442695, %v271_v8 }
  0x18   : > { %2148 = vpow2.f32 %v280_v9 }
  0x19   : > { %2150 = vpow2.f32 %v272_v10 }
  0x1a   : > { %1151 = vrot.lane.b32.xlu1 %v284_v6, %s2187_s27 }
  0x22   : > { %v2149_v13 = vpop.eup %2148 }
  0x23   : > { %v2151_v14 = vpop.eup %2150  ;;  %v2270_v15 = vsel %vm277_vm3, %v278_v11, %v2149_v13 }
  0x24   : > { %674 = vrot.lane.b32.xlu0 %v2270_v15, %s2186_s26  ;;  %2028 = vmatpush3.xpose.msk.msra.mxu0 %vm257_vm0, %v2270_v15  ;;  %v2276_v16 = vsel %vm269_vm4, %v270_v12, %v2151_v14  ;;  %v642_v17 = vsel %vm257_vm0, %v2270_v15, 0.0  ;;  %v1025_v50 = vsel %vm1024_vm6, %v2270_v15, 0.0  ;;  %v1023_v14 = vld [vmem:[#allocation3 + $0x1] sm:$0x1]  ;;  %v1424_v57 = vsel %vm1423_vm8, %v2270_v15, 0.0 }
  0x25   : > { %672 = vrot.lane.b32.xlu1 %v2276_v16, %s2186_s26  ;;  %v643_v18 = vrot.slane %v642_v17, 4  ;;  %2042 = vmatprep.subr.mxu0 %v2184_v0  ;;  %v298_v29 = vmul.f32 %v1963_v26, %v2276_v16  ;;  %v1026_v51 = vrot.slane %v1025_v50, 4 }
  0x27   : > { %2030 = vmatmul.mubr.msk.f32.vlgmr.msra.gmra.mrb[0].mxu0 %vm257_vm0, %v2276_v16  ;;  %v644_v19 = vadd.f32 %v643_v18, %v642_v17  ;;  %v300_v30 = vsel %vm257_vm0, %v298_v29, 0.0  ;;  %v1027_v52 = vadd.f32 %v1026_v51, %v1025_v50 }
  0x28   : > { %1074 = vrot.lane.b32.xlu0 %v2270_v15, %s2187_s27  ;;  %2043 = vmatpush3.msra.mxu0 %v284_v6 }
  0x29   : > { %1471 = vrot.lane.b32.xlu1 %v2276_v16, %s2188_s28  ;;  %v645_v20 = vrot.slane %v644_v19, 2  ;;  %2044 = vmatprep.mubr.msk.f32.mxu0 %vm2185_vm1, %v2184_v0  ;;  %v1028_v53 = vrot.slane %v1027_v52, 2 }
  0x2a   : > { %2052 = vmatprep.subr.mxu0 %v2184_v0 }
  0x2b   : > { %v646_v21 = vadd.f32 %v645_v20, %v644_v19  ;;  %v1029_v56 = vadd.f32 %v1028_v53, %v1027_v52 }
  0x2c   : > { %1072 = vrot.lane.b32.xlu0 %v2276_v16, %s2187_s27 }
  0x2d   : > { %v647_v22 = vrot.slane %v646_v21, 1  ;;  %v1030_v58 = vrot.slane %v1029_v56, 1 }
  0x2f   : > { %v648_v24 = vadd.f32 %v647_v22, %v646_v21  ;;  %v1031_v61 = vadd.f32 %v1030_v58, %v1029_v56  ;;  %v1425_v58 = vrot.slane %v1424_v57, 4 }
  0x30   : > { %1473 = vrot.lane.b32.xlu0 %v2270_v15, %s2188_s28 }
  0x31   : > { %v649_v25 = vadd.f32 %v648_v24, %v641_v23  ;;  %v1039_v1 = vrot.slane %v1031_v61, %v2371_v60  ;;  %v653_v23 = vld [vmem:[#allocation2 + $0x8] sm:$0xff] }
  0x33   : > { %651 = vst.msk [vmem:[#allocation3] sm:$0x1] %vm262_vm2, %v649_v25  ;;  %v1046_v4 = vrot.slane %v1039_v1, %v2371_v60 }
  0x88   : > { %v753_v38 = vpop.permute.xlu1 %752 }
  0x8c   : > { %v2325_v44 = vpop.permute.xlu1 %1151 }
  0x96   : > { %v675_v27 = vpop.permute.xlu0 %674 }
  0x97   : > { %916 = vxpose.xlu0.b32.start.end [1/1] (short) (narrow) %v675_v27, 8  ;;  %v2333_v45 = vpop.permute.xlu1 %672 }
  0x9a   : > { %v1075_v28 = vpop.permute.xlu0 %1074 }
  0x9b   : > { %534 = vxpose.xlu0.b32.start.end [1/1] (short) (narrow) %v2270_v15, 8  ;;  %1315 = vxpose.xlu1.b32.start.end [1/1] (short) (narrow) %v1075_v28, 8  ;;  %v2341_v47 = vpop.permute.xlu1 %1471 }
  0x9e   : > { %v2308_v37 = vpop.permute.xlu0 %1072 }
  0xa2   : > { %v1474_v41 = vpop.permute.xlu0 %1473 }
  0xc2   : > { %301 = vadd.xlane.f32.xlu1 %v300_v30 }
  0xc4   : > { %1550 = vrot.lane.b32.xlu0 %v284_v6, %s2188_s28 }
  0xc8   : > { %661 = vrot.lane.b32.xlu0 %v1969_v31, %s2189_s29  ;;  %v1053_v31 = vld [vmem:[#allocation2 + $0x10] sm:$0xff] }
  0xcc   : > { %1061 = vrot.lane.b32.xlu0 %v1976_v32, %s2190_s30 }
  0xd3   : > { %1460 = vrot.lane.b32.xlu1 %v1983_v33, %s2191_s4 }
  0xfa   : > { %v375_v39 = vpop.f32.mrb[0].mxu0 }
  0xfb   : > { %v2317_v42 = vsel %vm289_vm5, %v375_v39, 0.0  ;;  %v2031_v43 = vpop.f32.mrb[1].mxu0 }
  0xfc   : > { %2035 = vmatmul.mubr.msk.f32.vlgmr.msra.gmra.mrb[0].mxu1 %vm257_vm0, %v2317_v42  ;;  %1714 = vxpose.xlu1.b32.start.end [1/1] (short) (narrow) %v1474_v41, 8  ;;  %v523_v8 = vsel %vm257_vm0, %v2317_v42, 0.0 }
  0xfd   : > { %2038 = vmatpush3.msra.mxu1 %v2312_v40  ;;  %2039 = vmatprep.mubr.msk.f32.mxu1 %vm2185_vm1, %v2184_v0 }
  0xfe   : > { %2047 = vmatprep.subr.mxu1 %v2184_v0 }
 0x104   : > { %2040 = vmatmul.mubr.msk.f32.vlgmr.msra.gmra.mrb[0].mxu1 %vm257_vm0, %v2276_v16 }
 0x105   : > { %2048 = vmatpush3.xpose.msk.msra.mxu1 %vm257_vm0, %v675_v27  ;;  %2049 = vmatprep.mubr.msk.f32.mxu1 %vm2185_vm1, %v2184_v0 }
 0x106   : > { %2062 = vmatprep.subr.mxu1 %v2184_v0 }
 0x108   : > { %2050 = vmatmul.mubr.msk.f32.vlgmr.msra.gmra.mrb[2].mxu1 %vm257_vm0, %v2333_v45 }
 0x109   : > { %2063 = vmatpush3.msra.mxu1 %v753_v38  ;;  %2064 = vmatprep.mubr.msk.f32.mxu1 %vm2185_vm1, %v2184_v0 }
 0x10a   : > { %2067 = vmatprep.subr.mxu1 %v2184_v0 }
 0x117   : > { %v932_v46 = vpop.trf.xlu0 }
 0x118   : > { %2065 = vmatmul.mubr.msk.f32.vlgmr.msra.gmra.mrb[4].mxu1 %vm257_vm0, %v932_v46 }
 0x119   : > { %2068 = vmatpush3.xpose.msk.msra.mxu1 %vm257_vm0, %v1075_v28  ;;  %2069 = vmatprep.mubr.msk.f32.mxu1 %vm2185_vm1, %v2184_v0 }
 0x11a   : > { %2082 = vmatprep.subr.mxu1 %v2184_v0 }
 0x11b   : > { %v550_v48 = vpop.trf.xlu0  ;;  %v1331_v49 = vpop.trf.xlu1 }
 0x11c   : > { %2045 = vmatmul.mubr.msk.f32.vlgmr.msra.gmra.mrb[2].mxu0 %vm257_vm0, %v550_v48  ;;  %2070 = vmatmul.mubr.msk.f32.vlgmr.msra.gmra.mrb[6].mxu1 %vm257_vm0, %v2308_v37 }
 0x11d   : > { %2053 = vmatpush3.msra.mxu0 %v753_v38  ;;  %2083 = vmatpush3.msra.mxu1 %v2325_v44 }
 0x11e   : > { %2084 = vmatprep.mubr.msk.f32.mxu1 %vm2185_vm1, %v2184_v0  ;;  %2087 = vmatprep.subr.mxu1 %v2184_v0 }
 0x11f   : > { %2054 = vmatprep.mubr.msk.f32.mxu0 %vm2185_vm1, %v2184_v0  ;;  %2057 = vmatprep.subr.mxu0 %v2184_v0 }
 0x120   : > { %2085 = vmatmul.mubr.msk.f32.vlgmr.msra.gmra.mrb[8].mxu1 %vm257_vm0, %v1331_v49  ;;  %v1452_v49 = vld [vmem:[#allocation2 + $0x18] sm:$0xff] }
 0x121   : > { %2089 = vmatprep.mubr.msk.f32.mxu1 %vm2185_vm1, %v2184_v0 }
 0x124   : > { %2088 = vmatpush3.xpose.msk.msra.mxu1 %vm257_vm0, %v1474_v41 }
 0x125   : > { %2102 = vmatprep.subr.mxu1 %v2184_v0 }
 0x127   : > { %2090 = vmatmul.mubr.msk.f32.vlgmr.msra.gmra.mrb[10].mxu1 %vm257_vm0, %v2341_v47 }
 0x128   : > { %2104 = vmatprep.mubr.msk.f32.mxu1 %vm2185_vm1, %v2184_v0 }
 0x136   : > { %v2367_v59 = vpop.permute.xlu0 %1550 }
 0x137   : > { %2103 = vmatpush3.msra.mxu1 %v2367_v59 }
 0x13a   : > { %v662_v62 = vpop.permute.xlu0 %661 }
 0x13b   : > { %v664_v63 = vmul.f32 %v662_v62, %v2276_v16  ;;  %v1426_v62 = vadd.f32 %v1425_v58, %v1424_v57 }
 0x13d   : > { %666 = vrot.lane.b32.xlu0 %v664_v63, %s2186_s26  ;;  %v1427_v63 = vrot.slane %v1426_v62, 2 }
 0x13e   : > { %v1062_v2 = vpop.permute.xlu0 %1061 }
 0x13f   : > { %v1064_v3 = vmul.f32 %v1062_v2, %v2276_v16  ;;  %v1428_v1 = vadd.f32 %v1427_v63, %v1426_v62 }
 0x141   : > { %1066 = vrot.lane.b32.xlu0 %v1064_v3, %s2187_s27  ;;  %v1429_v2 = vrot.slane %v1428_v1, 1 }
 0x143   : > { %v1430_v3 = vadd.f32 %v1429_v2, %v1428_v1 }
 0x145   : > { %1047 = vrot.lane.b32.xlu0 %v1046_v4, %s2186_s26 }
 0x14f   : > { %v302_v5 = vpop.xlane.xlu1 %301 }
 0x153   : > { %v1461_v6 = vpop.permute.xlu1 %1460 }
 0x154   : > { %v1463_v7 = vmul.f32 %v1461_v6, %v2276_v16 }
 0x156   : > { %1465 = vrot.lane.b32.xlu1 %v1463_v7, %s2188_s28 }
 0x164   : > { %524 = vadd.xlane.f32.xlu0 %v523_v8 }
 0x17c   : > { %v1730_v9 = vpop.trf.xlu1 }
 0x17d   : > { %2105 = vmatmul.mubr.msk.f32.vlgmr.msra.gmra.mrb[12].mxu1 %vm257_vm0, %v1730_v9 }
 0x1af   : > { %v667_v10 = vpop.permute.xlu0 %666 }
 0x1b0   : > { %v669_v11 = vsel %vm257_vm0, %v667_v10, 0.0  ;;  %v1438_v10 = vrot.slane %v1430_v3, %v2371_v60 }
 0x1b1   : > { %670 = vadd.xlane.f32.xlu0 %v669_v11 }
 0x1b3   : > { %v1067_v12 = vpop.permute.xlu0 %1066 }
 0x1b4   : > { %v1069_v13 = vsel %vm257_vm0, %v1067_v12, 0.0 }
 0x1b5   : > { %1070 = vadd.xlane.f32.xlu0 %v1069_v13  ;;  %v1445_v13 = vrot.slane %v1438_v10, %v2371_v60 }
 0x1b7   : > { %v1048_v17 = vpop.permute.xlu0 %1047 }
 0x1b8   : > { %v1050_v16 = vadd.f32 %v1048_v17, %v1023_v14  ;;  %v1823_v17 = vsel %vm1822_vm9, %v2270_v15, 0.0 }
 0x1ba   : > { %1051 = vst.msk [vmem:[#allocation3 + $0x1] sm:$0x1] %vm262_vm2, %v1050_v16  ;;  %v1824_v16 = vrot.slane %v1823_v17, 4 }
 0x1c8   : > { %v1466_v18 = vpop.permute.xlu1 %1465 }
 0x1c9   : > { %v1468_v19 = vsel %vm257_vm0, %v1466_v18, 0.0 }
 0x1ca   : > { %1469 = vadd.xlane.f32.xlu1 %v1468_v19  ;;  %v1825_v19 = vadd.f32 %v1824_v16, %v1823_v17 }
 0x1d7   : > { %v519_v20 = vpop.f32.mrb[0].mxu1 }
 0x1d8   : > { %v2041_v21 = vpop.f32.mrb[1].mxu1 }
 0x1d9   : > { %v1826_v21 = vrot.slane %v1825_v19, 2 }
 0x1db   : > { %v746_v22 = vpop.f32.mrb[2].mxu1 }
 0x1dc   : > { %v750_v24 = vsel %vm289_vm5, %v746_v22, 0.0  ;;  %v2051_v25 = vpop.f32.mrb[3].mxu1 }
 0x1dd   : > { %2055 = vmatmul.mubr.msk.f32.vlgmr.msra.gmra.mrb[4].mxu0 %vm257_vm0, %v750_v24  ;;  %v898_v26 = vsel %vm257_vm0, %v750_v24, 0.0 }
 0x1de   : > { %899 = vadd.xlane.f32.xlu1 %v898_v26  ;;  %2058 = vmatpush3.msra.mxu0 %v653_v23 }
 0x1df   : > { %2059 = vmatprep.mubr.msk.f32.mxu0 %vm2185_vm1, %v2184_v0  ;;  %2072 = vmatprep.subr.mxu0 %v2184_v0 }
 0x1e5   : > { %2060 = vmatmul.mubr.msk.f32.vlgmr.msra.gmra.mrb[4].mxu0 %vm257_vm0, %v2333_v45 }
 0x1e6   : > { %2073 = vmatpush3.msra.mxu0 %v2325_v44  ;;  %2074 = vmatprep.mubr.msk.f32.mxu0 %vm2185_vm1, %v2184_v0 }
 0x1e7   : > { %2077 = vmatprep.subr.mxu0 %v2184_v0 }
 0x1eb   : > { %v1017_v27 = vpop.f32.mrb[4].mxu1 }
 0x1ec   : > { %v1021_v28 = vadd.f32 %v1017_v27, %v653_v23  ;;  %v2066_v29 = vpop.f32.mrb[5].mxu1  ;;  %v1827_v27 = vadd.f32 %v1826_v21, %v1825_v19 }
 0x1ee   : > { %1022 = vst.msk [vmem:[#allocation2 + $0x8] sm:$0xff] %vm257_vm0, %v1021_v28  ;;  %v1828_v15 = vrot.slane %v1827_v27, 1 }
 0x1ef   : > { %v1146_v30 = vpop.f32.mrb[6].mxu1  ;;  %v635_v36 = vpop.f32.mrb[2].mxu0 }
 0x1f0   : > { %v1150_v32 = vsel %vm289_vm5, %v1146_v30, 0.0  ;;  %v2071_v33 = vpop.f32.mrb[7].mxu1  ;;  %v639_v52 = vadd.f32 %v635_v36, %v2312_v40  ;;  %v2046_v53 = vpop.f32.mrb[3].mxu0  ;;  %v1829_v29 = vadd.f32 %v1828_v15, %v1827_v27 }
 0x1f1   : > { %v525_v34 = vpop.xlane.xlu0 %524  ;;  %2075 = vmatmul.mubr.msk.f32.vlgmr.msra.gmra.mrb[6].mxu0 %vm257_vm0, %v1150_v32  ;;  %v1297_v38 = vsel %vm257_vm0, %v1150_v32, 0.0 }
 0x1f2   : > { %v526_v39 = vadd.f32 %v525_v34, %v302_v5  ;;  %2078 = vmatpush3.msra.mxu0 %v1053_v31  ;;  %1298 = vadd.xlane.f32.xlu1 %v1297_v38  ;;  %640 = vst.msk [vmem:[#allocation2] sm:$0xff] %vm257_vm0, %v639_v52  ;;  %v1837_v34 = vrot.slane %v1829_v29, %v2371_v60 }
 0x1f3   : > { %v1416_v41 = vpop.f32.mrb[8].mxu1  ;;  %2079 = vmatprep.mubr.msk.f32.mxu0 %vm2185_vm1, %v2184_v0  ;;  %2092 = vmatprep.subr.mxu0 %v2184_v0 }
 0x1f4   : > { %v527_v42 = vadd.f32 1e-06, %v526_v39  ;;  %v1420_v43 = vadd.f32 %v1416_v41, %v1053_v31  ;;  %v2086_v44 = vpop.f32.mrb[9].mxu1  ;;  %v1844_v39 = vrot.slane %v1837_v34, %v2371_v60 }
 0x1f6   : > { %2152 = vrcp.f32 %v527_v42  ;;  %1421 = vst.msk [vmem:[#allocation2 + $0x10] sm:$0xff] %vm257_vm0, %v1420_v43  ;;  %v1422_v42 = vld [vmem:[#allocation3 + $0x2] sm:$0x1] }
 0x1f9   : > { %2080 = vmatmul.mubr.msk.f32.vlgmr.msra.gmra.mrb[6].mxu0 %vm257_vm0, %v2308_v37 }
 0x1fa   : > { %v1545_v45 = vpop.f32.mrb[10].mxu1  ;;  %2093 = vmatpush3.msra.mxu0 %v2367_v59  ;;  %2094 = vmatprep.mubr.msk.f32.mxu0 %vm2185_vm1, %v2184_v0 }
 0x1fb   : > { %v1549_v46 = vsel %vm289_vm5, %v1545_v45, 0.0  ;;  %v2091_v48 = vpop.f32.mrb[11].mxu1  ;;  %2097 = vmatprep.subr.mxu0 %v2184_v0 }
 0x1fc   : > { %v1696_v50 = vsel %vm257_vm0, %v1549_v46, 0.0  ;;  %v1821_v48 = vld [vmem:[#allocation3 + $0x3] sm:$0x1] }
 0x1fd   : > { %1697 = vadd.xlane.f32.xlu1 %v1696_v50  ;;  %2095 = vmatmul.mubr.msk.f32.vlgmr.msra.gmra.mrb[8].mxu0 %vm257_vm0, %v1549_v46 }
 0x1fe   : > { %2098 = vmatpush3.msra.mxu0 %v1452_v49  ;;  %2099 = vmatprep.mubr.msk.f32.mxu0 %vm2185_vm1, %v2184_v0 }
 0x200   : > { %v2153_v37 = vpop.eup %2152 }
 0x201   : > { %v529_v51 = vmul.f32 %v2153_v37, %v519_v20 }
 0x203   : > { %v530_v35 = vpack.c.bf16 %v529_v51, %v529_v51 }
 0x205   : > { %2100 = vmatmul.mubr.msk.f32.vlgmr.msra.gmra.mrb[8].mxu0 %vm257_vm0, %v2341_v47  ;;  %532 = vst.msk [vmem:[%s2430_s7] sm:$0xf] %vm531_vm7, %v530_v35 }
 0x23e   : > { %v671_v59 = vpop.xlane.xlu0 %670 }
 0x242   : > { %v1071_v4 = vpop.xlane.xlu0 %1070 }
 0x250   : > { %v1815_v0 = vpop.f32.mrb[12].mxu1 }
 0x251   : > { %v1819_v54 = vadd.f32 %v1815_v0, %v1452_v49  ;;  %v2106_v55 = vpop.f32.mrb[13].mxu1 }
 0x253   : > { %1820 = vst.msk [vmem:[#allocation2 + $0x18] sm:$0xff] %vm257_vm0, %v1819_v54 }
 0x257   : > { %v1470_v56 = vpop.xlane.xlu1 %1469 }
 0x26b   : > { %v900_v61 = vpop.xlane.xlu1 %899 }
 0x26c   : > { %v901_v47 = vadd.f32 %v900_v61, %v671_v59 }
 0x26e   : > { %v902_v40 = vadd.f32 1e-06, %v901_v47 }
 0x270   : > { %2154 = vrcp.f32 %v902_v40 }
 0x27a   : > { %v2155_v6 = vpop.eup %2154 }
 0x27f   : > { %v1299_v5 = vpop.xlane.xlu1 %1298 }
 0x280   : > { %v1300_v11 = vadd.f32 %v1299_v5, %v1071_v4 }
 0x282   : > { %v1301_v14 = vadd.f32 1e-06, %v1300_v11 }
 0x284   : > { %2156 = vrcp.f32 %v1301_v14 }
 0x28a   : > { %v1698_v18 = vpop.xlane.xlu1 %1697 }
 0x28b   : > { %v1699_v20 = vadd.f32 %v1698_v18, %v1470_v56 }
 0x28d   : > { %v1700_v22 = vadd.f32 1e-06, %v1699_v20 }
 0x28e   : > { %v2157_v23 = vpop.eup %2156 }
 0x28f   : > { %2158 = vrcp.f32 %v1700_v22 }
 0x299   : > { %v2159_v30 = vpop.eup %2158 }
 0x2b8   : > { %v894_v7 = vpop.f32.mrb[4].mxu0 }
 0x2b9   : > { %v904_v8 = vmul.f32 %v2155_v6, %v894_v7  ;;  %v2061_v9 = vpop.f32.mrb[5].mxu0 }
 0x2bb   : > { %v1992_v12 = vpack.c.bf16 %v904_v8, %v904_v8 }
 0x2bd   : > { %909 = vrot.lane.b32.xlu0 %v1992_v12, %s2189_s29 }
 0x2c1   : > { %1446 = vrot.lane.b32.xlu0 %v1445_v13, %s2187_s27 }
 0x2cc   : > { %v1293_v24 = vpop.f32.mrb[6].mxu0 }
 0x2cd   : > { %v1303_v25 = vmul.f32 %v2157_v23, %v1293_v24  ;;  %v2081_v26 = vpop.f32.mrb[7].mxu0 }
 0x2cf   : > { %v1993_v28 = vpack.c.bf16 %v1303_v25, %v1303_v25 }
 0x2d1   : > { %1308 = vrot.lane.b32.xlu1 %v1993_v28, %s2190_s30 }
 0x2d8   : > { %v1692_v31 = vpop.f32.mrb[8].mxu0 }
 0x2d9   : > { %v1702_v32 = vmul.f32 %v2159_v30, %v1692_v31  ;;  %v2101_v33 = vpop.f32.mrb[9].mxu0 }
 0x2db   : > { %v1994_v38 = vpack.c.bf16 %v1702_v32, %v1702_v32 }
 0x2dd   : > { %1707 = vrot.lane.b32.xlu1 %v1994_v38, %s2191_s4 }
 0x2e1   : > { %1845 = vrot.lane.b32.xlu1 %v1844_v39, %s2188_s28 }
 0x32f   : > { %v910_v41 = vpop.permute.xlu0 %909 }
 0x330   : > { %913 = vst.msk [vmem:[%s2430_s7] sm:$0xf] %vm912_vm10, %v910_v41 }
 0x333   : > { %v1447_v43 = vpop.permute.xlu0 %1446 }
 0x334   : > { %v1449_v44 = vadd.f32 %v1447_v43, %v1422_v42 }
 0x336   : > { %1450 = vst.msk [vmem:[#allocation3 + $0x2] sm:$0x1] %vm262_vm2, %v1449_v44 }
 0x343   : > { %v1309_v45 = vpop.permute.xlu1 %1308 }
 0x344   : > { %1312 = vst.msk [vmem:[%s2430_s7] sm:$0xf] %vm1311_vm11, %v1309_v45 }
 0x34f   : > { %v1708_v46 = vpop.permute.xlu1 %1707 }
 0x350   : > { %1711 = vst.msk [vmem:[%s2430_s7] sm:$0xf] %vm1710_vm12, %v1708_v46 }
 0x353   : > { %v1846_v49 = vpop.permute.xlu1 %1845 }
 0x354   : > { %v1848_v50 = vadd.f32 %v1846_v49, %v1821_v48 }
 0x356   : > { %1849 = vst.msk [vmem:[#allocation3 + $0x3] sm:$0x1] %vm262_vm2, %v1848_v50 }
 0x357 PF: > { %s13_s14 = sadd.s32 1, %s2182_s14   ;;  %s2467_s12 = smov %s2178_s13 }
 0x358   : > { %p10_p5 = scmp.ge.s32.totalorder %s13_s14, 4   ;;  %s2468_s13 = smov %s2470_s15 }
 0x35a   :  { %12 = sbr.rel (!%p10_p5) target bundleno = 2 (0x2), region = 78 }

// kernel: _lambda_.48
= control target key start
LH: loop header
LB: loop body
LE: loop exit
PB: predicated region body
PF: predicated region fallthrough
CT: control target
= control target key end

     0   :  { %s857_s12 = smov 0   ;;  %s859_s13 = smov 0   ;;  %s929_s0 = inlined_call_operand.vmem [shape: bf16[2,8,32], index: 0, kind: input, shape index: {}]   ;;  %s930_s1 = inlined_call_operand.vmem [shape: f32[2,4,8,8], index: 1, kind: input, shape index: {}]   ;;  %s931_s2 = inlined_call_operand.vmem [shape: f32[2,1,32], index: 2, kind: input, shape index: {}]   ;;  %s932_s3 = inlined_call_operand.vmem [shape: bf16[2,8,32], index: 3, kind: output, shape index: {}]  }
   0x1   :  { %s861_s14 = smov 0  }
   0x2 LB: > { %s25_s15 = sadd.s32 1, %s823_s13  ;;  %p713_p0 = scmp.ge.s32.totalorder %s827_s14, 1  ;;  %s827_s14 = sphi %s861_s14, %s13_s14   ;;  %s823_s13 = sphi %s859_s13, %s934_s13   ;;  %s819_s12 = sphi %s857_s12, %s933_s12  }
   0x3   : > { %p27_p1 = scmp.ge.s32.totalorder %s25_s15, 2  ;;  %p173_p2 = scmp.lt.s32.totalorder %s827_s14, 3 }
   0x5   : > { %s936_s15 = smov (%p27_p1, %s25_s15), 0  ;;  %p174_p3 = pnand %p713_p0, %p173_p2 }
   0x6   : > { %p209_p4 = scmp.lt.s32.totalorder (!%p174_p3), %s819_s12, 1  ;;  %v829_v0 = vmov (!%p174_p3), 0.0   ;;  %vm830_vm0 = vmmov (!%p174_p3), 0   ;;  %vm248_vm2 = vcmask (!%p174_p3), 64512   ;;  %s831_s27 = smov (!%p174_p3), 120   ;;  %vm329_vm3 = vcmask (!%p174_p3), 60416  }
   0x7   : > { %177 = sbr.rel (%p174_p3) target bundleno = 488 (0x1e8), region = 32  ;;  %743 = vmatprep.subr.mxu0 (!%p174_p3), %v829_v0  ;;  %745 = vmatprep.mubr.msk.f32.mxu0 (!%p174_p3), %vm830_vm0, %v829_v0  ;;  %s832_s28 = smov (!%p174_p3), 104   ;;  %vm424_vm4 = vcmask (!%p174_p3), 126016   ;;  %vm518_vm5 = vcmask (!%p174_p3), 191616   ;;  %vm612_vm6 = vcmask (!%p174_p3), 257216  }
   0x8   : > { %748 = vmatprep.subr.mxu1 (!%p174_p3), %v829_v0  ;;  %750 = vmatprep.mubr.msk.f32.mxu1 (!%p174_p3), %vm830_vm0, %v829_v0  ;;  %s833_s29 = smov (!%p174_p3), 112   ;;  %s834_s6 = smov (!%p174_p3), 8  }
   0x9   : > { %s835_s7 = smov (!%p174_p3), 16   ;;  %s836_s8 = smov (!%p174_p3), 24  }
   0xe   : > { %s938_s12 = smov (!%p209_p4, %s819_s12), 1 }
   0xf   : > { %s714_s16 = sshll.u32 %s938_s12, 2  ;;  %s731_s20 = sshll.u32 %s938_s12, 5 }
  0x10   : > { %s215_s19 = scalar_lea.vmem %s929_s0, %s714_s16  ;;  %s889_s23 = scalar_lea.vmem %s930_s1, %s731_s20 }
  0x11   : > { %v231_v1 = vld [vmem:[%s215_s19] sm:$0xf]  ;;  %v720_v4 = vld [vmem:[%s889_s23 + $0x8] sm:$0xff]  ;;  %s223_s26 = scalar_lea.vmem %s931_s2, %s938_s12  ;;  %v723_v11 = vld [vmem:[%s889_s23 + $0x10] sm:$0xff]  ;;  %s914_s5 = scalar_lea.vmem %s932_s3, %s714_s16 }
  0x12   : > { %v232_v2 = vunpack.c.l.bf16 %v231_v1  ;;  %v247_v3 = vld [vmem:[%s889_s23] sm:$0xff]  ;;  %749 = vmatpush3.msra.mxu1 %v720_v4  ;;  %v726_v13 = vld [vmem:[%s889_s23 + $0x18] sm:$0xff] }
  0x13   : > { %744 = vmatpush3.msra.mxu0 %v247_v3  ;;  %758 = vmatprep.subr.mxu1 %v829_v0  ;;  %v718_v8 = vld [vmem:[%s223_s26] ss:$0 sm:$0xff] }
  0x14   : > { %v235_v5 = vmin.f32 %v232_v2, 0.0  ;;  %753 = vmatprep.subr.mxu0 %v829_v0  ;;  %v234_v7 = vadd.f32 1.0, %v232_v2  ;;  %vm233_vm1 = vcmp.gt.f32.partialorder %v232_v2, 0.0 }
  0x16   : > { %v236_v6 = vmul.f32 1.442695, %v235_v5 }
  0x18   : > { %795 = vpow2.f32 %v236_v6 }
  0x22   : > { %v796_v9 = vpop.eup %795 }
  0x23   : > { %v238_v10 = vsel %vm233_vm1, %v234_v7, %v796_v9 }
  0x24   : > { %333 = vrot.lane.b32.xlu0 %v238_v10, %s831_s27  ;;  %522 = vrot.lane.b32.xlu1 %v238_v10, %s832_s28  ;;  %v246_v12 = vmul.f32 %v718_v8, %v238_v10 }
  0x25   : > { %746 = vmatmul.mubr.msk.f32.vlgmr.msra.gmra.mrb[0].mxu0 %vm248_vm2, %v238_v10 }
  0x26   : > { %754 = vmatpush3.msra.mxu0 %v723_v11  ;;  %755 = vmatprep.mubr.msk.f32.mxu0 %vm830_vm0, %v829_v0  ;;  %v322_v23 = vsel %vm248_vm2, %v246_v12, 0.0 }
  0x28   : > { %428 = vrot.lane.b32.xlu0 %v238_v10, %s833_s29  ;;  %408 = vrot.lane.b32.xlu1 %v246_v12, %s831_s27 }
  0x2c   : > { %596 = vrot.lane.b32.xlu1 %v246_v12, %s832_s28  ;;  %502 = vrot.lane.b32.xlu0 %v246_v12, %s833_s29 }
  0x96   : > { %v334_v14 = vpop.permute.xlu0 %333  ;;  %v523_v15 = vpop.permute.xlu1 %522 }
  0x97   : > { %751 = vmatmul.mubr.msk.f32.vlgmr.msra.gmra.mrb[0].mxu1 %vm248_vm2, %v334_v14 }
  0x98   : > { %759 = vmatpush3.msra.mxu1 %v726_v13  ;;  %760 = vmatprep.mubr.msk.f32.mxu1 %vm830_vm0, %v829_v0 }
  0x9a   : > { %v429_v16 = vpop.permute.xlu0 %428  ;;  %v409_v17 = vpop.permute.xlu1 %408 }
  0x9b   : > { %756 = vmatmul.mubr.msk.f32.vlgmr.msra.gmra.mrb[2].mxu0 %vm248_vm2, %v429_v16  ;;  %761 = vmatmul.mubr.msk.f32.vlgmr.msra.gmra.mrb[2].mxu1 %vm248_vm2, %v523_v15  ;;  %v411_v18 = vsel %vm248_vm2, %v409_v17, 0.0 }
  0x9c   : > { %412 = vadd.xlane.f32.xlu0 %v411_v18 }
  0x9e   : > { %v597_v19 = vpop.permute.xlu1 %596  ;;  %v503_v20 = vpop.permute.xlu0 %502 }
  0x9f   : > { %v599_v21 = vsel %vm248_vm2, %v597_v19, 0.0  ;;  %v505_v22 = vsel %vm248_vm2, %v503_v20, 0.0 }
  0xa0   : > { %600 = vadd.xlane.f32.xlu0 %v599_v21  ;;  %506 = vadd.xlane.f32.xlu1 %v505_v22 }
  0xa4   : > { %323 = vadd.xlane.f32.xlu0 %v322_v23 }
  0xf8   : > { %v318_v24 = vpop.f32.mrb[0].mxu0 }
  0xf9   : > { %v747_v25 = vpop.f32.mrb[1].mxu0 }
 0x129   : > { %v413_v26 = vpop.xlane.xlu0 %412 }
 0x12a   : > { %v414_v33 = vadd.f32 1e-06, %v413_v26 }
 0x12d   : > { %v601_v27 = vpop.xlane.xlu0 %600  ;;  %v507_v34 = vpop.xlane.xlu1 %506 }
 0x12e   : > { %v602_v35 = vadd.f32 1e-06, %v601_v27  ;;  %v508_v36 = vadd.f32 1e-06, %v507_v34 }
 0x131   : > { %v324_v28 = vpop.xlane.xlu0 %323 }
 0x132   : > { %v325_v29 = vadd.f32 1e-06, %v324_v28 }
 0x134   : > { %797 = vrcp.f32 %v325_v29 }
 0x135   : > { %799 = vrcp.f32 %v414_v33 }
 0x136   : > { %801 = vrcp.f32 %v602_v35 }
 0x137   : > { %803 = vrcp.f32 %v508_v36 }
 0x13e   : > { %v798_v30 = vpop.eup %797 }
 0x13f   : > { %v327_v31 = vmul.f32 %v798_v30, %v318_v24  ;;  %v800_v37 = vpop.eup %799 }
 0x140   : > { %v802_v39 = vpop.eup %801 }
 0x141   : > { %v328_v32 = vpack.c.bf16 %v327_v31, %v327_v31  ;;  %v804_v42 = vpop.eup %803 }
 0x143   : > { %330 = vst.msk [vmem:[%s914_s5] sm:$0xf] %vm329_vm3, %v328_v32 }
 0x16a   : > { %v403_v38 = vpop.f32.mrb[0].mxu1 }
 0x16b   : > { %v416_v40 = vmul.f32 %v800_v37, %v403_v38  ;;  %v752_v41 = vpop.f32.mrb[1].mxu1 }
 0x16d   : > { %v732_v43 = vpack.c.bf16 %v416_v40, %v416_v40 }
 0x16e   : > { %v498_v44 = vpop.f32.mrb[2].mxu0  ;;  %v592_v45 = vpop.f32.mrb[2].mxu1 }
 0x16f   : > { %v510_v46 = vmul.f32 %v804_v42, %v498_v44  ;;  %v604_v47 = vmul.f32 %v802_v39, %v592_v45  ;;  %v757_v48 = vpop.f32.mrb[3].mxu0  ;;  %v762_v49 = vpop.f32.mrb[3].mxu1  ;;  %421 = vrot.lane.b32.xlu1 %v732_v43, %s834_s6 }
 0x171   : > { %v733_v50 = vpack.c.bf16 %v510_v46, %v510_v46  ;;  %v734_v51 = vpack.c.bf16 %v604_v47, %v604_v47 }
 0x173   : > { %515 = vrot.lane.b32.xlu0 %v733_v50, %s835_s7  ;;  %609 = vrot.lane.b32.xlu1 %v734_v51, %s836_s8 }
 0x1e1   : > { %v422_v52 = vpop.permute.xlu1 %421 }
 0x1e2   : > { %425 = vst.msk [vmem:[%s914_s5] sm:$0xf] %vm424_vm4, %v422_v52 }
 0x1e5   : > { %v516_v53 = vpop.permute.xlu0 %515  ;;  %v610_v54 = vpop.permute.xlu1 %609 }
 0x1e6   : > { %519 = vst.msk [vmem:[%s914_s5] sm:$0xf] %vm518_vm5, %v516_v53 }
 0x1e7   : > { %613 = vst.msk [vmem:[%s914_s5] sm:$0xf] %vm612_vm6, %v610_v54 }
 0x1e8 PF: > { %s13_s14 = sadd.s32 1, %s827_s14   ;;  %s933_s12 = smov %s823_s13 }
 0x1e9   : > { %p10_p5 = scmp.ge.s32.totalorder %s13_s14, 4   ;;  %s934_s13 = smov %s936_s15 }
 0x1eb   :  { %12 = sbr.rel (!%p10_p5) target bundleno = 2 (0x2), region = 71 }

// kernel: _lambda_.51
= control target key start
LH: loop header
LB: loop body
LE: loop exit
PB: predicated region body
PF: predicated region fallthrough
CT: control target
= control target key end

     0   :  { %vm25_vm0 = vcmask 261120   ;;  %v270_v0 = vmov 0.0   ;;  %vm271_vm1 = vmmov 0   ;;  %vm140_vm2 = vcmask 523264   ;;  %s340_s1 = inlined_call_operand.vmem [shape: bf16[32,64], index: 1, kind: input, shape index: {}]   ;;  %s341_s3 = inlined_call_operand.vmem [shape: bf16[64,32], index: 3, kind: input, shape index: {}]   ;;  %s342_s0 = inlined_call_operand.vmem [shape: bf16[16,32], index: 0, kind: input, shape index: {}]   ;;  %s343_s2 = inlined_call_operand.vmem [shape: f32[1,64], index: 2, kind: input, shape index: {}]   ;;  %s344_s4 = inlined_call_operand.vmem [shape: f32[1,32], index: 4, kind: input, shape index: {}]   ;;  %s345_s5 = inlined_call_operand.vmem [shape: bf16[16,32], index: 5, kind: output, shape index: {}]  }
   0x1   :  { %241 = vmatprep.subr.bf16.mxu0 %v270_v0  ;;  %v263_v1 = vld [vmem:[%s340_s1] sm:$0xff]   ;;  %245 = vmatprep.mubr.msk.bf16.mxu0 %vm271_vm1, %v270_v0  ;;  %26 = vst.msk [vmem:[#allocation2] sm:$0xff] %vm25_vm0, %v270_v0  ;;  %27 = vst.msk [vmem:[#allocation2 + $0x8] sm:$0xff] %vm25_vm0, %v270_v0  ;;  %v264_v2 = vld [vmem:[%s340_s1 + $0x8] sm:$0xff]   ;;  %vm211_vm3 = vcmask 257024  }
   0x2   :  { %249 = vmatprep.subr.bf16.mxu1 %v270_v0  ;;  %257 = vmatprep.mubr.msk.bf16.mxu1 %vm271_vm1, %v270_v0  ;;  %v266_v3 = vld [vmem:[%s341_s3] sm:$0xff]   ;;  %v267_v5 = vld [vmem:[%s341_s3 + $0x8] sm:$0xff]   ;;  %v268_v6 = vld [vmem:[%s341_s3 + $0x10] sm:$0xff]  }
   0x3   :  { %242 = vmatpush3.bf16.msra.mxu0 %v263_v1  ;;  %v265_v4 = vld [vmem:[%s342_s0] sm:$0xff]   ;;  %250 = vmatpush3.bf16.msra.mxu1 %v266_v3  ;;  %v269_v7 = vld [vmem:[%s341_s3 + $0x18] sm:$0xff]  }
   0x4   :  { %243 = vmatprep.subr.bf16.mxu0 %v270_v0  ;;  %251 = vmatprep.subr.bf16.mxu1 %v270_v0  ;;  %v218_v8 = vld [vmem:[%s343_s2] ss:$0 sm:$0xff] }
   0x5   :  { %v228_v26 = vld [vmem:[%s344_s4] ss:$0 sm:$0xff] }
   0x7   :  { %244 = vmatpush3.bf16.msra.mxu0 %v264_v2  ;;  %252 = vmatpush3.bf16.msra.mxu1 %v267_v5 }
   0x8   :  { %253 = vmatprep.subr.bf16.mxu1 %v270_v0  ;;  %v105_v18 = vld [vmem:[#allocation2] sm:$0xff]  ;;  %v106_v20 = vld [vmem:[#allocation2 + $0x8] sm:$0xff] }
   0xa   :  { %246 = vmatmul.mubr.msk.bf16.vlgmr.msra.gmra.mrb[0].mxu0 %vm25_vm0, %v265_v4 }
   0xb   :  { %254 = vmatpush3.bf16.msra.mxu1 %v268_v6 }
   0xc   :  { %255 = vmatprep.subr.bf16.mxu1 %v270_v0 }
   0xf   :  { %256 = vmatpush3.bf16.msra.mxu1 %v269_v7 }
  0xdd   :  { %v96_v9 = vpop.f32.mrb[0].mxu0 }
  0xde   :  { %v97_v10 = vadd.f32 %v218_v8, %v96_v9  ;;  %v247_v11 = vpop.f32.mrb[1].mxu0 }
  0xdf   :  { %v99_v12 = vpop.f32.mrb[2].mxu0 }
  0xe0   :  { %v100_v13 = vadd.f32 %v218_v8, %v99_v12  ;;  %v248_v14 = vpop.f32.mrb[3].mxu0  ;;  %v103_v15 = vmax.f32 %v97_v10, 0.0 }
  0xe2   :  { %v104_v16 = vmax.f32 %v100_v13, 0.0 }
  0xe4   :  { %v107_v17 = vpack.c.bf16 %v104_v16, %v103_v15 }
  0xe6   :  { %258 = vmatmul.mubr.msk.bf16.vlgmr.msra.gmra.mrb[0].mxu1 %vm140_vm2, %v107_v17 }
 0x1b9   :  { %v178_v19 = vpop.f32.mrb[0].mxu1 }
 0x1ba   :  { %v185_v21 = vadd.f32 %v178_v19, %v105_v18  ;;  %v259_v22 = vpop.f32.mrb[1].mxu1 }
 0x1bb   :  { %v181_v23 = vpop.f32.mrb[2].mxu1 }
 0x1bc   :  { %187 = vst.msk [vmem:[#allocation2] sm:$0xff] %vm25_vm0, %v185_v21  ;;  %v186_v24 = vadd.f32 %v181_v23, %v106_v20  ;;  %v260_v25 = vpop.f32.mrb[3].mxu1 }
 0x1be   :  { %188 = vst.msk [vmem:[#allocation2 + $0x8] sm:$0xff] %vm25_vm0, %v186_v24 }
 0x1c3   :  { %v192_v27 = vld [vmem:[#allocation2] sm:$0xff] }
 0x1c4   :  { %v201_v28 = vadd.f32 %v228_v26, %v192_v27 }
 0x1c5   :  { %v193_v29 = vld [vmem:[#allocation2 + $0x8] sm:$0xff] }
 0x1c6   :  { %v231_v30 = vpack.c.bf16 %v201_v28, %v201_v28  ;;  %v202_v31 = vadd.f32 %v228_v26, %v193_v29 }
 0x1c8   :  { %212 = vst.msk [vmem:[%s345_s5] sm:$0xf] %vm211_vm3, %v231_v30  ;;  %v232_v32 = vpack.c.bf16 %v202_v31, %v202_v31 }
 0x1ca   :  { %213 = vst.msk [vmem:[%s345_s5 + $0x4] sm:$0xf] %vm211_vm3, %v232_v32 }

// kernel: _lambda_.47
= control target key start
LH: loop header
LB: loop body
LE: loop exit
PB: predicated region body
PF: predicated region fallthrough
CT: control target
= control target key end

     0   :  { %s960_s12 = smov 0   ;;  %s962_s13 = smov 0   ;;  %s1040_s0 = inlined_call_operand.vmem [shape: bf16[2,8,32], index: 0, kind: input, shape index: {}]   ;;  %s1041_s1 = inlined_call_operand.vmem [shape: bf16[2,8,32], index: 1, kind: input, shape index: {}]   ;;  %s1042_s2 = inlined_call_operand.vmem [shape: f32[2,4,8,8], index: 2, kind: output, shape index: {0}]   ;;  %s1043_s3 = inlined_call_operand.vmem [shape: f32[2,1,32], index: 3, kind: output, shape index: {1}]  }
   0x1   :  { %s964_s14 = smov 0  }
   0x2 LB: > { %s26_s15 = sadd.s32 1, %s929_s13  ;;  %p840_p0 = scmp.ge.s32.totalorder %s933_s14, 1  ;;  %s933_s14 = sphi %s964_s14, %s14_s14   ;;  %s929_s13 = sphi %s962_s13, %s1045_s13   ;;  %s925_s12 = sphi %s960_s12, %s1044_s12  }
   0x3   : > { %p28_p1 = scmp.ge.s32.totalorder %s26_s15, 2  ;;  %p170_p2 = scmp.lt.s32.totalorder %s933_s14, 3 }
   0x5   : > { %s1047_s15 = smov (%p28_p1, %s26_s15), 0  ;;  %p171_p3 = pnand %p840_p0, %p170_p2 }
   0x6   : > { %p206_p4 = scmp.lt.s32.totalorder (!%p171_p3), %s925_s12, 1  ;;  %vm237_vm0 = vcmask (!%p171_p3), 253952   ;;  %v935_v0 = vmov (!%p171_p3), 0.0   ;;  %vm936_vm2 = vmmov (!%p171_p3), 0   ;;  %vm706_vm3 = vcmask (!%p171_p3), 261120   ;;  %s937_s23 = smov (!%p171_p3), 120  }
   0x7   : > { %174 = sbr.rel (%p171_p3) target bundleno = 511 (0x1ff), region = 28  ;;  %238 = vst.msk [vmem:[#allocation3] sm:$0x1] (!%p171_p3), %vm237_vm0, %v935_v0  ;;  %865 = vmatprep.subr.mxu1 (!%p171_p3), %v935_v0  ;;  %860 = vmatprep.subr.mxu0 (!%p171_p3), %v935_v0  ;;  %s938_s24 = smov (!%p171_p3), 104   ;;  %vm232_vm4 = vcmask (!%p171_p3), 64512  }
   0x8   : > { %862 = vmatprep.mubr.msk.f32.mxu0 (!%p171_p3), %vm936_vm2, %v935_v0  ;;  %867 = vmatprep.mubr.msk.f32.mxu1 (!%p171_p3), %vm936_vm2, %v935_v0  ;;  %s939_s25 = smov (!%p171_p3), 112   ;;  %233 = vst.msk [vmem:[#allocation2] sm:$0xff] (!%p171_p3), %vm232_vm4, %v935_v0  ;;  %234 = vst.msk [vmem:[#allocation2 + $0x8] sm:$0xff] (!%p171_p3), %vm232_vm4, %v935_v0 }
   0x9   : > { %235 = vst.msk [vmem:[#allocation2 + $0x10] sm:$0xff] (!%p171_p3), %vm232_vm4, %v935_v0  ;;  %236 = vst.msk [vmem:[#allocation2 + $0x18] sm:$0xff] (!%p171_p3), %vm232_vm4, %v935_v0 }
   0xe   : > { %s1049_s12 = smov (!%p206_p4, %s925_s12), 1  ;;  %v705_v16 = vld [vmem:[#allocation3] sm:$0x1] }
   0xf   : > { %s841_s16 = sshll.u32 %s1049_s12, 2  ;;  %s227_s28 = scalar_lea.vmem %s1043_s3, %s1049_s12  ;;  %v249_v30 = vld [vmem:[#allocation2] sm:$0xff]  ;;  %v359_v35 = vld [vmem:[#allocation2 + $0x8] sm:$0xff] }
  0x10   : > { %s212_s19 = scalar_lea.vmem %s1040_s0, %s841_s16  ;;  %s219_s22 = scalar_lea.vmem %s1041_s1, %s841_s16  ;;  %v476_v39 = vld [vmem:[#allocation2 + $0x10] sm:$0xff]  ;;  %v591_v43 = vld [vmem:[#allocation2 + $0x18] sm:$0xff] }
  0x11   : > { %v239_v1 = vld [vmem:[%s212_s19] sm:$0xf]  ;;  %s851_s29 = sshll.u32 %s1049_s12, 5 }
  0x12   : > { %v240_v2 = vunpack.c.l.bf16 %v239_v1  ;;  %v247_v3 = vld [vmem:[%s219_s22] sm:$0xf]  ;;  %s224_s5 = scalar_lea.vmem %s1042_s2, %s851_s29 }
  0x13   : > { %v248_v4 = vunpack.c.l.bf16 %v247_v3 }
  0x14   : > { %v243_v5 = vmin.f32 %v240_v2, 0.0  ;;  %v242_v7 = vadd.f32 1.0, %v240_v2  ;;  %vm241_vm1 = vcmp.gt.f32.partialorder %v240_v2, 0.0 }
  0x15   : > { %861 = vmatpush3.msra.mxu0 %v248_v4 }
  0x16   : > { %v244_v6 = vmul.f32 1.442695, %v243_v5  ;;  %870 = vmatprep.subr.mxu0 %v935_v0 }
  0x18   : > { %909 = vpow2.f32 %v244_v6 }
  0x22   : > { %v910_v8 = vpop.eup %909 }
  0x23   : > { %v246_v9 = vsel %vm241_vm1, %v242_v7, %v910_v8 }
  0x24   : > { %361 = vrot.lane.b32.xlu0 %v246_v9, %s937_s23  ;;  %v707_v10 = vsel %vm706_vm3, %v246_v9, 0.0  ;;  %592 = vrot.lane.b32.xlu1 %v246_v9, %s938_s24 }
  0x25   : > { %v708_v11 = vrot.slane %v707_v10, 4 }
  0x27   : > { %v709_v12 = vadd.f32 %v708_v11, %v707_v10 }
  0x28   : > { %477 = vrot.lane.b32.xlu0 %v246_v9, %s939_s25  ;;  %397 = vrot.lane.b32.xlu1 %v248_v4, %s937_s23 }
  0x29   : > { %v710_v13 = vrot.slane %v709_v12, 2 }
  0x2b   : > { %v711_v14 = vadd.f32 %v710_v13, %v709_v12 }
  0x2c   : > { %512 = vrot.lane.b32.xlu0 %v248_v4, %s939_s25  ;;  %627 = vrot.lane.b32.xlu1 %v248_v4, %s938_s24 }
  0x2d   : > { %v712_v15 = vrot.slane %v711_v14, 1 }
  0x2f   : > { %v713_v17 = vadd.f32 %v712_v15, %v711_v14 }
  0x31   : > { %v714_v18 = vadd.f32 %v713_v17, %v705_v16 }
  0x33   : > { %716 = vst.msk [vmem:[#allocation3] sm:$0x1] %vm237_vm0, %v714_v18 }
  0x3a   : > { %v728_v19 = vld [vmem:[#allocation3] sm:$0x1] }
  0x3b   : > { %729 = vst.msk [vmem:[%s227_s28] sm:$0x1] %vm237_vm0, %v728_v19 }
  0x4a   : > { %250 = vxpose.xlu0.b32.start.end [1/1] (short) (narrow) %v246_v9, 8 }
  0x96   : > { %v362_v20 = vpop.permute.xlu0 %361  ;;  %v593_v21 = vpop.permute.xlu1 %592 }
  0x97   : > { %364 = vxpose.xlu1.b32.start.end [1/1] (short) (narrow) %v362_v20, 8 }
  0x9a   : > { %v478_v22 = vpop.permute.xlu0 %477  ;;  %v398_v23 = vpop.permute.xlu1 %397 }
  0x9b   : > { %480 = vxpose.xlu0.b32.start.end [1/1] (short) (narrow) %v478_v22, 8  ;;  %866 = vmatpush3.msra.mxu1 %v398_v23 }
  0x9c   : > { %875 = vmatprep.subr.mxu1 %v935_v0 }
  0x9e   : > { %v513_v24 = vpop.permute.xlu0 %512  ;;  %v628_v26 = vpop.permute.xlu1 %627 }
  0x9f   : > { %595 = vxpose.xlu0.b32.start.end [1/1] (short) (narrow) %v593_v21, 8 }
  0xca   : > { %v266_v25 = vpop.trf.xlu0 }
  0xcb   : > { %863 = vmatmul.mubr.msk.f32.vlgmr.msra.gmra.mrb[0].mxu0 %vm232_vm4, %v266_v25 }
  0xcc   : > { %871 = vmatpush3.msra.mxu0 %v513_v24  ;;  %872 = vmatprep.mubr.msk.f32.mxu0 %vm936_vm2, %v935_v0 }
 0x117   : > { %v380_v27 = vpop.trf.xlu1 }
 0x118   : > { %868 = vmatmul.mubr.msk.f32.vlgmr.msra.gmra.mrb[0].mxu1 %vm232_vm4, %v380_v27 }
 0x119   : > { %876 = vmatpush3.msra.mxu1 %v628_v26  ;;  %877 = vmatprep.mubr.msk.f32.mxu1 %vm936_vm2, %v935_v0 }
 0x11b   : > { %v496_v28 = vpop.trf.xlu0 }
 0x11c   : > { %873 = vmatmul.mubr.msk.f32.vlgmr.msra.gmra.mrb[2].mxu0 %vm232_vm4, %v496_v28 }
 0x11f   : > { %v611_v29 = vpop.trf.xlu0 }
 0x120   : > { %878 = vmatmul.mubr.msk.f32.vlgmr.msra.gmra.mrb[2].mxu1 %vm232_vm4, %v611_v29 }
 0x19e   : > { %v352_v31 = vpop.f32.mrb[0].mxu0 }
 0x19f   : > { %v356_v32 = vadd.f32 %v352_v31, %v249_v30  ;;  %v864_v33 = vpop.f32.mrb[1].mxu0 }
 0x1a1   : > { %357 = vst.msk [vmem:[#allocation2] sm:$0xff] %vm232_vm4, %v356_v32 }
 0x1a8   : > { %v720_v34 = vld [vmem:[#allocation2] sm:$0xff] }
 0x1a9   : > { %724 = vst.msk [vmem:[%s224_s5] sm:$0xff] %vm232_vm4, %v720_v34 }
 0x1eb   : > { %v469_v36 = vpop.f32.mrb[0].mxu1 }
 0x1ec   : > { %v473_v37 = vadd.f32 %v469_v36, %v359_v35  ;;  %v869_v38 = vpop.f32.mrb[1].mxu1 }
 0x1ee   : > { %474 = vst.msk [vmem:[#allocation2 + $0x8] sm:$0xff] %vm232_vm4, %v473_v37 }
 0x1ef   : > { %v584_v40 = vpop.f32.mrb[2].mxu0 }
 0x1f0   : > { %v588_v41 = vadd.f32 %v584_v40, %v476_v39  ;;  %v874_v42 = vpop.f32.mrb[3].mxu0 }
 0x1f2   : > { %589 = vst.msk [vmem:[#allocation2 + $0x10] sm:$0xff] %vm232_vm4, %v588_v41 }
 0x1f3   : > { %v699_v44 = vpop.f32.mrb[2].mxu1 }
 0x1f4   : > { %v703_v45 = vadd.f32 %v699_v44, %v591_v43  ;;  %v879_v46 = vpop.f32.mrb[3].mxu1 }
 0x1f5   : > { %v721_v47 = vld [vmem:[#allocation2 + $0x8] sm:$0xff] }
 0x1f6   : > { %725 = vst.msk [vmem:[%s224_s5 + $0x8] sm:$0xff] %vm232_vm4, %v721_v47  ;;  %704 = vst.msk [vmem:[#allocation2 + $0x18] sm:$0xff] %vm232_vm4, %v703_v45 }
 0x1f9   : > { %v722_v48 = vld [vmem:[#allocation2 + $0x10] sm:$0xff] }
 0x1fa   : > { %726 = vst.msk [vmem:[%s224_s5 + $0x10] sm:$0xff] %vm232_vm4, %v722_v48 }
 0x1fd   : > { %v723_v49 = vld [vmem:[#allocation2 + $0x18] sm:$0xff] }
 0x1fe   : > { %727 = vst.msk [vmem:[%s224_s5 + $0x18] sm:$0xff] %vm232_vm4, %v723_v49 }
 0x1ff PF: > { %s14_s14 = sadd.s32 1, %s933_s14   ;;  %s1044_s12 = smov %s929_s13 }
 0x200   : > { %p11_p5 = scmp.ge.s32.totalorder %s14_s14, 4   ;;  %s1045_s13 = smov %s1047_s15 }
 0x202   :  { %13 = sbr.rel (!%p11_p5) target bundleno = 2 (0x2), region = 84 }

// kernel: _lambda_.60
= control target key start
LH: loop header
LB: loop body
LE: loop exit
PB: predicated region body
PF: predicated region fallthrough
CT: control target
= control target key end

     0   :  { %vm18_vm0 = vcmask 261120   ;;  %vm72_vm1 = vcmask 257024   ;;  %s132_s0 = inlined_call_operand.vmem [shape: bf16[16,32], index: 0, kind: input, shape index: {}]   ;;  %s133_s1 = inlined_call_operand.vmem [shape: f32[1,32], index: 1, kind: input, shape index: {}]   ;;  %s134_s2 = inlined_call_operand.vmem [shape: f32[1,32], index: 2, kind: input, shape index: {}]   ;;  %s135_s3 = inlined_call_operand.vmem [shape: bf16[16,32], index: 3, kind: output, shape index: {}]  }
   0x1   :  { %v86_v0 = vld [vmem:[%s132_s0] sm:$0xff]  }
   0x2   :  { %v87_v1 = vunpack.c.l.bf16 %v86_v0  ;;  %v88_v2 = vunpack.c.h.bf16 %v86_v0  ;;  %v79_v22 = vld [vmem:[%s133_s1] ss:$0 sm:$0xff] }
   0x3   :  { %v80_v24 = vld [vmem:[%s134_s2] ss:$0 sm:$0xff] }
   0x4   :  { %v19_v3 = vsel %vm18_vm0, %v87_v1, 0.0  ;;  %v22_v4 = vsel %vm18_vm0, %v88_v2, 0.0 }
   0x5   :  { %20 = vadd.xlane.f32.xlu0 %v19_v3 }
   0x9   :  { %23 = vadd.xlane.f32.xlu0 %v22_v4 }
  0x92   :  { %v21_v5 = vpop.xlane.xlu0 %20 }
  0x93   :  { %v26_v6 = vmul.f32 0.03125, %v21_v5 }
  0x95   :  { %v28_v7 = vsub.f32 %v87_v1, %v26_v6 }
  0x96   :  { %v24_v8 = vpop.xlane.xlu0 %23 }
  0x97   :  { %v27_v9 = vmul.f32 0.03125, %v24_v8  ;;  %v30_v10 = vmul.f32 %v28_v7, %v28_v7 }
  0x99   :  { %v29_v11 = vsub.f32 %v88_v2, %v27_v9  ;;  %v32_v12 = vsel %vm18_vm0, %v30_v10, 0.0 }
  0x9a   :  { %33 = vadd.xlane.f32.xlu1 %v32_v12 }
  0x9b   :  { %v31_v13 = vmul.f32 %v29_v11, %v29_v11 }
  0x9d   :  { %v35_v14 = vsel %vm18_vm0, %v31_v13, 0.0 }
  0x9e   :  { %36 = vadd.xlane.f32.xlu1 %v35_v14 }
 0x127   :  { %v34_v15 = vpop.xlane.xlu1 %33 }
 0x128   :  { %v38_v16 = vmul.f32 0.03125, %v34_v15 }
 0x12a   :  { %v40_v17 = vadd.f32 1e-05, %v38_v16 }
 0x12b   :  { %v37_v18 = vpop.xlane.xlu1 %36 }
 0x12c   :  { %89 = vrsqrt.f32 %v40_v17  ;;  %v39_v19 = vmul.f32 0.03125, %v37_v18 }
 0x12e   :  { %v41_v20 = vadd.f32 1e-05, %v39_v19 }
 0x130   :  { %91 = vrsqrt.f32 %v41_v20 }
 0x136   :  { %v90_v21 = vpop.eup %89 }
 0x137   :  { %v44_v23 = vmul.f32 %v90_v21, %v28_v7 }
 0x139   :  { %v53_v25 = vmul.f32 %v79_v22, %v44_v23 }
 0x13a   :  { %v92_v26 = vpop.eup %91 }
 0x13b   :  { %v62_v27 = vadd.f32 %v80_v24, %v53_v25  ;;  %v45_v28 = vmul.f32 %v92_v26, %v29_v11 }
 0x13d   :  { %v83_v29 = vpack.c.bf16 %v62_v27, %v62_v27  ;;  %v54_v30 = vmul.f32 %v79_v22, %v45_v28 }
 0x13f   :  { %73 = vst.msk [vmem:[%s135_s3] sm:$0xf] %vm72_vm1, %v83_v29  ;;  %v63_v31 = vadd.f32 %v80_v24, %v54_v30 }
 0x141   :  { %v84_v32 = vpack.c.bf16 %v63_v31, %v63_v31 }
 0x143   :  { %74 = vst.msk [vmem:[%s135_s3 + $0x4] sm:$0xf] %vm72_vm1, %v84_v32 }

// kernel: _lambda_.85
= control target key start
LH: loop header
LB: loop body
LE: loop exit
PB: predicated region body
PF: predicated region fallthrough
CT: control target
= control target key end

     0   :  { %v176_v1 = vmov 0.0   ;;  %vm177_vm0 = vmmov 0   ;;  %s225_s0 = inlined_call_operand.vmem [shape: bf16[16,32], index: 0, kind: input, shape index: {}]   ;;  %s226_s1 = inlined_call_operand.vmem [shape: bf16[32,128], index: 1, kind: input, shape index: {}]   ;;  %s227_s2 = inlined_call_operand.vmem [shape: f32[1,128], index: 2, kind: input, shape index: {}]   ;;  %s228_s3 = inlined_call_operand.hbm [shape: f32[16,128], index: 3, kind: output, shape index: {}]  }
   0x1   :  { %v149_v0 = vld [vmem:[%s226_s1] sm:$0xff]   ;;  %136 = vmatprep.subr.bf16.mxu0 %v176_v1  ;;  %v150_v2 = vld [vmem:[%s226_s1 + $0x8] sm:$0xff]   ;;  %140 = vmatprep.mubr.msk.bf16.mxu0 %vm177_vm0, %v176_v1 }
   0x2   :  { %137 = vmatpush3.bf16.msra.mxu0 %v149_v0 }
   0x3   :  { %138 = vmatprep.subr.bf16.mxu0 %v176_v1 }
   0x4   :  { %8 = vsyncpa [#allocation4], 0  ;;  %v151_v3 = vld [vmem:[%s225_s0] sm:$0xff]   ;;  %vm47_vm1 = vcmask 261120   ;;  %s178_s20 = smov [#allocation3]  }
   0x5   :  { %v132_v4 = vld [vmem:[%s227_s2] ss:$0 sm:$0xff]  ;;  %s117_s21 = sshll.u32 %s178_s20, 4  ;;  %s118_s21 = int_to_ptr.vmem [resolvable:$true] %s117_s21 }
   0x6   :  { %139 = vmatpush3.bf16.msra.mxu0 %v150_v2  ;;  %s152_s1 = scalar_lea.vmem %s118_s21, 256  ;;  %p157_p1 = scmp.lt.s32.totalorder %s118_s21, %s118_s21 }
   0x7   :  { %p153_p0 = scmp.ne.s32.totalorder %s118_s21, %s152_s1  ;;  %p158_p2 = scmp.lt.s32.totalorder %s152_s1, %s152_s1 }
   0x9   :  { %141 = vmatmul.mubr.msk.bf16.vlgmr.msra.gmra.mrb[0].mxu0 %vm47_vm1, %v151_v3  ;;  %p159_p3 = por %p158_p2, %p157_p1 }
   0xb   :  { %p160_p4 = pnand %p159_p3, %p153_p0 }
  0xdc   :  { %v85_v5 = vpop.f32.mrb[0].mxu0 }
  0xdd   :  { %v108_v6 = vadd.f32 %v132_v4, %v85_v5  ;;  %v142_v7 = vpop.f32.mrb[1].mxu0 }
  0xde   :  { %v88_v8 = vpop.f32.mrb[2].mxu0 }
  0xdf   :  { %110 = vst [vmem:[#allocation3] sm:$0xff] %v108_v6  ;;  %v109_v9 = vadd.f32 %v132_v4, %v88_v8  ;;  %v143_v10 = vpop.f32.mrb[3].mxu0 }
  0xe1   :  { %111 = vst [vmem:[#allocation3 + $0x8] sm:$0xff] %v109_v9 }
  0xe2   :  { %163 = shalt.err (!%p160_p4)
}
  0xe3   :  { %s164_s22 = scalar_lea.hbm %s228_s3, 256 }
  0xe4   :  { %p165_p5 = scmp.ne.s32.totalorder %s228_s3, %s164_s22  ;;  %p168_p6 = scmp.lt.u32.totalorder %s164_s22, %s228_s3 }
  0xe6   :  { %p170_p7 = pnand %p168_p6, %p165_p5 }
  0xe8   :  { %173 = shalt.err (!%p170_p7)
}
  0xe9   :  { %s179_s27 = smov 128   ;;  %s180_s28 = smov 8  }
  0xea   :  { %123 = dma.vmem_to_hbm [thread:$0]  %s118_s21, 256, %s228_s3, [#allocation4], %s179_s27, %s179_s27, %s180_s28  }
  0xeb   :  { %174 = dma.done.wait [#allocation4], 256  }
  0xec   :  { %175 = vsyncadd [#allocation4], 4294967040 }
  0xed   :  { %127 = vsyncpa [#allocation4], 1 }

// kernel: _lambda_.66
= control target key start
LH: loop header
LB: loop body
LE: loop exit
PB: predicated region body
PF: predicated region fallthrough
CT: control target
= control target key end

     0   :  { %vm22_vm0 = vcmask 523264   ;;  %v157_v0 = vmov 0.0   ;;  %vm158_vm1 = vmmov 0   ;;  %vm54_vm2 = vcmask 261120   ;;  %s215_s2 = inlined_call_operand.vmem [shape: bf16[32,64], index: 2, kind: input, shape index: {}]   ;;  %s216_s0 = inlined_call_operand.vmem [shape: bf16[16,32], index: 0, kind: input, shape index: {}]   ;;  %s217_s1 = inlined_call_operand.vmem [shape: bf16[16,32], index: 1, kind: input, shape index: {}]   ;;  %s218_s3 = inlined_call_operand.vmem [shape: f32[1,64], index: 3, kind: input, shape index: {}]   ;;  %s219_s4 = inlined_call_operand.vmem [shape: bf16[16,64], index: 4, kind: output, shape index: {}]  }
   0x1   :  { %145 = vmatprep.subr.bf16.mxu0 %v157_v0  ;;  %v155_v1 = vld [vmem:[%s215_s2] sm:$0xff]   ;;  %149 = vmatprep.mubr.msk.bf16.mxu0 %vm158_vm1, %v157_v0  ;;  %23 = vst.msk [vmem:[#allocation2] sm:$0xff] %vm22_vm0, %v157_v0  ;;  %24 = vst.msk [vmem:[#allocation2 + $0x8] sm:$0xff] %vm22_vm0, %v157_v0  ;;  %v156_v2 = vld [vmem:[%s215_s2 + $0x8] sm:$0xff]   ;;  %vm126_vm3 = vcmask 519168  }
   0x2   :  { %146 = vmatpush3.bf16.msra.mxu0 %v155_v1  ;;  %v27_v3 = vld [vmem:[%s216_s0] sm:$0xf]  ;;  %v28_v4 = vld [vmem:[%s216_s0 + $0x4] sm:$0xf] }
   0x3   :  { %v29_v5 = vld [vmem:[%s217_s1] sm:$0xf]  ;;  %147 = vmatprep.subr.bf16.mxu0 %v157_v0  ;;  %v30_v6 = vld [vmem:[%s217_s1 + $0x4] sm:$0xf] }
   0x4   :  { %v31_v7 = vadd.bf16 %v29_v5, %v27_v3  ;;  %v32_v8 = vadd.bf16 %v30_v6, %v28_v4  ;;  %v137_v18 = vld [vmem:[%s218_s3] ss:$0 sm:$0xff] }
   0x6   :  { %148 = vmatpush3.bf16.msra.mxu0 %v156_v2  ;;  %v133_v9 = vcombine.low %v31_v7, %v32_v8 }
   0x8   :  { %v25_v10 = vld [vmem:[#allocation2] sm:$0xff]  ;;  %v26_v12 = vld [vmem:[#allocation2 + $0x8] sm:$0xff] }
   0x9   :  { %150 = vmatmul.mubr.msk.bf16.vlgmr.msra.gmra.mrb[0].mxu0 %vm54_vm2, %v133_v9 }
  0xdc   :  { %v92_v11 = vpop.f32.mrb[0].mxu0 }
  0xdd   :  { %v99_v13 = vadd.f32 %v92_v11, %v25_v10  ;;  %v151_v14 = vpop.f32.mrb[1].mxu0 }
  0xde   :  { %v95_v15 = vpop.f32.mrb[2].mxu0 }
  0xdf   :  { %102 = vst.msk [vmem:[#allocation2] sm:$0xff] %vm22_vm0, %v99_v13  ;;  %v100_v16 = vadd.f32 %v95_v15, %v26_v12  ;;  %v152_v17 = vpop.f32.mrb[3].mxu0 }
  0xe1   :  { %103 = vst.msk [vmem:[#allocation2 + $0x8] sm:$0xff] %vm22_vm0, %v100_v16 }
  0xe6   :  { %v107_v19 = vld [vmem:[#allocation2] sm:$0xff] }
  0xe7   :  { %v116_v20 = vadd.f32 %v137_v18, %v107_v19 }
  0xe8   :  { %v108_v21 = vld [vmem:[#allocation2 + $0x8] sm:$0xff] }
  0xe9   :  { %v140_v22 = vpack.c.bf16 %v116_v20, %v116_v20  ;;  %v117_v23 = vadd.f32 %v137_v18, %v108_v21 }
  0xeb   :  { %127 = vst.msk [vmem:[%s219_s4] sm:$0xf] %vm126_vm3, %v140_v22  ;;  %v141_v24 = vpack.c.bf16 %v117_v23, %v117_v23 }
  0xed   :  { %128 = vst.msk [vmem:[%s219_s4 + $0x4] sm:$0xf] %vm126_vm3, %v141_v24 }

// kernel: _lambda_.86
= control target key start
LH: loop header
LB: loop body
LE: loop exit
PB: predicated region body
PF: predicated region fallthrough
CT: control target
= control target key end

     0   :  { %v164_v0 = vmov 0.0   ;;  %vm165_vm0 = vmmov 0   ;;  %vm19_vm1 = vcmask 261120   ;;  %vm55_vm2 = vcmask 1043456   ;;  %s211_s1 = inlined_call_operand.vmem [shape: bf16[40,32], index: 1, kind: input, shape index: {}]   ;;  %s212_s0 = inlined_call_operand.vmem [shape: bf16[16,40], index: 0, kind: input, shape index: {}]   ;;  %s213_s2 = inlined_call_operand.vmem [shape: f32[1,32], index: 2, kind: input, shape index: {}]   ;;  %s214_s3 = inlined_call_operand.vmem [shape: bf16[16,32], index: 3, kind: output, shape index: {}]  }
   0x1   :  { %148 = vmatprep.subr.bf16.mxu0 %v164_v0  ;;  %v160_v1 = vld [vmem:[%s211_s1] sm:$0xff]   ;;  %154 = vmatprep.mubr.msk.bf16.mxu0 %vm165_vm0, %v164_v0  ;;  %20 = vst.msk [vmem:[#allocation2] sm:$0xff] %vm19_vm1, %v164_v0  ;;  %21 = vst.msk [vmem:[#allocation2 + $0x8] sm:$0xff] %vm19_vm1, %v164_v0  ;;  %v161_v2 = vld [vmem:[%s211_s1 + $0x8] sm:$0xff]   ;;  %vm51_vm3 = vcmask 326656   ;;  %vm127_vm4 = vcmask 257024  }
   0x2   :  { %149 = vmatpush3.bf16.msra.mxu0 %v160_v1  ;;  %v162_v3 = vld [vmem:[%s211_s1 + $0x10] ss:$0 sps:$4 sm:$0xff]   ;;  %v163_v5 = vld [vmem:[%s212_s0] sm:$0xff]  }
   0x3   :  { %150 = vmatprep.subr.bf16.mxu0 %v164_v0  ;;  %v57_v4 = vsel %vm55_vm2, %v162_v3, 0  ;;  %v139_v14 = vld [vmem:[%s213_s2] ss:$0 sm:$0xff] }
   0x6   :  { %151 = vmatpush3.bf16.msra.mxu0 %v161_v2 }
   0x7   :  { %152 = vmatprep.subr.bf16.mxu0 %v164_v0 }
   0x8   :  { %v22_v6 = vld [vmem:[#allocation2] sm:$0xff]  ;;  %v23_v8 = vld [vmem:[#allocation2 + $0x8] sm:$0xff] }
   0xa   :  { %153 = vmatpush3.bf16.msra.mxu0 %v57_v4 }
   0xd   :  { %155 = vmatmul.mubr.msk.bf16.vlgmr.msra.gmra.mrb[0].mxu0 %vm51_vm3, %v163_v5 }
  0xe0   :  { %v93_v7 = vpop.f32.mrb[0].mxu0 }
  0xe1   :  { %v100_v9 = vadd.f32 %v93_v7, %v22_v6  ;;  %v156_v10 = vpop.f32.mrb[1].mxu0 }
  0xe2   :  { %v96_v11 = vpop.f32.mrb[2].mxu0 }
  0xe3   :  { %103 = vst.msk [vmem:[#allocation2] sm:$0xff] %vm19_vm1, %v100_v9  ;;  %v101_v12 = vadd.f32 %v96_v11, %v23_v8  ;;  %v157_v13 = vpop.f32.mrb[3].mxu0 }
  0xe5   :  { %104 = vst.msk [vmem:[#allocation2 + $0x8] sm:$0xff] %vm19_vm1, %v101_v12 }
  0xea   :  { %v108_v15 = vld [vmem:[#allocation2] sm:$0xff] }
  0xeb   :  { %v117_v16 = vadd.f32 %v139_v14, %v108_v15 }
  0xec   :  { %v109_v17 = vld [vmem:[#allocation2 + $0x8] sm:$0xff] }
  0xed   :  { %v142_v18 = vpack.c.bf16 %v117_v16, %v117_v16  ;;  %v118_v19 = vadd.f32 %v139_v14, %v109_v17 }
  0xef   :  { %128 = vst.msk [vmem:[%s214_s3] sm:$0xf] %vm127_vm4, %v142_v18  ;;  %v143_v20 = vpack.c.bf16 %v118_v19, %v118_v19 }
  0xf1   :  { %129 = vst.msk [vmem:[%s214_s3 + $0x4] sm:$0xf] %vm127_vm4, %v143_v20 }

// kernel: _lambda_.87
= control target key start
LH: loop header
LB: loop body
LE: loop exit
PB: predicated region body
PF: predicated region fallthrough
CT: control target
= control target key end

     0   :  { %v136_v0 = vmov 0.0   ;;  %vm137_vm0 = vmmov 0   ;;  %vm46_vm1 = vcmask 261120   ;;  %s176_s1 = inlined_call_operand.vmem [shape: bf16[32,128], index: 1, kind: input, shape index: {}]   ;;  %s177_s0 = inlined_call_operand.vmem [shape: bf16[16,32], index: 0, kind: input, shape index: {}]   ;;  %s178_s2 = inlined_call_operand.vmem [shape: f32[1,128], index: 2, kind: input, shape index: {}]   ;;  %s179_s3 = inlined_call_operand.vmem [shape: f32[16,128], index: 3, kind: output, shape index: {}]  }
   0x1   :  { %123 = vmatprep.subr.bf16.mxu0 %v136_v0  ;;  %v133_v1 = vld [vmem:[%s176_s1] sm:$0xff]   ;;  %127 = vmatprep.mubr.msk.bf16.mxu0 %vm137_vm0, %v136_v0  ;;  %v134_v2 = vld [vmem:[%s176_s1 + $0x8] sm:$0xff]  }
   0x2   :  { %124 = vmatpush3.bf16.msra.mxu0 %v133_v1  ;;  %v135_v3 = vld [vmem:[%s177_s0] sm:$0xff]  }
   0x3   :  { %125 = vmatprep.subr.bf16.mxu0 %v136_v0  ;;  %v119_v4 = vld [vmem:[%s178_s2] ss:$0 sm:$0xff] }
   0x6   :  { %126 = vmatpush3.bf16.msra.mxu0 %v134_v2 }
   0x9   :  { %128 = vmatmul.mubr.msk.bf16.vlgmr.msra.gmra.mrb[0].mxu0 %vm46_vm1, %v135_v3 }
  0xdc   :  { %v84_v5 = vpop.f32.mrb[0].mxu0 }
  0xdd   :  { %v107_v6 = vadd.f32 %v119_v4, %v84_v5  ;;  %v129_v7 = vpop.f32.mrb[1].mxu0 }
  0xde   :  { %v87_v8 = vpop.f32.mrb[2].mxu0 }
  0xdf   :  { %109 = vst [vmem:[%s179_s3] sm:$0xff] %v107_v6  ;;  %v108_v9 = vadd.f32 %v119_v4, %v87_v8  ;;  %v130_v10 = vpop.f32.mrb[3].mxu0 }
  0xe1   :  { %110 = vst [vmem:[%s179_s3 + $0x8] sm:$0xff] %v108_v9 }

</bundles_post_ra>
